<compile_context>
chip_gen: v5e
topology: v5e:2x2
jax: 0.10.0
libtpu: 0.0.40
codegen_flags: <defaults>
</compile_context>

<pallas_src>
import jax
import jax.numpy as jnp
from jax.experimental import pallas as pl
from jax.experimental.pallas import tpu as pltpu

D = 128      # dimension of x (func: R^D -> R^D); lane-dense
H = 128      # hidden width of the synthetic `func` MLP
ZL_W = 128   # lane-dense width of the [z, l] output slab


def _cnf_euler_kernel(dts_ref, c_all_ref, x0_ref, w1_ref, w2_ref, b2_ref, s_ref,
                      x_out_ref, zl_out_ref):
    """Euler-integrates one (TB, D) tile of trajectories over all time steps.

    Per-step body is exactly ContinuousNormalizingFlowODE.forward:
      dx/dt = func(t, x); dz/dt = 0.5*||dx/dt||^2; dl/dt = tr(d func / d x),
    with the Jacobian trace in closed form: sum_k (1 - h_k^2) * s_k.
    """
    # ---- hoisted once per batch tile (outside the time loop) ----------------
    w1 = w1_ref[...]            # (D, H) bf16, VMEM-resident for the whole solve
    w2 = w2_ref[...]            # (H, D) bf16
    b2 = b2_ref[...]            # (1, D) f32
    s = s_ref[...]              # (1, H) f32, host-precomputed trace helper

    n_steps = dts_ref.shape[0]  # static trip count (7 for the module default)
    tb = x0_ref.shape[0]

    x = x0_ref[...]             # (TB, D) f32, lives in vregs across the steps
    z = jnp.zeros((tb, 1), jnp.float32)
    l = jnp.zeros((tb, 1), jnp.float32)

    # Fully-unrolled static time loop: static SMEM/VMEM row indices per step.
    for i in range(n_steps):
        dt = dts_ref[i]                               # f32 scalar (SMEM)
        c = c_all_ref[pl.ds(i, 1), :]                 # (1, H): b1 + t_i * wt
        h = jnp.tanh(
            jnp.dot(x.astype(jnp.bfloat16), w1,
                    preferred_element_type=jnp.float32) + c)             # (TB, H)
        dxdt = jnp.dot(h.astype(jnp.bfloat16), w2,
                       preferred_element_type=jnp.float32) + b2          # (TB, D)
        dzdt = 0.5 * jnp.sum(dxdt * dxdt, axis=-1, keepdims=True)        # (TB, 1)
        dldt = jnp.sum((1.0 - h * h) * s, axis=-1, keepdims=True)        # (TB, 1)
        x = x + dt * dxdt
        z = z + dt * dzdt
        l = l + dt * dldt

    # Lane-dense writeback: final x tile, plus a (TB, 128) slab with z in
    # column 0 and l in column 1 (two masked 1-lane stores; sliced on host).
    x_out_ref[...] = x
    zl_out_ref[...] = jnp.zeros((tb, zl_out_ref.shape[1]), jnp.float32)
    zl_out_ref[:, 0:1] = z
    zl_out_ref[:, 1:2] = l


def cnf_euler_solve(x0, ts, W1, b1, wt, W2, b2):
    """Batched ContinuousNormalizingFlowODE.__call__ (forward, method='euler').

    x0: (B, D) initial conditions. Returns (x_final (B, D), transport_cost (B,),
    trace_integral (B,)) — the batched analogue of evaluate_final_state.
    """
    bsz, dim = x0.shape
    assert dim == D
    # One tile for small batches (single grid point, no per-step grid overhead);
    # 128-row tiles on a parallel axis for larger batches.
    tb = bsz if bsz <= 128 else 128
    assert bsz % tb == 0 and tb % 8 == 0
    n_steps = int(ts.shape[0]) - 1

    ts_f = ts.astype(jnp.float32)
    t_steps = ts_f[:-1]                      # t_i used at step i, (n_steps,)
    dts = ts_f[1:] - ts_f[:-1]               # dt_i = ts[i+1]-ts[i], (n_steps,)

    # ---- host-side precompute (review items 1-3) ----------------------------
    w1_bf = W1.astype(jnp.bfloat16)                                   # (D, H)
    w2_bf = W2.astype(jnp.bfloat16)                                   # (H, D)
    c_all = (b1 + t_steps[:, None] * wt).astype(jnp.float32)          # (n_steps, H)
    s = jnp.sum(W1 * W2.T, axis=0, keepdims=True).astype(jnp.float32)  # (1, H)

    smem = pltpu.MemorySpace.SMEM
    x_out, zl_out = pl.pallas_call(
        _cnf_euler_kernel,
        out_shape=(jax.ShapeDtypeStruct((bsz, D), jnp.float32),
                   jax.ShapeDtypeStruct((bsz, ZL_W), jnp.float32)),
        grid_spec=pltpu.PrefetchScalarGridSpec(
            num_scalar_prefetch=0,
            grid=(bsz // tb,),
            in_specs=[
                pl.BlockSpec((n_steps,), lambda i: (0,), memory_space=smem),  # dt_i
                pl.BlockSpec((n_steps, H), lambda i: (0, 0)),   # c_i = b1 + t_i*wt
                pl.BlockSpec((tb, D), lambda i: (i, 0)),        # x0: one batch tile
                pl.BlockSpec((D, H), lambda i: (0, 0)),         # W1 (bf16, resident)
                pl.BlockSpec((H, D), lambda i: (0, 0)),         # W2 (bf16, resident)
                pl.BlockSpec((1, D), lambda i: (0, 0)),         # b2
                pl.BlockSpec((1, H), lambda i: (0, 0)),         # s (trace helper)
            ],
            out_specs=(
                pl.BlockSpec((tb, D), lambda i: (i, 0)),
                pl.BlockSpec((tb, ZL_W), lambda i: (i, 0)),
            ),
        ),
        compiler_params=pltpu.CompilerParams(
            dimension_semantics=("parallel",)),
    )(dts, c_all, x0.astype(jnp.float32), w1_bf, w2_bf, b2, s)
    return x_out, zl_out[:, 0], zl_out[:, 1]


def _reference_solve(x0, ts, W1, b1, wt, W2, b2):
    """Pure-JAX reference: identical Euler scheme and bf16 matmul quantization."""
    W1b = W1.astype(jnp.bfloat16)
    W2b = W2.astype(jnp.bfloat16)
    s = jnp.sum(W1 * W2.T, axis=0)                 # (H,)
    tsf = ts.astype(jnp.float32)
    x = x0.astype(jnp.float32)
    z = jnp.zeros((x0.shape[0],), jnp.float32)
    l = jnp.zeros((x0.shape[0],), jnp.float32)
    for i in range(int(ts.shape[0]) - 1):
        t = tsf[i]
        dt = tsf[i + 1] - tsf[i]
        h = jnp.tanh(jnp.dot(x.astype(jnp.bfloat16), W1b,
                             preferred_element_type=jnp.float32) + b1 + t * wt)
        dxdt = jnp.dot(h.astype(jnp.bfloat16), W2b,
                       preferred_element_type=jnp.float32) + b2
        dzdt = 0.5 * jnp.sum(dxdt * dxdt, axis=-1)
        dldt = jnp.sum((1.0 - h * h) * s, axis=-1)
        x = x + dt * dxdt
        z = z + dt * dzdt
        l = l + dt * dldt
    return x, z, l


if __name__ == "__main__":
    key = jax.random.PRNGKey(0)
    k1, k2, k3, k4, k5, k6 = jax.random.split(key, 6)

    # Deterministic synthetic parameters for `func`.
    W1 = 0.1 * jax.random.normal(k1, (D, H), jnp.float32)
    b1 = 0.1 * jax.random.normal(k2, (1, H), jnp.float32)
    wt = 0.1 * jax.random.normal(k3, (1, H), jnp.float32)
    W2 = 0.1 * jax.random.normal(k4, (H, D), jnp.float32)
    b2 = 0.1 * jax.random.normal(k5, (1, D), jnp.float32)

    # Batch of initial conditions (one 128-row tile) and the module's default
    # time grid (8 points -> 7 Euler steps).
    B = 128
    x0 = jax.random.normal(k6, (B, D), jnp.float32)
    ts = jnp.linspace(0.0, 1.0, 8, dtype=jnp.float32)

    x_fin, z_fin, l_fin = cnf_euler_solve(x0, ts, W1, b1, wt, W2, b2)
    jax.block_until_ready((x_fin, z_fin, l_fin))

    # --- check 1: closed-form dl/dt = tr(Jacobian(func)) matches autodiff
    #              (stands in for torch.autograd.functional.jacobian).
    t0 = float(ts[0])
    hp = jax.lax.Precision.HIGHEST

    def func_single(xv):                                   # (D,) -> (D,)
        hh = jnp.tanh(jnp.dot(xv, W1, precision=hp) + b1[0] + t0 * wt[0])
        return jnp.dot(hh, W2, precision=hp) + b2[0]

    s_host = jnp.sum(W1 * W2.T, axis=0)
    for j in range(2):
        tr_auto = jnp.trace(jax.jacfwd(func_single)(x0[j]))
        hh = jnp.tanh(jnp.dot(x0[j], W1, precision=hp) + b1[0] + t0 * wt[0])
        tr_closed = jnp.sum((1.0 - hh * hh) * s_host)
        assert jnp.allclose(tr_auto, tr_closed, rtol=1e-3, atol=1e-3), (tr_auto, tr_closed)

    # --- check 2: full fused Euler trajectory vs. pure-JAX reference.
    x_ref, z_ref, l_ref = _reference_solve(x0, ts, W1, b1, wt, W2, b2)
    assert x_fin.shape == (B, D) and z_fin.shape == (B,) and l_fin.shape == (B,)
    assert jnp.allclose(x_fin, x_ref, rtol=5e-3, atol=5e-3)
    assert jnp.allclose(z_fin, z_ref, rtol=5e-3, atol=5e-3)
    assert jnp.allclose(l_fin, l_ref, rtol=5e-3, atol=5e-3)
    print("KERNEL_OK")
</pallas_src>

<mosaic_0001>
module attributes {stable_mosaic.version = 11 : i64} {
  func.func @_cnf_euler_kernel(%arg0: i32, %arg1: memref<7xf32, #tpu.memory_space<smem>>, %arg2: memref<7x128xf32, #tpu.memory_space<vmem>>, %arg3: memref<128x128xf32, #tpu.memory_space<vmem>>, %arg4: memref<128x128xbf16, #tpu.memory_space<vmem>>, %arg5: memref<128x128xbf16, #tpu.memory_space<vmem>>, %arg6: memref<1x128xf32, #tpu.memory_space<vmem>>, %arg7: memref<1x128xf32, #tpu.memory_space<vmem>>, %arg8: memref<128x128xf32, #tpu.memory_space<vmem>>, %arg9: memref<128x128xf32, #tpu.memory_space<vmem>>) attributes {dimension_semantics = [#tpu.dimension_semantics<parallel>], iteration_bounds = array<i64: 1>, scalar_prefetch = 0 : i64, scratch_operands = 0 : i64, tpu.core_type = #tpu.core_type<tc>, window_params = [{transform_indices = @transform_0, window_bounds = array<i64: 7>}, {pipeline_mode = #tpu.pipeline_mode<synchronous>, transform_indices = @transform_1, window_bounds = array<i64: 7, 128>}, {transform_indices = @transform_2, window_bounds = array<i64: 128, 128>}, {pipeline_mode = #tpu.pipeline_mode<synchronous>, transform_indices = @transform_3, window_bounds = array<i64: 128, 128>}, {pipeline_mode = #tpu.pipeline_mode<synchronous>, transform_indices = @transform_4, window_bounds = array<i64: 128, 128>}, {pipeline_mode = #tpu.pipeline_mode<synchronous>, transform_indices = @transform_5, window_bounds = array<i64: 1, 128>}, {pipeline_mode = #tpu.pipeline_mode<synchronous>, transform_indices = @transform_6, window_bounds = array<i64: 1, 128>}, {transform_indices = @transform_7, window_bounds = array<i64: 128, 128>}, {transform_indices = @transform_8, window_bounds = array<i64: 128, 128>}]} {
    %c0 = arith.constant 0 : index
    %c0_0 = arith.constant 0 : index
    %0 = vector.load %arg4[%c0, %c0_0] : memref<128x128xbf16, #tpu.memory_space<vmem>>, vector<128x128xbf16>
    %c0_1 = arith.constant 0 : index
    %c0_2 = arith.constant 0 : index
    %1 = vector.load %arg5[%c0_1, %c0_2] : memref<128x128xbf16, #tpu.memory_space<vmem>>, vector<128x128xbf16>
    %c0_3 = arith.constant 0 : index
    %c0_4 = arith.constant 0 : index
    %2 = vector.load %arg6[%c0_3, %c0_4] : memref<1x128xf32, #tpu.memory_space<vmem>>, vector<1x128xf32>
    %c0_5 = arith.constant 0 : index
    %c0_6 = arith.constant 0 : index
    %3 = vector.load %arg7[%c0_5, %c0_6] : memref<1x128xf32, #tpu.memory_space<vmem>>, vector<1x128xf32>
    %c0_7 = arith.constant 0 : index
    %c0_8 = arith.constant 0 : index
    %4 = vector.load %arg3[%c0_7, %c0_8] : memref<128x128xf32, #tpu.memory_space<vmem>>, vector<128x128xf32>
    %cst = arith.constant 0.000000e+00 : f32
    %5 = vector.broadcast %cst : f32 to vector<128x1xf32>
    %cst_9 = arith.constant 0.000000e+00 : f32
    %6 = vector.broadcast %cst_9 : f32 to vector<128x1xf32>
    %c0_10 = arith.constant 0 : index
    %7 = memref.load %arg1[%c0_10] : memref<7xf32, #tpu.memory_space<smem>>
    %c0_11 = arith.constant 0 : index
    %c0_12 = arith.constant 0 : index
    %8 = vector.load %arg2[%c0_11, %c0_12] : memref<7x128xf32, #tpu.memory_space<vmem>>, vector<1x128xf32>
    %9 = arith.truncf %4 : vector<128x128xf32> to vector<128x128xbf16>
    %cst_13 = arith.constant dense<0.000000e+00> : vector<128x128xf32>
    %10 = tpu.matmul %9, %0, %cst_13 {dimension_numbers = #tpu.dot_dimension_numbers<[1], [0], [0], [1], [0, 0, 1, 1], [], []>} : vector<128x128xbf16>, vector<128x128xbf16>, vector<128x128xf32> -> vector<128x128xf32>
    %11 = vector.broadcast %8 : vector<1x128xf32> to vector<128x128xf32>
    %12 = arith.addf %10, %11 : vector<128x128xf32>
    %13 = math.tanh %12 : vector<128x128xf32>
    %14 = arith.truncf %13 : vector<128x128xf32> to vector<128x128xbf16>
    %cst_14 = arith.constant dense<0.000000e+00> : vector<128x128xf32>
    %15 = tpu.matmul %14, %1, %cst_14 {dimension_numbers = #tpu.dot_dimension_numbers<[1], [0], [0], [1], [0, 0, 1, 1], [], []>} : vector<128x128xbf16>, vector<128x128xbf16>, vector<128x128xf32> -> vector<128x128xf32>
    %16 = vector.broadcast %2 : vector<1x128xf32> to vector<128x128xf32>
    %17 = arith.addf %15, %16 : vector<128x128xf32>
    %18 = arith.mulf %17, %17 : vector<128x128xf32>
    %cst_15 = arith.constant dense<0.000000e+00> : vector<128xf32>
    %19 = vector.multi_reduction <add>, %18, %cst_15 [1] : vector<128x128xf32> to vector<128xf32>
    %20 = vector.shape_cast %19 : vector<128xf32> to vector<128x1xf32>
    %cst_16 = arith.constant 5.000000e-01 : f32
    %21 = vector.broadcast %cst_16 : f32 to vector<128x1xf32>
    %22 = arith.mulf %21, %20 : vector<128x1xf32>
    %23 = arith.mulf %13, %13 : vector<128x128xf32>
    %cst_17 = arith.constant 1.000000e+00 : f32
    %24 = vector.broadcast %cst_17 : f32 to vector<128x128xf32>
    %25 = arith.subf %24, %23 : vector<128x128xf32>
    %26 = vector.broadcast %3 : vector<1x128xf32> to vector<128x128xf32>
    %27 = arith.mulf %25, %26 : vector<128x128xf32>
    %cst_18 = arith.constant dense<0.000000e+00> : vector<128xf32>
    %28 = vector.multi_reduction <add>, %27, %cst_18 [1] : vector<128x128xf32> to vector<128xf32>
    %29 = vector.shape_cast %28 : vector<128xf32> to vector<128x1xf32>
    %30 = vector.broadcast %7 : f32 to vector<128x128xf32>
    %31 = arith.mulf %30, %17 : vector<128x128xf32>
    %32 = arith.addf %4, %31 : vector<128x128xf32>
    %33 = vector.broadcast %7 : f32 to vector<128x1xf32>
    %34 = arith.mulf %33, %22 : vector<128x1xf32>
    %35 = arith.addf %5, %34 : vector<128x1xf32>
    %36 = vector.broadcast %7 : f32 to vector<128x1xf32>
    %37 = arith.mulf %36, %29 : vector<128x1xf32>
    %38 = arith.addf %6, %37 : vector<128x1xf32>
    %c1 = arith.constant 1 : index
    %39 = memref.load %arg1[%c1] : memref<7xf32, #tpu.memory_space<smem>>
    %c1_19 = arith.constant 1 : index
    %c0_20 = arith.constant 0 : index
    %40 = vector.load %arg2[%c1_19, %c0_20] : memref<7x128xf32, #tpu.memory_space<vmem>>, vector<1x128xf32>
    %41 = arith.truncf %32 : vector<128x128xf32> to vector<128x128xbf16>
    %cst_21 = arith.constant dense<0.000000e+00> : vector<128x128xf32>
    %42 = tpu.matmul %41, %0, %cst_21 {dimension_numbers = #tpu.dot_dimension_numbers<[1], [0], [0], [1], [0, 0, 1, 1], [], []>} : vector<128x128xbf16>, vector<128x128xbf16>, vector<128x128xf32> -> vector<128x128xf32>
    %43 = vector.broadcast %40 : vector<1x128xf32> to vector<128x128xf32>
    %44 = arith.addf %42, %43 : vector<128x128xf32>
    %45 = math.tanh %44 : vector<128x128xf32>
    %46 = arith.truncf %45 : vector<128x128xf32> to vector<128x128xbf16>
    %cst_22 = arith.constant dense<0.000000e+00> : vector<128x128xf32>
    %47 = tpu.matmul %46, %1, %cst_22 {dimension_numbers = #tpu.dot_dimension_numbers<[1], [0], [0], [1], [0, 0, 1, 1], [], []>} : vector<128x128xbf16>, vector<128x128xbf16>, vector<128x128xf32> -> vector<128x128xf32>
    %48 = vector.broadcast %2 : vector<1x128xf32> to vector<128x128xf32>
    %49 = arith.addf %47, %48 : vector<128x128xf32>
    %50 = arith.mulf %49, %49 : vector<128x128xf32>
    %cst_23 = arith.constant dense<0.000000e+00> : vector<128xf32>
    %51 = vector.multi_reduction <add>, %50, %cst_23 [1] : vector<128x128xf32> to vector<128xf32>
    %52 = vector.shape_cast %51 : vector<128xf32> to vector<128x1xf32>
    %cst_24 = arith.constant 5.000000e-01 : f32
    %53 = vector.broadcast %cst_24 : f32 to vector<128x1xf32>
    %54 = arith.mulf %53, %52 : vector<128x1xf32>
    %55 = arith.mulf %45, %45 : vector<128x128xf32>
    %cst_25 = arith.constant 1.000000e+00 : f32
    %56 = vector.broadcast %cst_25 : f32 to vector<128x128xf32>
    %57 = arith.subf %56, %55 : vector<128x128xf32>
    %58 = vector.broadcast %3 : vector<1x128xf32> to vector<128x128xf32>
    %59 = arith.mulf %57, %58 : vector<128x128xf32>
    %cst_26 = arith.constant dense<0.000000e+00> : vector<128xf32>
    %60 = vector.multi_reduction <add>, %59, %cst_26 [1] : vector<128x128xf32> to vector<128xf32>
    %61 = vector.shape_cast %60 : vector<128xf32> to vector<128x1xf32>
    %62 = vector.broadcast %39 : f32 to vector<128x128xf32>
    %63 = arith.mulf %62, %49 : vector<128x128xf32>
    %64 = arith.addf %32, %63 : vector<128x128xf32>
    %65 = vector.broadcast %39 : f32 to vector<128x1xf32>
    %66 = arith.mulf %65, %54 : vector<128x1xf32>
    %67 = arith.addf %35, %66 : vector<128x1xf32>
    %68 = vector.broadcast %39 : f32 to vector<128x1xf32>
    %69 = arith.mulf %68, %61 : vector<128x1xf32>
    %70 = arith.addf %38, %69 : vector<128x1xf32>
    %c2 = arith.constant 2 : index
    %71 = memref.load %arg1[%c2] : memref<7xf32, #tpu.memory_space<smem>>
    %c2_27 = arith.constant 2 : index
    %c0_28 = arith.constant 0 : index
    %72 = vector.load %arg2[%c2_27, %c0_28] : memref<7x128xf32, #tpu.memory_space<vmem>>, vector<1x128xf32>
    %73 = arith.truncf %64 : vector<128x128xf32> to vector<128x128xbf16>
    %cst_29 = arith.constant dense<0.000000e+00> : vector<128x128xf32>
    %74 = tpu.matmul %73, %0, %cst_29 {dimension_numbers = #tpu.dot_dimension_numbers<[1], [0], [0], [1], [0, 0, 1, 1], [], []>} : vector<128x128xbf16>, vector<128x128xbf16>, vector<128x128xf32> -> vector<128x128xf32>
    %75 = vector.broadcast %72 : vector<1x128xf32> to vector<128x128xf32>
    %76 = arith.addf %74, %75 : vector<128x128xf32>
    %77 = math.tanh %76 : vector<128x128xf32>
    %78 = arith.truncf %77 : vector<128x128xf32> to vector<128x128xbf16>
    %cst_30 = arith.constant dense<0.000000e+00> : vector<128x128xf32>
    %79 = tpu.matmul %78, %1, %cst_30 {dimension_numbers = #tpu.dot_dimension_numbers<[1], [0], [0], [1], [0, 0, 1, 1], [], []>} : vector<128x128xbf16>, vector<128x128xbf16>, vector<128x128xf32> -> vector<128x128xf32>
    %80 = vector.broadcast %2 : vector<1x128xf32> to vector<128x128xf32>
    %81 = arith.addf %79, %80 : vector<128x128xf32>
    %82 = arith.mulf %81, %81 : vector<128x128xf32>
    %cst_31 = arith.constant dense<0.000000e+00> : vector<128xf32>
    %83 = vector.multi_reduction <add>, %82, %cst_31 [1] : vector<128x128xf32> to vector<128xf32>
    %84 = vector.shape_cast %83 : vector<128xf32> to vector<128x1xf32>
    %cst_32 = arith.constant 5.000000e-01 : f32
    %85 = vector.broadcast %cst_32 : f32 to vector<128x1xf32>
    %86 = arith.mulf %85, %84 : vector<128x1xf32>
    %87 = arith.mulf %77, %77 : vector<128x128xf32>
    %cst_33 = arith.constant 1.000000e+00 : f32
    %88 = vector.broadcast %cst_33 : f32 to vector<128x128xf32>
    %89 = arith.subf %88, %87 : vector<128x128xf32>
    %90 = vector.broadcast %3 : vector<1x128xf32> to vector<128x128xf32>
    %91 = arith.mulf %89, %90 : vector<128x128xf32>
    %cst_34 = arith.constant dense<0.000000e+00> : vector<128xf32>
    %92 = vector.multi_reduction <add>, %91, %cst_34 [1] : vector<128x128xf32> to vector<128xf32>
    %93 = vector.shape_cast %92 : vector<128xf32> to vector<128x1xf32>
    %94 = vector.broadcast %71 : f32 to vector<128x128xf32>
    %95 = arith.mulf %94, %81 : vector<128x128xf32>
    %96 = arith.addf %64, %95 : vector<128x128xf32>
    %97 = vector.broadcast %71 : f32 to vector<128x1xf32>
    %98 = arith.mulf %97, %86 : vector<128x1xf32>
    %99 = arith.addf %67, %98 : vector<128x1xf32>
    %100 = vector.broadcast %71 : f32 to vector<128x1xf32>
    %101 = arith.mulf %100, %93 : vector<128x1xf32>
    %102 = arith.addf %70, %101 : vector<128x1xf32>
    %c3 = arith.constant 3 : index
    %103 = memref.load %arg1[%c3] : memref<7xf32, #tpu.memory_space<smem>>
    %c3_35 = arith.constant 3 : index
    %c0_36 = arith.constant 0 : index
    %104 = vector.load %arg2[%c3_35, %c0_36] : memref<7x128xf32, #tpu.memory_space<vmem>>, vector<1x128xf32>
    %105 = arith.truncf %96 : vector<128x128xf32> to vector<128x128xbf16>
    %cst_37 = arith.constant dense<0.000000e+00> : vector<128x128xf32>
    %106 = tpu.matmul %105, %0, %cst_37 {dimension_numbers = #tpu.dot_dimension_numbers<[1], [0], [0], [1], [0, 0, 1, 1], [], []>} : vector<128x128xbf16>, vector<128x128xbf16>, vector<128x128xf32> -> vector<128x128xf32>
    %107 = vector.broadcast %104 : vector<1x128xf32> to vector<128x128xf32>
    %108 = arith.addf %106, %107 : vector<128x128xf32>
    %109 = math.tanh %108 : vector<128x128xf32>
    %110 = arith.truncf %109 : vector<128x128xf32> to vector<128x128xbf16>
    %cst_38 = arith.constant dense<0.000000e+00> : vector<128x128xf32>
    %111 = tpu.matmul %110, %1, %cst_38 {dimension_numbers = #tpu.dot_dimension_numbers<[1], [0], [0], [1], [0, 0, 1, 1], [], []>} : vector<128x128xbf16>, vector<128x128xbf16>, vector<128x128xf32> -> vector<128x128xf32>
    %112 = vector.broadcast %2 : vector<1x128xf32> to vector<128x128xf32>
    %113 = arith.addf %111, %112 : vector<128x128xf32>
    %114 = arith.mulf %113, %113 : vector<128x128xf32>
    %cst_39 = arith.constant dense<0.000000e+00> : vector<128xf32>
    %115 = vector.multi_reduction <add>, %114, %cst_39 [1] : vector<128x128xf32> to vector<128xf32>
    %116 = vector.shape_cast %115 : vector<128xf32> to vector<128x1xf32>
    %cst_40 = arith.constant 5.000000e-01 : f32
    %117 = vector.broadcast %cst_40 : f32 to vector<128x1xf32>
    %118 = arith.mulf %117, %116 : vector<128x1xf32>
    %119 = arith.mulf %109, %109 : vector<128x128xf32>
    %cst_41 = arith.constant 1.000000e+00 : f32
    %120 = vector.broadcast %cst_41 : f32 to vector<128x128xf32>
    %121 = arith.subf %120, %119 : vector<128x128xf32>
    %122 = vector.broadcast %3 : vector<1x128xf32> to vector<128x128xf32>
    %123 = arith.mulf %121, %122 : vector<128x128xf32>
    %cst_42 = arith.constant dense<0.000000e+00> : vector<128xf32>
    %124 = vector.multi_reduction <add>, %123, %cst_42 [1] : vector<128x128xf32> to vector<128xf32>
    %125 = vector.shape_cast %124 : vector<128xf32> to vector<128x1xf32>
    %126 = vector.broadcast %103 : f32 to vector<128x128xf32>
    %127 = arith.mulf %126, %113 : vector<128x128xf32>
    %128 = arith.addf %96, %127 : vector<128x128xf32>
    %129 = vector.broadcast %103 : f32 to vector<128x1xf32>
    %130 = arith.mulf %129, %118 : vector<128x1xf32>
    %131 = arith.addf %99, %130 : vector<128x1xf32>
    %132 = vector.broadcast %103 : f32 to vector<128x1xf32>
    %133 = arith.mulf %132, %125 : vector<128x1xf32>
    %134 = arith.addf %102, %133 : vector<128x1xf32>
    %c4 = arith.constant 4 : index
    %135 = memref.load %arg1[%c4] : memref<7xf32, #tpu.memory_space<smem>>
    %c4_43 = arith.constant 4 : index
    %c0_44 = arith.constant 0 : index
    %136 = vector.load %arg2[%c4_43, %c0_44] : memref<7x128xf32, #tpu.memory_space<vmem>>, vector<1x128xf32>
    %137 = arith.truncf %128 : vector<128x128xf32> to vector<128x128xbf16>
    %cst_45 = arith.constant dense<0.000000e+00> : vector<128x128xf32>
    %138 = tpu.matmul %137, %0, %cst_45 {dimension_numbers = #tpu.dot_dimension_numbers<[1], [0], [0], [1], [0, 0, 1, 1], [], []>} : vector<128x128xbf16>, vector<128x128xbf16>, vector<128x128xf32> -> vector<128x128xf32>
    %139 = vector.broadcast %136 : vector<1x128xf32> to vector<128x128xf32>
    %140 = arith.addf %138, %139 : vector<128x128xf32>
    %141 = math.tanh %140 : vector<128x128xf32>
    %142 = arith.truncf %141 : vector<128x128xf32> to vector<128x128xbf16>
    %cst_46 = arith.constant dense<0.000000e+00> : vector<128x128xf32>
    %143 = tpu.matmul %142, %1, %cst_46 {dimension_numbers = #tpu.dot_dimension_numbers<[1], [0], [0], [1], [0, 0, 1, 1], [], []>} : vector<128x128xbf16>, vector<128x128xbf16>, vector<128x128xf32> -> vector<128x128xf32>
    %144 = vector.broadcast %2 : vector<1x128xf32> to vector<128x128xf32>
    %145 = arith.addf %143, %144 : vector<128x128xf32>
    %146 = arith.mulf %145, %145 : vector<128x128xf32>
    %cst_47 = arith.constant dense<0.000000e+00> : vector<128xf32>
    %147 = vector.multi_reduction <add>, %146, %cst_47 [1] : vector<128x128xf32> to vector<128xf32>
    %148 = vector.shape_cast %147 : vector<128xf32> to vector<128x1xf32>
    %cst_48 = arith.constant 5.000000e-01 : f32
    %149 = vector.broadcast %cst_48 : f32 to vector<128x1xf32>
    %150 = arith.mulf %149, %148 : vector<128x1xf32>
    %151 = arith.mulf %141, %141 : vector<128x128xf32>
    %cst_49 = arith.constant 1.000000e+00 : f32
    %152 = vector.broadcast %cst_49 : f32 to vector<128x128xf32>
    %153 = arith.subf %152, %151 : vector<128x128xf32>
    %154 = vector.broadcast %3 : vector<1x128xf32> to vector<128x128xf32>
    %155 = arith.mulf %153, %154 : vector<128x128xf32>
    %cst_50 = arith.constant dense<0.000000e+00> : vector<128xf32>
    %156 = vector.multi_reduction <add>, %155, %cst_50 [1] : vector<128x128xf32> to vector<128xf32>
    %157 = vector.shape_cast %156 : vector<128xf32> to vector<128x1xf32>
    %158 = vector.broadcast %135 : f32 to vector<128x128xf32>
    %159 = arith.mulf %158, %145 : vector<128x128xf32>
    %160 = arith.addf %128, %159 : vector<128x128xf32>
    %161 = vector.broadcast %135 : f32 to vector<128x1xf32>
    %162 = arith.mulf %161, %150 : vector<128x1xf32>
    %163 = arith.addf %131, %162 : vector<128x1xf32>
    %164 = vector.broadcast %135 : f32 to vector<128x1xf32>
    %165 = arith.mulf %164, %157 : vector<128x1xf32>
    %166 = arith.addf %134, %165 : vector<128x1xf32>
    %c5 = arith.constant 5 : index
    %167 = memref.load %arg1[%c5] : memref<7xf32, #tpu.memory_space<smem>>
    %c5_51 = arith.constant 5 : index
    %c0_52 = arith.constant 0 : index
    %168 = vector.load %arg2[%c5_51, %c0_52] : memref<7x128xf32, #tpu.memory_space<vmem>>, vector<1x128xf32>
    %169 = arith.truncf %160 : vector<128x128xf32> to vector<128x128xbf16>
    %cst_53 = arith.constant dense<0.000000e+00> : vector<128x128xf32>
    %170 = tpu.matmul %169, %0, %cst_53 {dimension_numbers = #tpu.dot_dimension_numbers<[1], [0], [0], [1], [0, 0, 1, 1], [], []>} : vector<128x128xbf16>, vector<128x128xbf16>, vector<128x128xf32> -> vector<128x128xf32>
    %171 = vector.broadcast %168 : vector<1x128xf32> to vector<128x128xf32>
    %172 = arith.addf %170, %171 : vector<128x128xf32>
    %173 = math.tanh %172 : vector<128x128xf32>
    %174 = arith.truncf %173 : vector<128x128xf32> to vector<128x128xbf16>
    %cst_54 = arith.constant dense<0.000000e+00> : vector<128x128xf32>
    %175 = tpu.matmul %174, %1, %cst_54 {dimension_numbers = #tpu.dot_dimension_numbers<[1], [0], [0], [1], [0, 0, 1, 1], [], []>} : vector<128x128xbf16>, vector<128x128xbf16>, vector<128x128xf32> -> vector<128x128xf32>
    %176 = vector.broadcast %2 : vector<1x128xf32> to vector<128x128xf32>
    %177 = arith.addf %175, %176 : vector<128x128xf32>
    %178 = arith.mulf %177, %177 : vector<128x128xf32>
    %cst_55 = arith.constant dense<0.000000e+00> : vector<128xf32>
    %179 = vector.multi_reduction <add>, %178, %cst_55 [1] : vector<128x128xf32> to vector<128xf32>
    %180 = vector.shape_cast %179 : vector<128xf32> to vector<128x1xf32>
    %cst_56 = arith.constant 5.000000e-01 : f32
    %181 = vector.broadcast %cst_56 : f32 to vector<128x1xf32>
    %182 = arith.mulf %181, %180 : vector<128x1xf32>
    %183 = arith.mulf %173, %173 : vector<128x128xf32>
    %cst_57 = arith.constant 1.000000e+00 : f32
    %184 = vector.broadcast %cst_57 : f32 to vector<128x128xf32>
    %185 = arith.subf %184, %183 : vector<128x128xf32>
    %186 = vector.broadcast %3 : vector<1x128xf32> to vector<128x128xf32>
    %187 = arith.mulf %185, %186 : vector<128x128xf32>
    %cst_58 = arith.constant dense<0.000000e+00> : vector<128xf32>
    %188 = vector.multi_reduction <add>, %187, %cst_58 [1] : vector<128x128xf32> to vector<128xf32>
    %189 = vector.shape_cast %188 : vector<128xf32> to vector<128x1xf32>
    %190 = vector.broadcast %167 : f32 to vector<128x128xf32>
    %191 = arith.mulf %190, %177 : vector<128x128xf32>
    %192 = arith.addf %160, %191 : vector<128x128xf32>
    %193 = vector.broadcast %167 : f32 to vector<128x1xf32>
    %194 = arith.mulf %193, %182 : vector<128x1xf32>
    %195 = arith.addf %163, %194 : vector<128x1xf32>
    %196 = vector.broadcast %167 : f32 to vector<128x1xf32>
    %197 = arith.mulf %196, %189 : vector<128x1xf32>
    %198 = arith.addf %166, %197 : vector<128x1xf32>
    %c6 = arith.constant 6 : index
    %199 = memref.load %arg1[%c6] : memref<7xf32, #tpu.memory_space<smem>>
    %c6_59 = arith.constant 6 : index
    %c0_60 = arith.constant 0 : index
    %200 = vector.load %arg2[%c6_59, %c0_60] : memref<7x128xf32, #tpu.memory_space<vmem>>, vector<1x128xf32>
    %201 = arith.truncf %192 : vector<128x128xf32> to vector<128x128xbf16>
    %cst_61 = arith.constant dense<0.000000e+00> : vector<128x128xf32>
    %202 = tpu.matmul %201, %0, %cst_61 {dimension_numbers = #tpu.dot_dimension_numbers<[1], [0], [0], [1], [0, 0, 1, 1], [], []>} : vector<128x128xbf16>, vector<128x128xbf16>, vector<128x128xf32> -> vector<128x128xf32>
    %203 = vector.broadcast %200 : vector<1x128xf32> to vector<128x128xf32>
    %204 = arith.addf %202, %203 : vector<128x128xf32>
    %205 = math.tanh %204 : vector<128x128xf32>
    %206 = arith.truncf %205 : vector<128x128xf32> to vector<128x128xbf16>
    %cst_62 = arith.constant dense<0.000000e+00> : vector<128x128xf32>
    %207 = tpu.matmul %206, %1, %cst_62 {dimension_numbers = #tpu.dot_dimension_numbers<[1], [0], [0], [1], [0, 0, 1, 1], [], []>} : vector<128x128xbf16>, vector<128x128xbf16>, vector<128x128xf32> -> vector<128x128xf32>
    %208 = vector.broadcast %2 : vector<1x128xf32> to vector<128x128xf32>
    %209 = arith.addf %207, %208 : vector<128x128xf32>
    %210 = arith.mulf %209, %209 : vector<128x128xf32>
    %cst_63 = arith.constant dense<0.000000e+00> : vector<128xf32>
    %211 = vector.multi_reduction <add>, %210, %cst_63 [1] : vector<128x128xf32> to vector<128xf32>
    %212 = vector.shape_cast %211 : vector<128xf32> to vector<128x1xf32>
    %cst_64 = arith.constant 5.000000e-01 : f32
    %213 = vector.broadcast %cst_64 : f32 to vector<128x1xf32>
    %214 = arith.mulf %213, %212 : vector<128x1xf32>
    %215 = arith.mulf %205, %205 : vector<128x128xf32>
    %cst_65 = arith.constant 1.000000e+00 : f32
    %216 = vector.broadcast %cst_65 : f32 to vector<128x128xf32>
    %217 = arith.subf %216, %215 : vector<128x128xf32>
    %218 = vector.broadcast %3 : vector<1x128xf32> to vector<128x128xf32>
    %219 = arith.mulf %217, %218 : vector<128x128xf32>
    %cst_66 = arith.constant dense<0.000000e+00> : vector<128xf32>
    %220 = vector.multi_reduction <add>, %219, %cst_66 [1] : vector<128x128xf32> to vector<128xf32>
    %221 = vector.shape_cast %220 : vector<128xf32> to vector<128x1xf32>
    %222 = vector.broadcast %199 : f32 to vector<128x128xf32>
    %223 = arith.mulf %222, %209 : vector<128x128xf32>
    %224 = arith.addf %192, %223 : vector<128x128xf32>
    %225 = vector.broadcast %199 : f32 to vector<128x1xf32>
    %226 = arith.mulf %225, %214 : vector<128x1xf32>
    %227 = arith.addf %195, %226 : vector<128x1xf32>
    %228 = vector.broadcast %199 : f32 to vector<128x1xf32>
    %229 = arith.mulf %228, %221 : vector<128x1xf32>
    %230 = arith.addf %198, %229 : vector<128x1xf32>
    %c0_67 = arith.constant 0 : index
    %c0_68 = arith.constant 0 : index
    %231 = vector.load %arg8[%c0_67, %c0_68] : memref<128x128xf32, #tpu.memory_space<vmem>>, vector<128x128xf32>
    tpu.vector_store %arg8[%c0_67, %c0_68], %224 {strides = array<i32>} : memref<128x128xf32, #tpu.memory_space<vmem>>, vector<128x128xf32>,
    %cst_69 = arith.constant 0.000000e+00 : f32
    %232 = vector.broadcast %cst_69 : f32 to vector<128x128xf32>
    %c0_70 = arith.constant 0 : index
    %c0_71 = arith.constant 0 : index
    %233 = vector.load %arg9[%c0_70, %c0_71] : memref<128x128xf32, #tpu.memory_space<vmem>>, vector<128x128xf32>
    tpu.vector_store %arg9[%c0_70, %c0_71], %232 {strides = array<i32>} : memref<128x128xf32, #tpu.memory_space<vmem>>, vector<128x128xf32>,
    %c0_72 = arith.constant 0 : index
    %c0_73 = arith.constant 0 : index
    %234 = vector.load %arg9[%c0_72, %c0_73] : memref<128x128xf32, #tpu.memory_space<vmem>>, vector<128x1xf32>
    tpu.vector_store %arg9[%c0_72, %c0_73], %227 {strides = array<i32>} : memref<128x128xf32, #tpu.memory_space<vmem>>, vector<128x1xf32>,
    %c0_74 = arith.constant 0 : index
    %c1_75 = arith.constant 1 : index
    %235 = vector.load %arg9[%c0_74, %c1_75] : memref<128x128xf32, #tpu.memory_space<vmem>>, vector<128x1xf32>
    tpu.vector_store %arg9[%c0_74, %c1_75], %230 {strides = array<i32>} : memref<128x128xf32, #tpu.memory_space<vmem>>, vector<128x1xf32>,
    return
  }
  func.func @transform_0(%arg0: i32) -> i32 {
    %c0_i32 = arith.constant 0 : i32
    %c0_i32_0 = arith.constant 0 : i32
    return %c0_i32 : i32
  }
  func.func @transform_1(%arg0: i32) -> (i32, i32) {
    %c0_i32 = arith.constant 0 : i32
    %c0_i32_0 = arith.constant 0 : i32
    %c0_i32_1 = arith.constant 0 : i32
    return %c0_i32, %c0_i32_0 : i32, i32
  }
  func.func @transform_2(%arg0: i32) -> (i32, i32) {
    %c0_i32 = arith.constant 0 : i32
    %c0_i32_0 = arith.constant 0 : i32
    return %arg0, %c0_i32 : i32, i32
  }
  func.func @transform_3(%arg0: i32) -> (i32, i32) {
    %c0_i32 = arith.constant 0 : i32
    %c0_i32_0 = arith.constant 0 : i32
    %c0_i32_1 = arith.constant 0 : i32
    return %c0_i32, %c0_i32_0 : i32, i32
  }
  func.func @transform_4(%arg0: i32) -> (i32, i32) {
    %c0_i32 = arith.constant 0 : i32
    %c0_i32_0 = arith.constant 0 : i32
    %c0_i32_1 = arith.constant 0 : i32
    return %c0_i32, %c0_i32_0 : i32, i32
  }
  func.func @transform_5(%arg0: i32) -> (i32, i32) {
    %c0_i32 = arith.constant 0 : i32
    %c0_i32_0 = arith.constant 0 : i32
    %c0_i32_1 = arith.constant 0 : i32
    return %c0_i32, %c0_i32_0 : i32, i32
  }
  func.func @transform_6(%arg0: i32) -> (i32, i32) {
    %c0_i32 = arith.constant 0 : i32
    %c0_i32_0 = arith.constant 0 : i32
    %c0_i32_1 = arith.constant 0 : i32
    return %c0_i32, %c0_i32_0 : i32, i32
  }
  func.func @transform_7(%arg0: i32) -> (i32, i32) {
    %c0_i32 = arith.constant 0 : i32
    %c0_i32_0 = arith.constant 0 : i32
    return %arg0, %c0_i32 : i32, i32
  }
  func.func @transform_8(%arg0: i32) -> (i32, i32) {
    %c0_i32 = arith.constant 0 : i32
    %c0_i32_0 = arith.constant 0 : i32
    return %arg0, %c0_i32 : i32, i32
  }
}

</mosaic_0001>

<bundles_post_ra>
// kernel: tpu_custom_call.1
= control target key start
LH: loop header
LB: loop body
LE: loop exit
PB: predicated region body
PF: predicated region fallthrough
CT: control target
= control target key end

     0   :  { %14 = vsyncpa [#allocation5], 0  ;;  %s5619_s0 = inlined_call_operand.hbm [shape: f32[7], index: 0, kind: input, shape index: {}]   ;;  %s5620_s1 = inlined_call_operand.hbm [shape: f32[7,128], index: 1, kind: input, shape index: {}]   ;;  %s5621_s2 = inlined_call_operand.hbm [shape: f32[128,128], index: 2, kind: input, shape index: {}]   ;;  %s5622_s3 = inlined_call_operand.hbm [shape: bf16[128,128], index: 3, kind: input, shape index: {}]   ;;  %s5623_s4 = inlined_call_operand.hbm [shape: bf16[128,128], index: 4, kind: input, shape index: {}]   ;;  %s5624_s5 = inlined_call_operand.vmem [shape: f32[1,128], index: 5, kind: input, shape index: {}]   ;;  %s5625_s6 = inlined_call_operand.vmem [shape: f32[1,128], index: 6, kind: input, shape index: {}]   ;;  %s5626_s7 = inlined_call_operand.hbm [shape: f32[128,128], index: 7, kind: output, shape index: {0}]   ;;  %s5627_s8 = inlined_call_operand.hbm [shape: f32[128,128], index: 8, kind: output, shape index: {1}]  }
   0x1   :  { %15 = vsyncpa [#allocation3], 0 }
   0x2   :  { %16 = vsyncpa [#allocation8], 0 }
   0x3   :  { %17 = vsyncpa [#allocation11], 0 }
   0x4   :  { %18 = vsyncpa [#allocation4], 0  ;;  %s44_s29 = sshll.u32 %s5621_s2, 4  ;;  %s45_s29 = int_to_ptr.hbm [resolvable:$true] %s44_s29 }
   0x5   :  { %19 = vsyncpa [#allocation14], 0  ;;  %s3518_s30 = smov [#allocation7]   ;;  %s25_s12 = sshll.u32 %s5619_s0, 4  ;;  %s26_s12 = int_to_ptr.hbm [resolvable:$true] %s25_s12 }
   0x6   :  { %s46_s9 = sshll.u32 %s3518_s30, 4  ;;  %s3519_s13 = smov 128   ;;  %s47_s9 = int_to_ptr.vmem [resolvable:$true] %s46_s9 }
   0x7   :  { %s3520_s14 = smov 8   ;;  %s3521_s15 = smov [#allocation2]  }
   0x8   :  { %52 = dma.hbm_to_vmem [thread:$0]  %s45_s29, 2048, %s47_s9, [#allocation8], %s3519_s13, %s3519_s13, %s3520_s14  }
   0x9   :  { %28 = dma.hbm_to_smem %s26_s12, 16, %s3521_s15, [#allocation5]  }
   0xa   :  { %s34_s17 = sshll.u32 %s5620_s1, 4  ;;  %s3522_s18 = smov [#allocation6]   ;;  %s35_s17 = int_to_ptr.hbm [resolvable:$true] %s34_s17 }
   0xb   :  { %s36_s19 = sshll.u32 %s3522_s18, 4  ;;  %s57_s0 = sshll.u32 %s5622_s3, 4  ;;  %s37_s19 = int_to_ptr.vmem [resolvable:$true] %s36_s19  ;;  %s58_s0 = int_to_ptr.hbm [resolvable:$true] %s57_s0 }
   0xc   :  { %39 = dma.hbm_to_vmem [thread:$0]  %s35_s17, 128, %s37_s19, [#allocation3]  }
   0xd   :  { %s3523_s22 = smov [#allocation9]   ;;  %s3524_s24 = smov 64  }
   0xe   :  { %s59_s23 = sshll.u32 %s3523_s22, 4  ;;  %s3525_s25 = smov 4   ;;  %s60_s23 = int_to_ptr.vmem [resolvable:$true] %s59_s23 }
   0xf   :  { %65 = dma.hbm_to_vmem [thread:$0]  %s58_s0, 1024, %s60_s23, [#allocation8], %s3524_s24, %s3524_s24, %s3525_s25  }
  0x10   :  { %s70_s1 = sshll.u32 %s5623_s4, 4  ;;  %s3526_s28 = smov [#allocation10]   ;;  %s71_s1 = int_to_ptr.hbm [resolvable:$true] %s70_s1 }
  0x11   :  { %s72_s29 = sshll.u32 %s3526_s28, 4  ;;  %s73_s29 = int_to_ptr.vmem [resolvable:$true] %s72_s29 }
  0x12   :  { %78 = dma.hbm_to_vmem [thread:$0]  %s71_s1, 1024, %s73_s29, [#allocation11], %s3524_s24, %s3524_s24, %s3525_s25  }
  0x13   :  { %3506 = dma.done.wait [#allocation5], 16  }
  0x14   :  { %3507 = vsyncadd [#allocation5], 4294967280 }
  0x15   :  { %3508 = dma.done.wait [#allocation3], 128  }
  0x16   :  { %3509 = vsyncadd [#allocation3], 4294967168 }
  0x17   :  { %3510 = dma.done.wait [#allocation8], 3072  }
  0x18   :  { %3511 = vsyncadd [#allocation8], 4294964224 }
  0x19   :  { %3512 = dma.done.wait [#allocation11], 1024  }
  0x1a   :  { %3513 = vsyncadd [#allocation11], 4294966272 }
  0x1b   :  { %103 = sfence }
  0x1c   :  { %v3593_v0 = vld [vmem:[#allocation9 + $0x38] sm:$0xff]  ;;  %v3597_v1 = vld [vmem:[#allocation9 + $0x30] sm:$0xff]  ;;  %v3599_v2 = vld [vmem:[#allocation9 + $0x28] sm:$0xff]  ;;  %s154_s10 = sld [smem:[#allocation2]]  ;;  %vm2906_vm0 = vcmask 7168   ;;  %s3528_s28 = smov [#allocation12]  }
  0x1d   :  { %213 = vmatpush.bf16.msra.mxu0 %v3593_v0  ;;  %3066 = vmatpush.bf16.msra.mxu2 %v3593_v0  ;;  %v3605_v3 = vld [vmem:[#allocation9 + $0x20] sm:$0xff]  ;;  %v3609_v4 = vld [vmem:[#allocation9 + $0x18] sm:$0xff]  ;;  %v3613_v5 = vld [vmem:[#allocation9 + $0x10] sm:$0xff]  ;;  %s3044_s11 = sld [smem:[#allocation2 + $0x1]]  ;;  %s2944_s29 = sshll.u32 %s3528_s28, 4  ;;  %vm2923_vm1 = vcmask 15368   ;;  %s2945_s29 = int_to_ptr.vmem [resolvable:$true] %s2944_s29 }
  0x1e   :  { %v3617_v6 = vld [vmem:[#allocation9 + $0x8] sm:$0xff]  ;;  %v3619_v7 = vld [vmem:[#allocation9] sm:$0xff]  ;;  %v3643_v14 = vld [vmem:[#allocation7 + $0x10] sm:$0xff]  ;;  %s3045_s16 = sld [smem:[#allocation2 + $0x2]]  ;;  %s2946_s30 = sshll.u32 %s5626_s7, 4  ;;  %s2947_s30 = int_to_ptr.hbm [resolvable:$true] %s2946_s30 }
  0x1f   :  { %v3621_v8 = vld [vmem:[#allocation7] sm:$0xff]  ;;  %v3625_v9 = vld [vmem:[#allocation7 + $0x8] sm:$0xff]  ;;  %v3645_v15 = vld [vmem:[#allocation7 + $0x18] sm:$0xff]  ;;  %s3046_s18 = sld [smem:[#allocation2 + $0x3]]  ;;  %s3529_s7 = smov [#allocation13]  }
  0x20   :  { %v3627_v10 = vld [vmem:[#allocation7 + $0x40] sm:$0xff]  ;;  %v3629_v11 = vld [vmem:[#allocation7 + $0x48] sm:$0xff]  ;;  %v156_v12 = vpack.c.bf16 %v3625_v9, %v3621_v8  ;;  %v3647_v16 = vld [vmem:[#allocation7 + $0x50] sm:$0xff]  ;;  %v157_v18 = vpack.c.bf16 %v3645_v15, %v3643_v14  ;;  %s3047_s21 = sld [smem:[#allocation2 + $0x4]]  ;;  %s2957_s9 = sshll.u32 %s3529_s7, 4  ;;  %s2958_s9 = int_to_ptr.vmem [resolvable:$true] %s2957_s9 }
  0x21   :  { %214 = vmatpush.bf16.msra.mxu0 %v3597_v1  ;;  %3067 = vmatpush.bf16.msra.mxu2 %v3597_v1  ;;  %v160_v13 = vpack.c.bf16 %v3629_v11, %v3627_v10  ;;  %v3649_v17 = vld [vmem:[#allocation7 + $0x58] sm:$0xff]  ;;  %v3662_v21 = vld [vmem:[#allocation10 + $0x30] sm:$0xff]  ;;  %v3668_v22 = vld [vmem:[#allocation10 + $0x28] sm:$0xff]  ;;  %s3048_s25 = sld [smem:[#allocation2 + $0x5]]  ;;  %s2959_s12 = sshll.u32 %s5627_s8, 4  ;;  %s2960_s12 = int_to_ptr.hbm [resolvable:$true] %s2959_s12 }
  0x22   :  { %v161_v19 = vpack.c.bf16 %v3649_v17, %v3647_v16  ;;  %v3659_v20 = vld [vmem:[#allocation10 + $0x38] sm:$0xff]  ;;  %v3673_v23 = vld [vmem:[#allocation7 + $0x20] sm:$0xff]  ;;  %v3675_v24 = vld [vmem:[#allocation7 + $0x28] sm:$0xff] }
  0x23   :  { %337 = vmatpush.bf16.msra.mxu1 %v3659_v20  ;;  %3074 = vmatpush.bf16.msra.mxu3 %v3659_v20  ;;  %v3677_v25 = vld [vmem:[#allocation7 + $0x60] sm:$0xff]  ;;  %v3679_v26 = vld [vmem:[#allocation7 + $0x68] sm:$0xff]  ;;  %v158_v27 = vpack.c.bf16 %v3675_v24, %v3673_v23  ;;  %v3695_v29 = vld [vmem:[#allocation7 + $0x30] sm:$0xff] }
  0x24   :  { %v162_v28 = vpack.c.bf16 %v3679_v26, %v3677_v25  ;;  %v3697_v30 = vld [vmem:[#allocation7 + $0x38] sm:$0xff]  ;;  %v3699_v31 = vld [vmem:[#allocation7 + $0x70] sm:$0xff]  ;;  %v3717_v35 = vld [vmem:[#allocation10 + $0x20] sm:$0xff] }
  0x25   :  { %215 = vmatpush.bf16.msra.mxu0 %v3599_v2  ;;  %3068 = vmatpush.bf16.msra.mxu2 %v3599_v2  ;;  %v3701_v32 = vld [vmem:[#allocation7 + $0x78] sm:$0xff]  ;;  %v159_v33 = vpack.c.bf16 %v3697_v30, %v3695_v29  ;;  %v3725_v37 = vld [vmem:[#allocation10 + $0x10] sm:$0xff]  ;;  %v3729_v38 = vld [vmem:[#allocation10 + $0x8] sm:$0xff] }
  0x26   :  { %v163_v34 = vpack.c.bf16 %v3701_v32, %v3699_v31  ;;  %v3721_v36 = vld [vmem:[#allocation10 + $0x18] sm:$0xff]  ;;  %v3733_v39 = vld [vmem:[#allocation10] sm:$0xff] }
  0x27   :  { %338 = vmatpush.bf16.msra.mxu1 %v3662_v21  ;;  %3075 = vmatpush.bf16.msra.mxu3 %v3662_v21  ;;  %v3743_v40 = vld [vmem:[#allocation6] ss:$0 sm:$0xff] }
  0x28   :  { %v3757_v49 = vld [vmem:[%s5625_s6] ss:$0 sm:$0xff] }
  0x29   :  { %216 = vmatpush.bf16.msra.mxu0 %v3605_v3  ;;  %3069 = vmatpush.bf16.msra.mxu2 %v3605_v3 }
  0x2b   :  { %339 = vmatpush.bf16.msra.mxu1 %v3668_v22  ;;  %3076 = vmatpush.bf16.msra.mxu3 %v3668_v22 }
  0x2d   :  { %217 = vmatpush.bf16.msra.mxu0 %v3609_v4  ;;  %3070 = vmatpush.bf16.msra.mxu2 %v3609_v4 }
  0x2f   :  { %340 = vmatpush.bf16.msra.mxu1 %v3717_v35  ;;  %3077 = vmatpush.bf16.msra.mxu3 %v3717_v35 }
  0x31   :  { %218 = vmatpush.bf16.msra.mxu0 %v3613_v5  ;;  %3071 = vmatpush.bf16.msra.mxu2 %v3613_v5 }
  0x33   :  { %341 = vmatpush.bf16.msra.mxu1 %v3721_v36  ;;  %3078 = vmatpush.bf16.msra.mxu3 %v3721_v36 }
  0x35   :  { %219 = vmatpush.bf16.msra.mxu0 %v3617_v6  ;;  %3072 = vmatpush.bf16.msra.mxu2 %v3617_v6 }
  0x37   :  { %342 = vmatpush.bf16.msra.mxu1 %v3725_v37  ;;  %3079 = vmatpush.bf16.msra.mxu3 %v3725_v37 }
  0x39   :  { %220 = vmatpush.bf16.msra.mxu0 %v3619_v7  ;;  %3073 = vmatpush.bf16.msra.mxu2 %v3619_v7 }
  0x3b   :  { %343 = vmatpush.bf16.msra.mxu1 %v3729_v38  ;;  %3080 = vmatpush.bf16.msra.mxu3 %v3729_v38 }
  0x3c   :  { %221 = vmatmul.bf16.vlgmr.msra.gmra.mxu0 %v156_v12  ;;  %241 = vmatmul.bf16.vlgmr.msra.gmra.mxu2 %v160_v13 }
  0x3d   :  { %641 = vmatpush.bf16.msrb.mxu2 %v3593_v0  ;;  %1015 = vmatpush.bf16.msrb.mxu0 %v3593_v0 }
  0x3f   :  { %344 = vmatpush.bf16.msra.mxu1 %v3733_v39  ;;  %3081 = vmatpush.bf16.msra.mxu3 %v3733_v39 }
  0x41   :  { %642 = vmatpush.bf16.msrb.mxu2 %v3597_v1  ;;  %1016 = vmatpush.bf16.msrb.mxu0 %v3597_v1 }
  0x43   :  { %714 = vmatpush.bf16.msrb.mxu3 %v3659_v20  ;;  %1088 = vmatpush.bf16.msrb.mxu1 %v3659_v20 }
  0x45   :  { %643 = vmatpush.bf16.msrb.mxu2 %v3599_v2  ;;  %1017 = vmatpush.bf16.msrb.mxu0 %v3599_v2 }
  0x47   :  { %715 = vmatpush.bf16.msrb.mxu3 %v3662_v21  ;;  %1089 = vmatpush.bf16.msrb.mxu1 %v3662_v21 }
  0x49   :  { %644 = vmatpush.bf16.msrb.mxu2 %v3605_v3  ;;  %1018 = vmatpush.bf16.msrb.mxu0 %v3605_v3 }
  0x4b   :  { %716 = vmatpush.bf16.msrb.mxu3 %v3668_v22  ;;  %1090 = vmatpush.bf16.msrb.mxu1 %v3668_v22 }
  0x4c   :  { %226 = vmatmul.bf16.gmra.mxu0 %v157_v18  ;;  %246 = vmatmul.bf16.gmra.mxu2 %v161_v19 }
  0x4d   :  { %645 = vmatpush.bf16.msrb.mxu2 %v3609_v4  ;;  %1019 = vmatpush.bf16.msrb.mxu0 %v3609_v4 }
  0x4f   :  { %717 = vmatpush.bf16.msrb.mxu3 %v3717_v35  ;;  %1091 = vmatpush.bf16.msrb.mxu1 %v3717_v35 }
  0x51   :  { %646 = vmatpush.bf16.msrb.mxu2 %v3613_v5  ;;  %1020 = vmatpush.bf16.msrb.mxu0 %v3613_v5 }
  0x53   :  { %718 = vmatpush.bf16.msrb.mxu3 %v3721_v36  ;;  %1092 = vmatpush.bf16.msrb.mxu1 %v3721_v36 }
  0x55   :  { %647 = vmatpush.bf16.msrb.mxu2 %v3617_v6  ;;  %1021 = vmatpush.bf16.msrb.mxu0 %v3617_v6 }
  0x57   :  { %719 = vmatpush.bf16.msrb.mxu3 %v3725_v37  ;;  %1093 = vmatpush.bf16.msrb.mxu1 %v3725_v37 }
  0x59   :  { %648 = vmatpush.bf16.msrb.mxu2 %v3619_v7  ;;  %1022 = vmatpush.bf16.msrb.mxu0 %v3619_v7 }
  0x5b   :  { %720 = vmatpush.bf16.msrb.mxu3 %v3729_v38  ;;  %1094 = vmatpush.bf16.msrb.mxu1 %v3729_v38 }
  0x5c   :  { %231 = vmatmul.bf16.gmra.mxu0 %v158_v27  ;;  %251 = vmatmul.bf16.gmra.mxu2 %v162_v28 }
  0x5d   :  { %1389 = vmatpush.bf16.msra.mxu2 %v3593_v0  ;;  %1763 = vmatpush.bf16.msra.mxu0 %v3593_v0 }
  0x5f   :  { %721 = vmatpush.bf16.msrb.mxu3 %v3733_v39  ;;  %1095 = vmatpush.bf16.msrb.mxu1 %v3733_v39 }
  0x61   :  { %1390 = vmatpush.bf16.msra.mxu2 %v3597_v1  ;;  %1764 = vmatpush.bf16.msra.mxu0 %v3597_v1 }
  0x65   :  { %1391 = vmatpush.bf16.msra.mxu2 %v3599_v2  ;;  %1765 = vmatpush.bf16.msra.mxu0 %v3599_v2 }
  0x69   :  { %1392 = vmatpush.bf16.msra.mxu2 %v3605_v3  ;;  %1766 = vmatpush.bf16.msra.mxu0 %v3605_v3 }
  0x6c   :  { %236 = vmatmul.bf16.gmra.mxu0 %v159_v33  ;;  %256 = vmatmul.bf16.gmra.mxu2 %v163_v34 }
  0x6d   :  { %1393 = vmatpush.bf16.msra.mxu2 %v3609_v4  ;;  %1767 = vmatpush.bf16.msra.mxu0 %v3609_v4 }
  0x71   :  { %1394 = vmatpush.bf16.msra.mxu2 %v3613_v5  ;;  %1768 = vmatpush.bf16.msra.mxu0 %v3613_v5 }
  0x75   :  { %1395 = vmatpush.bf16.msra.mxu2 %v3617_v6  ;;  %1769 = vmatpush.bf16.msra.mxu0 %v3617_v6 }
  0x79   :  { %1396 = vmatpush.bf16.msra.mxu2 %v3619_v7  ;;  %1770 = vmatpush.bf16.msra.mxu0 %v3619_v7 }
  0xb9   :  { %v222_v41 = vpop.f32.mrf.mxu0 }
  0xba   :  { %v223_v42 = vadd.f32 %v3743_v40, %v222_v41 }
  0xbc   :  { %3103 = vtanh.f32 %v223_v42 }
  0xbf   :  { %v242_v43 = vpop.f32.mrf.mxu2 }
  0xc0   :  { %v243_v44 = vadd.f32 %v3743_v40, %v242_v43 }
  0xc1   :  { %v224_v45 = vpop.f32.mrf.mxu0 }
  0xc2   :  { %v3104_v46 = vpop.eup %3103  ;;  %3105 = vtanh.f32 %v243_v44  ;;  %v225_v47 = vadd.f32 %v3743_v40, %v224_v45 }
  0xc3   :  { %v450_v48 = vmul.f32 %v3104_v46, %v3104_v46 }
  0xc4   :  { %3107 = vtanh.f32 %v225_v47 }
  0xc5   :  { %v466_v50 = vsub.f32 1.0, %v450_v48 }
  0xc7   :  { %v244_v51 = vpop.f32.mrf.mxu2  ;;  %v485_v52 = vmul.f32 %v3757_v49, %v466_v50 }
  0xc8   :  { %v3106_v53 = vpop.eup %3105  ;;  %v245_v54 = vadd.f32 %v3743_v40, %v244_v51 }
  0xc9   :  { %v227_v55 = vpop.f32.mrf.mxu0  ;;  %501 = vadd.xlane.f32.xlu1 %v485_v52  ;;  %v458_v56 = vmul.f32 %v3106_v53, %v3106_v53 }
  0xca   :  { %v3108_v57 = vpop.eup %3107  ;;  %3109 = vtanh.f32 %v245_v54  ;;  %v228_v58 = vadd.f32 %v3743_v40, %v227_v55 }
  0xcb   :  { %v278_v59 = vpack.c.bf16 %v3108_v57, %v3104_v46  ;;  %v474_v60 = vsub.f32 1.0, %v458_v56  ;;  %v451_v61 = vmul.f32 %v3108_v57, %v3108_v57 }
  0xcc   :  { %3111 = vtanh.f32 %v228_v58 }
  0xcd   :  { %345 = vmatmul.bf16.vlgmr.msra.gmra.mxu1 %v278_v59  ;;  %v493_v62 = vmul.f32 %v3757_v49, %v474_v60  ;;  %v467_v63 = vsub.f32 1.0, %v451_v61 }
  0xce   :  { %1836 = vmatpush.bf16.msra.mxu1 %v3659_v20 }
  0xcf   :  { %v247_v12 = vpop.f32.mrf.mxu2  ;;  %517 = vadd.xlane.f32.xlu0 %v493_v62  ;;  %v486_v13 = vmul.f32 %v3757_v49, %v467_v63 }
  0xd0   :  { %v3110_v18 = vpop.eup %3109  ;;  %v248_v19 = vadd.f32 %v3743_v40, %v247_v12 }
  0xd1   :  { %v229_v27 = vpop.f32.mrf.mxu0  ;;  %503 = vadd.xlane.f32.xlu2 %v486_v13  ;;  %v282_v28 = vpack.c.bf16 %v3110_v18, %v3106_v53  ;;  %v459_v33 = vmul.f32 %v3110_v18, %v3110_v18 }
  0xd2   :  { %v3112_v34 = vpop.eup %3111  ;;  %3113 = vtanh.f32 %v248_v19  ;;  %v230_v41 = vadd.f32 %v3743_v40, %v229_v27  ;;  %1837 = vmatpush.bf16.msra.mxu1 %v3662_v21 }
  0xd3   :  { %365 = vmatmul.bf16.vlgmr.msra.gmra.mxu3 %v282_v28  ;;  %v452_v42 = vmul.f32 %v3112_v34, %v3112_v34  ;;  %v475_v43 = vsub.f32 1.0, %v459_v33 }
  0xd4   :  { %3115 = vtanh.f32 %v230_v41  ;;  %1462 = vmatpush.bf16.msra.mxu3 %v3659_v20 }
  0xd5   :  { %v468_v44 = vsub.f32 1.0, %v452_v42  ;;  %v494_v45 = vmul.f32 %v3757_v49, %v475_v43 }
  0xd6   :  { %1838 = vmatpush.bf16.msra.mxu1 %v3668_v22 }
  0xd7   :  { %v249_v46 = vpop.f32.mrf.mxu2  ;;  %v487_v47 = vmul.f32 %v3757_v49, %v468_v44  ;;  %519 = vadd.xlane.f32.xlu1 %v494_v45 }
  0xd8   :  { %v3114_v48 = vpop.eup %3113  ;;  %v250_v50 = vadd.f32 %v3743_v40, %v249_v46  ;;  %1463 = vmatpush.bf16.msra.mxu3 %v3662_v21 }
  0xd9   :  { %v232_v51 = vpop.f32.mrf.mxu0  ;;  %505 = vadd.xlane.f32.xlu0 %v487_v47  ;;  %v460_v52 = vmul.f32 %v3114_v48, %v3114_v48 }
  0xda   :  { %v3116_v53 = vpop.eup %3115  ;;  %3117 = vtanh.f32 %v250_v50  ;;  %v233_v54 = vadd.f32 %v3743_v40, %v232_v51  ;;  %1839 = vmatpush.bf16.msra.mxu1 %v3717_v35 }
  0xdb   :  { %v279_v55 = vpack.c.bf16 %v3116_v53, %v3112_v34  ;;  %v476_v56 = vsub.f32 1.0, %v460_v52  ;;  %v453_v57 = vmul.f32 %v3116_v53, %v3116_v53 }
  0xdc   :  { %3119 = vtanh.f32 %v233_v54  ;;  %1464 = vmatpush.bf16.msra.mxu3 %v3668_v22 }
  0xdd   :  { %350 = vmatmul.bf16.gmra.mxu1 %v279_v55  ;;  %v495_v58 = vmul.f32 %v3757_v49, %v476_v56  ;;  %v469_v59 = vsub.f32 1.0, %v453_v57 }
  0xde   :  { %1840 = vmatpush.bf16.msra.mxu1 %v3721_v36 }
  0xdf   :  { %v252_v60 = vpop.f32.mrf.mxu2  ;;  %521 = vadd.xlane.f32.xlu2 %v495_v58  ;;  %v488_v61 = vmul.f32 %v3757_v49, %v469_v59 }
  0xe0   :  { %v3118_v62 = vpop.eup %3117  ;;  %v253_v63 = vadd.f32 %v3743_v40, %v252_v60  ;;  %1465 = vmatpush.bf16.msra.mxu3 %v3717_v35 }
  0xe1   :  { %v234_v12 = vpop.f32.mrf.mxu0  ;;  %507 = vadd.xlane.f32.xlu1 %v488_v61  ;;  %v283_v13 = vpack.c.bf16 %v3118_v62, %v3114_v48  ;;  %v461_v18 = vmul.f32 %v3118_v62, %v3118_v62 }
  0xe2   :  { %v3120_v19 = vpop.eup %3119  ;;  %3121 = vtanh.f32 %v253_v63  ;;  %v235_v27 = vadd.f32 %v3743_v40, %v234_v12  ;;  %1841 = vmatpush.bf16.msra.mxu1 %v3725_v37 }
  0xe3   :  { %370 = vmatmul.bf16.gmra.mxu3 %v283_v13  ;;  %v477_v28 = vsub.f32 1.0, %v461_v18  ;;  %v454_v33 = vmul.f32 %v3120_v19, %v3120_v19 }
  0xe4   :  { %3123 = vtanh.f32 %v235_v27  ;;  %1466 = vmatpush.bf16.msra.mxu3 %v3721_v36 }
  0xe5   :  { %v496_v34 = vmul.f32 %v3757_v49, %v477_v28  ;;  %v470_v41 = vsub.f32 1.0, %v454_v33 }
  0xe6   :  { %1842 = vmatpush.bf16.msra.mxu1 %v3729_v38 }
  0xe7   :  { %v254_v42 = vpop.f32.mrf.mxu2  ;;  %523 = vadd.xlane.f32.xlu0 %v496_v34  ;;  %v489_v43 = vmul.f32 %v3757_v49, %v470_v41 }
  0xe8   :  { %v3122_v44 = vpop.eup %3121  ;;  %v255_v45 = vadd.f32 %v3743_v40, %v254_v42  ;;  %1467 = vmatpush.bf16.msra.mxu3 %v3725_v37 }
  0xe9   :  { %v237_v46 = vpop.f32.mrf.mxu0  ;;  %509 = vadd.xlane.f32.xlu2 %v489_v43  ;;  %v462_v47 = vmul.f32 %v3122_v44, %v3122_v44 }
  0xea   :  { %v3124_v48 = vpop.eup %3123  ;;  %3125 = vtanh.f32 %v255_v45  ;;  %v238_v50 = vadd.f32 %v3743_v40, %v237_v46  ;;  %1843 = vmatpush.bf16.msra.mxu1 %v3733_v39 }
  0xeb   :  { %v280_v51 = vpack.c.bf16 %v3124_v48, %v3120_v19  ;;  %v455_v52 = vmul.f32 %v3124_v48, %v3124_v48  ;;  %v478_v53 = vsub.f32 1.0, %v462_v47 }
  0xec   :  { %3127 = vtanh.f32 %v238_v50  ;;  %1468 = vmatpush.bf16.msra.mxu3 %v3729_v38 }
  0xed   :  { %355 = vmatmul.bf16.gmra.mxu1 %v280_v51  ;;  %v471_v54 = vsub.f32 1.0, %v455_v52  ;;  %v497_v55 = vmul.f32 %v3757_v49, %v478_v53 }
  0xef   :  { %v490_v56 = vmul.f32 %v3757_v49, %v471_v54  ;;  %525 = vadd.xlane.f32.xlu1 %v497_v55  ;;  %v257_v57 = vpop.f32.mrf.mxu2  ;;  %v3811_v55 = vld [vmem:[%s5624_s5] ss:$0 sm:$0xff] }
  0xf0   :  { %v3126_v58 = vpop.eup %3125  ;;  %v258_v59 = vadd.f32 %v3743_v40, %v257_v57  ;;  %1469 = vmatpush.bf16.msra.mxu3 %v3733_v39 }
  0xf1   :  { %v239_v60 = vpop.f32.mrf.mxu0  ;;  %511 = vadd.xlane.f32.xlu0 %v490_v56  ;;  %v284_v61 = vpack.c.bf16 %v3126_v58, %v3122_v44  ;;  %v463_v62 = vmul.f32 %v3126_v58, %v3126_v58 }
  0xf2   :  { %v3128_v63 = vpop.eup %3127  ;;  %v240_v12 = vadd.f32 %v3743_v40, %v239_v60  ;;  %3129 = vtanh.f32 %v258_v59  ;;  %v3814_v59 = vstv %s154_s10 }
  0xf3   :  { %375 = vmatmul.bf16.gmra.mxu3 %v284_v61  ;;  %v479_v13 = vsub.f32 1.0, %v463_v62  ;;  %v456_v18 = vmul.f32 %v3128_v63, %v3128_v63 }
  0xf4   :  { %3131 = vtanh.f32 %v240_v12 }
  0xf5   :  { %v498_v19 = vmul.f32 %v3757_v49, %v479_v13  ;;  %v472_v27 = vsub.f32 1.0, %v456_v18 }
  0xf7   :  { %527 = vadd.xlane.f32.xlu2 %v498_v19  ;;  %v491_v28 = vmul.f32 %v3757_v49, %v472_v27  ;;  %v259_v33 = vpop.f32.mrf.mxu2 }
  0xf8   :  { %v3130_v34 = vpop.eup %3129  ;;  %v260_v41 = vadd.f32 %v3743_v40, %v259_v33 }
  0xf9   :  { %513 = vadd.xlane.f32.xlu1 %v491_v28  ;;  %v464_v42 = vmul.f32 %v3130_v34, %v3130_v34 }
  0xfa   :  { %v3132_v43 = vpop.eup %3131  ;;  %3133 = vtanh.f32 %v260_v41 }
  0xfb   :  { %v281_v44 = vpack.c.bf16 %v3132_v43, %v3128_v63  ;;  %v457_v45 = vmul.f32 %v3132_v43, %v3132_v43  ;;  %v480_v46 = vsub.f32 1.0, %v464_v42 }
  0xfd   :  { %360 = vmatmul.bf16.gmra.mxu1 %v281_v44  ;;  %v473_v47 = vsub.f32 1.0, %v457_v45  ;;  %v499_v48 = vmul.f32 %v3757_v49, %v480_v46 }
  0xff   :  { %v492_v50 = vmul.f32 %v3757_v49, %v473_v47  ;;  %529 = vadd.xlane.f32.xlu0 %v499_v48 }
 0x100   :  { %v3134_v51 = vpop.eup %3133 }
 0x101   :  { %515 = vadd.xlane.f32.xlu2 %v492_v50  ;;  %v285_v52 = vpack.c.bf16 %v3134_v51, %v3130_v34  ;;  %v465_v53 = vmul.f32 %v3134_v51, %v3134_v51 }
 0x103   :  { %380 = vmatmul.bf16.gmra.mxu3 %v285_v52  ;;  %v481_v40 = vsub.f32 1.0, %v465_v53 }
 0x105   :  { %v500_v54 = vmul.f32 %v3757_v49, %v481_v40 }
 0x107   :  { %531 = vadd.xlane.f32.xlu1 %v500_v54 }
 0x14a   :  { %v346_v56 = vpop.f32.mrf.mxu1 }
 0x14b   :  { %v347_v57 = vadd.f32 %v3811_v55, %v346_v56 }
 0x14d   :  { %v386_v58 = vmul.f32 %v347_v57, %v347_v57  ;;  %v534_v61 = vmul.f32 %v3814_v59, %v347_v57 }
 0x14f   :  { %402 = vadd.xlane.f32.xlu0 %v386_v58  ;;  %v3820_v18 = vadd.f32 %v534_v61, %v3621_v8 }
 0x152   :  { %v348_v60 = vpop.f32.mrf.mxu1 }
 0x153   :  { %v349_v62 = vadd.f32 %v3811_v55, %v348_v60 }
 0x155   :  { %v535_v63 = vmul.f32 %v3814_v59, %v349_v62  ;;  %v387_v12 = vmul.f32 %v349_v62, %v349_v62 }
 0x156   :  { %v366_v13 = vpop.f32.mrf.mxu3 }
 0x157   :  { %v3823_v19 = vadd.f32 %v535_v63, %v3625_v9  ;;  %v3826_v27 = vadd.f32 %v3811_v55, %v366_v13  ;;  %404 = vadd.xlane.f32.xlu0 %v387_v12 }
 0x159   :  { %v632_v28 = vpack.c.bf16 %v3823_v19, %v3820_v18  ;;  %v394_v33 = vmul.f32 %v3826_v27, %v3826_v27 }
 0x15a   :  { %v351_v34 = vpop.f32.mrf.mxu1 }
 0x15b   :  { %v352_v41 = vadd.f32 %v3811_v55, %v351_v34  ;;  %649 = vmatmul.bf16.vlgmr.msrb.gmra.mxu2 %v632_v28  ;;  %418 = vadd.xlane.f32.xlu2 %v394_v33 }
 0x15c   :  { %2137 = vmatpush.bf16.msrb.mxu2 %v3593_v0 }
 0x15d   :  { %v388_v8 = vmul.f32 %v352_v41, %v352_v41  ;;  %v536_v45 = vmul.f32 %v3814_v59, %v352_v41 }
 0x15e   :  { %v368_v9 = vpop.f32.mrf.mxu3 }
 0x15f   :  { %v3835_v42 = vadd.f32 %v3811_v55, %v368_v9  ;;  %406 = vadd.xlane.f32.xlu1 %v388_v8 }
 0x160   :  { %2138 = vmatpush.bf16.msrb.mxu2 %v3597_v1  ;;  %v3848_v1 = vadd.f32 %v536_v45, %v3643_v14 }
 0x161   :  { %v395_v43 = vmul.f32 %v3835_v42, %v3835_v42 }
 0x162   :  { %v353_v44 = vpop.f32.mrf.mxu1 }
 0x163   :  { %v354_v46 = vadd.f32 %v3811_v55, %v353_v44  ;;  %420 = vadd.xlane.f32.xlu0 %v395_v43 }
 0x164   :  { %2139 = vmatpush.bf16.msrb.mxu2 %v3599_v2 }
 0x165   :  { %v537_v0 = vmul.f32 %v3814_v59, %v354_v46  ;;  %v389_v47 = vmul.f32 %v354_v46, %v354_v46 }
 0x166   :  { %v371_v48 = vpop.f32.mrf.mxu3 }
 0x167   :  { %v3845_v50 = vadd.f32 %v3811_v55, %v371_v48  ;;  %408 = vadd.xlane.f32.xlu1 %v389_v47  ;;  %v3851_v51 = vadd.f32 %v537_v0, %v3645_v15 }
 0x168   :  { %2140 = vmatpush.bf16.msrb.mxu2 %v3605_v3 }
 0x169   :  { %v633_v52 = vpack.c.bf16 %v3851_v51, %v3848_v1  ;;  %v396_v40 = vmul.f32 %v3845_v50, %v3845_v50 }
 0x16a   :  { %v356_v2 = vpop.f32.mrf.mxu1 }
 0x16b   :  { %v357_v53 = vadd.f32 %v3811_v55, %v356_v2  ;;  %654 = vmatmul.bf16.gmra.mxu2 %v633_v52 }
 0x16c   :  { %2141 = vmatpush.bf16.msrb.mxu2 %v3609_v4 }
 0x16d   :  { %v390_v54 = vmul.f32 %v357_v53, %v357_v53  ;;  %v538_v15 = vmul.f32 %v3814_v59, %v357_v53 }
 0x16e   :  { %v373_v14 = vpop.f32.mrf.mxu3 }
 0x16f   :  { %v374_v56 = vadd.f32 %v3811_v55, %v373_v14  ;;  %410 = vadd.xlane.f32.xlu2 %v390_v54  ;;  %422 = vadd.xlane.f32.xlu1 %v396_v40  ;;  %v3868_v62 = vadd.f32 %v538_v15, %v3673_v23 }
 0x170   :  { %2142 = vmatpush.bf16.msrb.mxu2 %v3613_v5 }
 0x171   :  { %v397_v58 = vmul.f32 %v374_v56, %v374_v56 }
 0x172   :  { %v358_v3 = vpop.f32.mrf.mxu1 }
 0x173   :  { %v359_v57 = vadd.f32 %v3811_v55, %v358_v3  ;;  %v544_v3 = vmul.f32 %v3814_v59, %v3845_v50 }
 0x174   :  { %2143 = vmatpush.bf16.msrb.mxu2 %v3617_v6 }
 0x175   :  { %v539_v60 = vmul.f32 %v3814_v59, %v359_v57  ;;  %v391_v28 = vmul.f32 %v359_v57, %v359_v57  ;;  %v3907_v15 = vadd.f32 %v544_v3, %v3647_v16 }
 0x176   :  { %v376_v61 = vpop.f32.mrf.mxu3 }
 0x177   :  { %v377_v4 = vadd.f32 %v3811_v55, %v376_v61  ;;  %424 = vadd.xlane.f32.xlu2 %v397_v58  ;;  %v3871_v63 = vadd.f32 %v539_v60, %v3675_v24 }
 0x178   :  { %2144 = vmatpush.bf16.msrb.mxu2 %v3619_v7 }
 0x179   :  { %v634_v5 = vpack.c.bf16 %v3871_v63, %v3868_v62  ;;  %v398_v12 = vmul.f32 %v377_v4, %v377_v4 }
 0x17a   :  { %v361_v13 = vpop.f32.mrf.mxu1 }
 0x17b   :  { %659 = vmatmul.bf16.gmra.mxu2 %v634_v5  ;;  %426 = vadd.xlane.f32.xlu0 %v398_v12  ;;  %v362_v6 = vadd.f32 %v3811_v55, %v361_v13 }
 0x17d   :  { %v392_v41 = vmul.f32 %v362_v6, %v362_v6  ;;  %v540_v8 = vmul.f32 %v3814_v59, %v362_v6 }
 0x17e   :  { %v378_v33 = vpop.f32.mrf.mxu3 }
 0x17f   :  { %v379_v34 = vadd.f32 %v3811_v55, %v378_v33  ;;  %412 = vadd.xlane.f32.xlu2 %v391_v28  ;;  %v3882_v44 = vadd.f32 %v540_v8, %v3695_v29  ;;  %v542_v29 = vmul.f32 %v3814_v59, %v3826_v27  ;;  %v545_v27 = vmul.f32 %v3814_v59, %v374_v56 }
 0x181   :  { %v399_v23 = vmul.f32 %v379_v34, %v379_v34  ;;  %v3896_v40 = vadd.f32 %v542_v29, %v3627_v10  ;;  %v547_v57 = vmul.f32 %v3814_v59, %v379_v34 }
 0x182   :  { %v363_v24 = vpop.f32.mrf.mxu1 }
 0x183   :  { %v364_v7 = vadd.f32 %v3811_v55, %v363_v24  ;;  %428 = vadd.xlane.f32.xlu1 %v399_v23  ;;  %414 = vadd.xlane.f32.xlu0 %v392_v41  ;;  %v3920_v50 = vadd.f32 %v547_v57, %v3679_v26  ;;  %v3934_v26 = vld [vmem:[#allocation6 + $0x1] ss:$0 sm:$0xff] }
 0x185   :  { %v541_v9 = vmul.f32 %v3814_v59, %v364_v7  ;;  %v393_v0 = vmul.f32 %v364_v7, %v364_v7 }
 0x186   :  { %v381_v43 = vpop.f32.mrf.mxu3 }
 0x187   :  { %v3885_v45 = vadd.f32 %v541_v9, %v3697_v30  ;;  %v382_v46 = vadd.f32 %v3811_v55, %v381_v43  ;;  %v543_v30 = vmul.f32 %v3814_v59, %v3835_v42  ;;  %v3910_v42 = vadd.f32 %v545_v27, %v3649_v17 }
 0x189   :  { %v635_v47 = vpack.c.bf16 %v3885_v45, %v3882_v44  ;;  %v400_v48 = vmul.f32 %v382_v46, %v382_v46  ;;  %v3899_v54 = vadd.f32 %v543_v30, %v3629_v11  ;;  %v637_v10 = vpack.c.bf16 %v3910_v42, %v3907_v15 }
 0x18a   :  { %v546_v11 = vmul.f32 %v3814_v59, %v377_v4  ;;  %v548_v17 = vmul.f32 %v3814_v59, %v382_v46 }
 0x18b   :  { %416 = vadd.xlane.f32.xlu1 %v393_v0  ;;  %664 = vmatmul.bf16.gmra.mxu2 %v635_v47  ;;  %v636_v14 = vpack.c.bf16 %v3899_v54, %v3896_v40 }
 0x18c   :  { %430 = vadd.xlane.f32.xlu2 %v400_v48  ;;  %v3917_v58 = vadd.f32 %v546_v11, %v3677_v25  ;;  %v3927_v60 = vadd.f32 %v548_v17, %v3699_v31 }
 0x18e   :  { %v383_v52 = vpop.f32.mrf.mxu3  ;;  %v638_v16 = vpack.c.bf16 %v3920_v50, %v3917_v58 }
 0x18f   :  { %v384_v2 = vadd.f32 %v3811_v55, %v383_v52 }
 0x191   :  { %v401_v53 = vmul.f32 %v384_v2, %v384_v2  ;;  %v549_v56 = vmul.f32 %v3814_v59, %v384_v2 }
 0x193   :  { %432 = vadd.xlane.f32.xlu0 %v401_v53  ;;  %v3930_v61 = vadd.f32 %v549_v56, %v3701_v32 }
 0x195   :  { %v639_v25 = vpack.c.bf16 %v3930_v61, %v3927_v60 }
 0x19b   :  { %669 = vmatmul.bf16.gmra.mxu2 %v636_v14 }
 0x1ab   :  { %674 = vmatmul.bf16.gmra.mxu2 %v637_v10 }
 0x1bb   :  { %679 = vmatmul.bf16.gmra.mxu2 %v638_v16 }
 0x1cb   :  { %684 = vmatmul.bf16.gmra.mxu2 %v639_v25 }
 0x1de   :  { %v650_v4 = vpop.f32.mrf.mxu2 }
 0x1df   :  { %v651_v5 = vadd.f32 %v3934_v26, %v650_v4 }
 0x1e1   :  { %3135 = vtanh.f32 %v651_v5 }
 0x1e6   :  { %v652_v12 = vpop.f32.mrf.mxu2 }
 0x1e7   :  { %v3136_v13 = vpop.eup %3135  ;;  %v653_v6 = vadd.f32 %v3934_v26, %v652_v12 }
 0x1e8   :  { %v827_v28 = vmul.f32 %v3136_v13, %v3136_v13 }
 0x1e9   :  { %3137 = vtanh.f32 %v653_v6 }
 0x1ea   :  { %v843_v31 = vsub.f32 1.0, %v827_v28 }
 0x1ec   :  { %v859_v32 = vmul.f32 %v3757_v49, %v843_v31 }
 0x1ee   :  { %v655_v33 = vpop.f32.mrf.mxu2  ;;  %875 = vadd.xlane.f32.xlu0 %v859_v32 }
 0x1ef   :  { %v3138_v34 = vpop.eup %3137  ;;  %v656_v23 = vadd.f32 %v3934_v26, %v655_v33 }
 0x1f0   :  { %v706_v41 = vpack.c.bf16 %v3138_v34, %v3136_v13  ;;  %v828_v24 = vmul.f32 %v3138_v34, %v3138_v34 }
 0x1f1   :  { %3139 = vtanh.f32 %v656_v23 }
 0x1f2   :  { %722 = vmatmul.bf16.vlgmr.msrb.gmra.mxu3 %v706_v41  ;;  %v844_v8 = vsub.f32 1.0, %v828_v24 }
 0x1f3   :  { %2210 = vmatpush.bf16.msrb.mxu3 %v3659_v20 }
 0x1f4   :  { %v860_v7 = vmul.f32 %v3757_v49, %v844_v8 }
 0x1f6   :  { %v657_v9 = vpop.f32.mrf.mxu2  ;;  %877 = vadd.xlane.f32.xlu1 %v860_v7 }
 0x1f7   :  { %v3140_v43 = vpop.eup %3139  ;;  %v658_v46 = vadd.f32 %v3934_v26, %v657_v9  ;;  %2211 = vmatpush.bf16.msrb.mxu3 %v3662_v21 }
 0x1f8   :  { %v829_v0 = vmul.f32 %v3140_v43, %v3140_v43 }
 0x1f9   :  { %3141 = vtanh.f32 %v658_v46 }
 0x1fa   :  { %v845_v47 = vsub.f32 1.0, %v829_v0 }
 0x1fb   :  { %2212 = vmatpush.bf16.msrb.mxu3 %v3668_v22 }
 0x1fc   :  { %v861_v48 = vmul.f32 %v3757_v49, %v845_v47 }
 0x1fe   :  { %v660_v52 = vpop.f32.mrf.mxu2  ;;  %879 = vadd.xlane.f32.xlu2 %v861_v48 }
 0x1ff   :  { %v3142_v2 = vpop.eup %3141  ;;  %v661_v20 = vadd.f32 %v3934_v26, %v660_v52  ;;  %2213 = vmatpush.bf16.msrb.mxu3 %v3717_v35 }
 0x200   :  { %v707_v29 = vpack.c.bf16 %v3142_v2, %v3140_v43  ;;  %v830_v30 = vmul.f32 %v3142_v2, %v3142_v2 }
 0x201   :  { %3143 = vtanh.f32 %v661_v20 }
 0x202   :  { %727 = vmatmul.bf16.gmra.mxu3 %v707_v29  ;;  %v846_v53 = vsub.f32 1.0, %v830_v30 }
 0x203   :  { %2214 = vmatpush.bf16.msrb.mxu3 %v3721_v36 }
 0x204   :  { %v862_v21 = vmul.f32 %v3757_v49, %v846_v53 }
 0x206   :  { %v662_v14 = vpop.f32.mrf.mxu2  ;;  %881 = vadd.xlane.f32.xlu0 %v862_v21 }
 0x207   :  { %v3144_v22 = vpop.eup %3143  ;;  %v663_v3 = vadd.f32 %v3934_v26, %v662_v14  ;;  %2215 = vmatpush.bf16.msrb.mxu3 %v3725_v37 }
 0x208   :  { %v831_v27 = vmul.f32 %v3144_v22, %v3144_v22 }
 0x209   :  { %3145 = vtanh.f32 %v663_v3 }
 0x20a   :  { %v847_v10 = vsub.f32 1.0, %v831_v27 }
 0x20b   :  { %2216 = vmatpush.bf16.msrb.mxu3 %v3729_v38 }
 0x20c   :  { %v863_v35 = vmul.f32 %v3757_v49, %v847_v10 }
 0x20e   :  { %v665_v11 = vpop.f32.mrf.mxu2  ;;  %883 = vadd.xlane.f32.xlu1 %v863_v35 }
 0x20f   :  { %v3146_v57 = vpop.eup %3145  ;;  %v666_v36 = vadd.f32 %v3934_v26, %v665_v11  ;;  %2217 = vmatpush.bf16.msrb.mxu3 %v3733_v39 }
 0x210   :  { %v708_v16 = vpack.c.bf16 %v3146_v57, %v3144_v22  ;;  %v832_v17 = vmul.f32 %v3146_v57, %v3146_v57 }
 0x211   :  { %3147 = vtanh.f32 %v666_v36 }
 0x212   :  { %732 = vmatmul.bf16.gmra.mxu3 %v708_v16  ;;  %v848_v56 = vsub.f32 1.0, %v832_v17 }
 0x214   :  { %v864_v37 = vmul.f32 %v3757_v49, %v848_v56 }
 0x216   :  { %v667_v25 = vpop.f32.mrf.mxu2  ;;  %885 = vadd.xlane.f32.xlu2 %v864_v37 }
 0x217   :  { %v3148_v4 = vpop.eup %3147  ;;  %v668_v38 = vadd.f32 %v3934_v26, %v667_v25 }
 0x218   :  { %v833_v5 = vmul.f32 %v3148_v4, %v3148_v4 }
 0x219   :  { %3149 = vtanh.f32 %v668_v38 }
 0x21a   :  { %v849_v12 = vsub.f32 1.0, %v833_v5 }
 0x21c   :  { %v865_v13 = vmul.f32 %v3757_v49, %v849_v12 }
 0x21e   :  { %v670_v6 = vpop.f32.mrf.mxu2  ;;  %887 = vadd.xlane.f32.xlu0 %v865_v13 }
 0x21f   :  { %v3150_v39 = vpop.eup %3149  ;;  %v671_v28 = vadd.f32 %v3934_v26, %v670_v6 }
 0x220   :  { %v709_v31 = vpack.c.bf16 %v3150_v39, %v3148_v4  ;;  %v834_v32 = vmul.f32 %v3150_v39, %v3150_v39 }
 0x221   :  { %3151 = vtanh.f32 %v671_v28 }
 0x222   :  { %737 = vmatmul.bf16.gmra.mxu3 %v709_v31  ;;  %v850_v33 = vsub.f32 1.0, %v834_v32 }
 0x224   :  { %v866_v34 = vmul.f32 %v3757_v49, %v850_v33 }
 0x226   :  { %v672_v23 = vpop.f32.mrf.mxu2  ;;  %889 = vadd.xlane.f32.xlu1 %v866_v34 }
 0x227   :  { %v3152_v41 = vpop.eup %3151  ;;  %v673_v24 = vadd.f32 %v3934_v26, %v672_v23 }
 0x228   :  { %v835_v8 = vmul.f32 %v3152_v41, %v3152_v41 }
 0x229   :  { %3153 = vtanh.f32 %v673_v24 }
 0x22a   :  { %v851_v7 = vsub.f32 1.0, %v835_v8 }
 0x22c   :  { %v867_v9 = vmul.f32 %v3757_v49, %v851_v7 }
 0x22e   :  { %v675_v43 = vpop.f32.mrf.mxu2  ;;  %891 = vadd.xlane.f32.xlu2 %v867_v9 }
 0x22f   :  { %v3154_v46 = vpop.eup %3153  ;;  %v676_v0 = vadd.f32 %v3934_v26, %v675_v43 }
 0x230   :  { %v710_v47 = vpack.c.bf16 %v3154_v46, %v3152_v41  ;;  %v836_v48 = vmul.f32 %v3154_v46, %v3154_v46 }
 0x231   :  { %3155 = vtanh.f32 %v676_v0 }
 0x232   :  { %742 = vmatmul.bf16.gmra.mxu3 %v710_v47  ;;  %v852_v52 = vsub.f32 1.0, %v836_v48 }
 0x234   :  { %v868_v2 = vmul.f32 %v3757_v49, %v852_v52 }
 0x236   :  { %v677_v20 = vpop.f32.mrf.mxu2  ;;  %893 = vadd.xlane.f32.xlu0 %v868_v2 }
 0x237   :  { %v3156_v29 = vpop.eup %3155  ;;  %v678_v30 = vadd.f32 %v3934_v26, %v677_v20 }
 0x238   :  { %v837_v53 = vmul.f32 %v3156_v29, %v3156_v29 }
 0x239   :  { %3157 = vtanh.f32 %v678_v30 }
 0x23a   :  { %v853_v21 = vsub.f32 1.0, %v837_v53 }
 0x23c   :  { %v869_v14 = vmul.f32 %v3757_v49, %v853_v21 }
 0x23e   :  { %v680_v22 = vpop.f32.mrf.mxu2  ;;  %895 = vadd.xlane.f32.xlu1 %v869_v14  ;;  %v3327_v14 = vld [vmem:[#allocation9 + $0x38] sm:$0xff] }
 0x23f   :  { %v3158_v3 = vpop.eup %3157  ;;  %v681_v27 = vadd.f32 %v3934_v26, %v680_v22 }
 0x240   :  { %v711_v10 = vpack.c.bf16 %v3158_v3, %v3156_v29  ;;  %v838_v35 = vmul.f32 %v3158_v3, %v3158_v3  ;;  %v3328_v3 = vld [vmem:[#allocation9 + $0x30] sm:$0xff] }
 0x241   :  { %3159 = vtanh.f32 %v681_v27 }
 0x242   :  { %747 = vmatmul.bf16.gmra.mxu3 %v711_v10  ;;  %v854_v11 = vsub.f32 1.0, %v838_v35  ;;  %v3329_v10 = vld [vmem:[#allocation9 + $0x28] sm:$0xff] }
 0x244   :  { %v870_v57 = vmul.f32 %v3757_v49, %v854_v11 }
 0x246   :  { %v682_v36 = vpop.f32.mrf.mxu2  ;;  %897 = vadd.xlane.f32.xlu2 %v870_v57 }
 0x247   :  { %v3160_v16 = vpop.eup %3159  ;;  %v683_v17 = vadd.f32 %v3934_v26, %v682_v36 }
 0x248   :  { %v839_v56 = vmul.f32 %v3160_v16, %v3160_v16 }
 0x249   :  { %3161 = vtanh.f32 %v683_v17 }
 0x24a   :  { %v855_v37 = vsub.f32 1.0, %v839_v56 }
 0x24c   :  { %v871_v25 = vmul.f32 %v3757_v49, %v855_v37 }
 0x24e   :  { %v685_v4 = vpop.f32.mrf.mxu2  ;;  %899 = vadd.xlane.f32.xlu0 %v871_v25  ;;  %v3331_v25 = vld [vmem:[#allocation9 + $0x18] sm:$0xff] }
 0x24f   :  { %v3162_v38 = vpop.eup %3161  ;;  %v686_v5 = vadd.f32 %v3934_v26, %v685_v4 }
 0x250   :  { %v712_v12 = vpack.c.bf16 %v3162_v38, %v3160_v16  ;;  %v840_v13 = vmul.f32 %v3162_v38, %v3162_v38  ;;  %v3330_v16 = vld [vmem:[#allocation9 + $0x20] sm:$0xff]  ;;  %v3332_v38 = vld [vmem:[#allocation9 + $0x10] sm:$0xff] }
 0x251   :  { %3163 = vtanh.f32 %v686_v5 }
 0x252   :  { %752 = vmatmul.bf16.gmra.mxu3 %v712_v12  ;;  %v856_v6 = vsub.f32 1.0, %v840_v13  ;;  %v3333_v12 = vld [vmem:[#allocation9 + $0x8] sm:$0xff] }
 0x254   :  { %v872_v39 = vmul.f32 %v3757_v49, %v856_v6 }
 0x256   :  { %v687_v28 = vpop.f32.mrf.mxu2  ;;  %901 = vadd.xlane.f32.xlu1 %v872_v39 }
 0x257   :  { %v3164_v31 = vpop.eup %3163  ;;  %v688_v32 = vadd.f32 %v3934_v26, %v687_v28  ;;  %v3977_v26 = vstv %s3044_s11 }
 0x258   :  { %v841_v33 = vmul.f32 %v3164_v31, %v3164_v31 }
 0x259   :  { %3165 = vtanh.f32 %v688_v32 }
 0x25a   :  { %v857_v34 = vsub.f32 1.0, %v841_v33 }
 0x25c   :  { %v873_v23 = vmul.f32 %v3757_v49, %v857_v34 }
 0x25e   :  { %903 = vadd.xlane.f32.xlu2 %v873_v23 }
 0x25f   :  { %v3166_v41 = vpop.eup %3165 }
 0x260   :  { %v713_v24 = vpack.c.bf16 %v3166_v41, %v3164_v31  ;;  %v842_v8 = vmul.f32 %v3166_v41, %v3166_v41  ;;  %v3334_v31 = vld [vmem:[#allocation9] sm:$0xff] }
 0x262   :  { %757 = vmatmul.bf16.gmra.mxu3 %v713_v24  ;;  %v858_v7 = vsub.f32 1.0, %v842_v8 }
 0x264   :  { %v874_v9 = vmul.f32 %v3757_v49, %v858_v7 }
 0x266   :  { %905 = vadd.xlane.f32.xlu0 %v874_v9 }
 0x275   :  { %v723_v43 = vpop.f32.mrf.mxu3 }
 0x276   :  { %v724_v46 = vadd.f32 %v3811_v55, %v723_v43 }
 0x278   :  { %v763_v0 = vmul.f32 %v724_v46, %v724_v46  ;;  %v908_v48 = vmul.f32 %v3977_v26, %v724_v46 }
 0x27a   :  { %779 = vadd.xlane.f32.xlu2 %v763_v0  ;;  %v3983_v29 = vadd.f32 %v908_v48, %v3820_v18 }
 0x27d   :  { %v725_v47 = vpop.f32.mrf.mxu3 }
 0x27e   :  { %v726_v52 = vadd.f32 %v3811_v55, %v725_v47 }
 0x280   :  { %v909_v2 = vmul.f32 %v3977_v26, %v726_v52  ;;  %v764_v20 = vmul.f32 %v726_v52, %v726_v52 }
 0x282   :  { %v3986_v49 = vadd.f32 %v909_v2, %v3823_v19  ;;  %781 = vadd.xlane.f32.xlu0 %v764_v20 }
 0x284   :  { %v1006_v30 = vpack.c.bf16 %v3986_v49, %v3983_v29 }
 0x285   :  { %v728_v53 = vpop.f32.mrf.mxu3 }
 0x286   :  { %v729_v21 = vadd.f32 %v3811_v55, %v728_v53  ;;  %1023 = vmatmul.bf16.vlgmr.msrb.gmra.mxu0 %v1006_v30 }
 0x287   :  { %2511 = vmatpush.bf16.msrb.mxu0 %v3327_v14 }
 0x288   :  { %v765_v22 = vmul.f32 %v729_v21, %v729_v21  ;;  %v910_v18 = vmul.f32 %v3977_v26, %v729_v21 }
 0x28a   :  { %783 = vadd.xlane.f32.xlu1 %v765_v22  ;;  %v3995_v57 = vadd.f32 %v910_v18, %v3848_v1 }
 0x28b   :  { %2512 = vmatpush.bf16.msrb.mxu0 %v3328_v3 }
 0x28d   :  { %v730_v27 = vpop.f32.mrf.mxu3 }
 0x28e   :  { %v731_v19 = vadd.f32 %v3811_v55, %v730_v27 }
 0x28f   :  { %2513 = vmatpush.bf16.msrb.mxu0 %v3329_v10 }
 0x290   :  { %v911_v35 = vmul.f32 %v3977_v26, %v731_v19  ;;  %v766_v11 = vmul.f32 %v731_v19, %v731_v19 }
 0x292   :  { %785 = vadd.xlane.f32.xlu2 %v766_v11  ;;  %v3998_v36 = vadd.f32 %v911_v35, %v3851_v51 }
 0x293   :  { %2514 = vmatpush.bf16.msrb.mxu0 %v3330_v16 }
 0x294   :  { %v1007_v17 = vpack.c.bf16 %v3998_v36, %v3995_v57 }
 0x295   :  { %v733_v56 = vpop.f32.mrf.mxu3 }
 0x296   :  { %v734_v37 = vadd.f32 %v3811_v55, %v733_v56  ;;  %1028 = vmatmul.bf16.gmra.mxu0 %v1007_v17 }
 0x297   :  { %2515 = vmatpush.bf16.msrb.mxu0 %v3331_v25 }
 0x298   :  { %v767_v4 = vmul.f32 %v734_v37, %v734_v37  ;;  %v912_v5 = vmul.f32 %v3977_v26, %v734_v37 }
 0x29a   :  { %787 = vadd.xlane.f32.xlu0 %v767_v4  ;;  %v4007_v39 = vadd.f32 %v912_v5, %v3868_v62 }
 0x29b   :  { %2516 = vmatpush.bf16.msrb.mxu0 %v3332_v38 }
 0x29d   :  { %v735_v1 = vpop.f32.mrf.mxu3 }
 0x29e   :  { %v736_v51 = vadd.f32 %v3811_v55, %v735_v1 }
 0x29f   :  { %2517 = vmatpush.bf16.msrb.mxu0 %v3333_v12 }
 0x2a0   :  { %v913_v13 = vmul.f32 %v3977_v26, %v736_v51  ;;  %v768_v6 = vmul.f32 %v736_v51, %v736_v51 }
 0x2a2   :  { %789 = vadd.xlane.f32.xlu1 %v768_v6  ;;  %v4010_v28 = vadd.f32 %v913_v13, %v3871_v63 }
 0x2a3   :  { %2518 = vmatpush.bf16.msrb.mxu0 %v3334_v31 }
 0x2a4   :  { %v1008_v32 = vpack.c.bf16 %v4010_v28, %v4007_v39 }
 0x2a5   :  { %v738_v33 = vpop.f32.mrf.mxu3 }
 0x2a6   :  { %v739_v34 = vadd.f32 %v3811_v55, %v738_v33  ;;  %1033 = vmatmul.bf16.gmra.mxu0 %v1008_v32 }
 0x2a8   :  { %v769_v23 = vmul.f32 %v739_v34, %v739_v34  ;;  %v914_v24 = vmul.f32 %v3977_v26, %v739_v34 }
 0x2aa   :  { %791 = vadd.xlane.f32.xlu2 %v769_v23  ;;  %v4019_v7 = vadd.f32 %v914_v24, %v3882_v44  ;;  %v4074_v23 = vld [vmem:[#allocation6 + $0x2] ss:$0 sm:$0xff] }
 0x2ad   :  { %v740_v41 = vpop.f32.mrf.mxu3 }
 0x2ae   :  { %v741_v62 = vadd.f32 %v3811_v55, %v740_v41 }
 0x2b0   :  { %v915_v8 = vmul.f32 %v3977_v26, %v741_v62  ;;  %v770_v63 = vmul.f32 %v741_v62, %v741_v62 }
 0x2b2   :  { %793 = vadd.xlane.f32.xlu0 %v770_v63  ;;  %v4022_v9 = vadd.f32 %v915_v8, %v3885_v45 }
 0x2b4   :  { %v1009_v43 = vpack.c.bf16 %v4022_v9, %v4019_v7 }
 0x2b5   :  { %v743_v46 = vpop.f32.mrf.mxu3 }
 0x2b6   :  { %v744_v0 = vadd.f32 %v3811_v55, %v743_v46  ;;  %1038 = vmatmul.bf16.gmra.mxu0 %v1009_v43 }
 0x2b8   :  { %v771_v47 = vmul.f32 %v744_v0, %v744_v0  ;;  %v916_v52 = vmul.f32 %v3977_v26, %v744_v0 }
 0x2ba   :  { %795 = vadd.xlane.f32.xlu1 %v771_v47  ;;  %v4031_v45 = vadd.f32 %v916_v52, %v3896_v40 }
 0x2bd   :  { %v745_v48 = vpop.f32.mrf.mxu3 }
 0x2be   :  { %v746_v2 = vadd.f32 %v3811_v55, %v745_v48 }
 0x2c0   :  { %v917_v44 = vmul.f32 %v3977_v26, %v746_v2  ;;  %v772_v20 = vmul.f32 %v746_v2, %v746_v2 }
 0x2c2   :  { %797 = vadd.xlane.f32.xlu2 %v772_v20  ;;  %v4034_v30 = vadd.f32 %v917_v44, %v3899_v54  ;;  %v3336_v44 = vld [vmem:[#allocation10 + $0x38] sm:$0xff] }
 0x2c4   :  { %v1010_v53 = vpack.c.bf16 %v4034_v30, %v4031_v45 }
 0x2c5   :  { %v748_v21 = vpop.f32.mrf.mxu3 }
 0x2c6   :  { %v749_v14 = vadd.f32 %v3811_v55, %v748_v21  ;;  %1043 = vmatmul.bf16.gmra.mxu0 %v1010_v53 }
 0x2c8   :  { %v773_v22 = vmul.f32 %v749_v14, %v749_v14  ;;  %v918_v27 = vmul.f32 %v3977_v26, %v749_v14 }
 0x2ca   :  { %799 = vadd.xlane.f32.xlu0 %v773_v22  ;;  %v4043_v54 = vadd.f32 %v918_v27, %v3907_v15  ;;  %v3337_v22 = vld [vmem:[#allocation10 + $0x30] sm:$0xff] }
 0x2cd   :  { %v750_v3 = vpop.f32.mrf.mxu3 }
 0x2ce   :  { %v751_v18 = vadd.f32 %v3811_v55, %v750_v3 }
 0x2d0   :  { %v919_v40 = vmul.f32 %v3977_v26, %v751_v18  ;;  %v774_v19 = vmul.f32 %v751_v18, %v751_v18  ;;  %v3338_v18 = vld [vmem:[#allocation10 + $0x28] sm:$0xff] }
 0x2d2   :  { %801 = vadd.xlane.f32.xlu1 %v774_v19  ;;  %v4046_v10 = vadd.f32 %v919_v40, %v3910_v42 }
 0x2d4   :  { %v1011_v35 = vpack.c.bf16 %v4046_v10, %v4043_v54 }
 0x2d5   :  { %v753_v11 = vpop.f32.mrf.mxu3 }
 0x2d6   :  { %v754_v16 = vadd.f32 %v3811_v55, %v753_v11  ;;  %1048 = vmatmul.bf16.gmra.mxu0 %v1011_v35 }
 0x2d8   :  { %v775_v17 = vmul.f32 %v754_v16, %v754_v16  ;;  %v920_v37 = vmul.f32 %v3977_v26, %v754_v16  ;;  %v3339_v16 = vld [vmem:[#allocation10 + $0x20] sm:$0xff] }
 0x2da   :  { %803 = vadd.xlane.f32.xlu2 %v775_v17  ;;  %v4055_v42 = vadd.f32 %v920_v37, %v3917_v58 }
 0x2dd   :  { %v755_v56 = vpop.f32.mrf.mxu3 }
 0x2de   :  { %v756_v25 = vadd.f32 %v3811_v55, %v755_v56 }
 0x2e0   :  { %v921_v15 = vmul.f32 %v3977_v26, %v756_v25  ;;  %v776_v4 = vmul.f32 %v756_v25, %v756_v25  ;;  %v3340_v25 = vld [vmem:[#allocation10 + $0x18] sm:$0xff] }
 0x2e2   :  { %805 = vadd.xlane.f32.xlu0 %v776_v4  ;;  %v4058_v38 = vadd.f32 %v921_v15, %v3920_v50 }
 0x2e4   :  { %v1012_v1 = vpack.c.bf16 %v4058_v38, %v4055_v42 }
 0x2e5   :  { %v758_v5 = vpop.f32.mrf.mxu3 }
 0x2e6   :  { %v759_v51 = vadd.f32 %v3811_v55, %v758_v5  ;;  %1053 = vmatmul.bf16.gmra.mxu0 %v1012_v1 }
 0x2e8   :  { %v777_v12 = vmul.f32 %v759_v51, %v759_v51  ;;  %v922_v6 = vmul.f32 %v3977_v26, %v759_v51  ;;  %v3341_v51 = vld [vmem:[#allocation10 + $0x10] sm:$0xff] }
 0x2ea   :  { %807 = vadd.xlane.f32.xlu1 %v777_v12  ;;  %v4067_v50 = vadd.f32 %v922_v6, %v3927_v60  ;;  %v3342_v6 = vld [vmem:[#allocation10 + $0x8] sm:$0xff] }
 0x2ed   :  { %v760_v13 = vpop.f32.mrf.mxu3 }
 0x2ee   :  { %v761_v31 = vadd.f32 %v3811_v55, %v760_v13 }
 0x2f0   :  { %v923_v58 = vmul.f32 %v3977_v26, %v761_v31  ;;  %v778_v32 = vmul.f32 %v761_v31, %v761_v31 }
 0x2f2   :  { %809 = vadd.xlane.f32.xlu2 %v778_v32  ;;  %v4070_v33 = vadd.f32 %v923_v58, %v3930_v61  ;;  %v4081_v61 = vld [vmem:[%s5625_s6] ss:$0 sm:$0xff] }
 0x2f4   :  { %v1013_v34 = vpack.c.bf16 %v4070_v33, %v4067_v50 }
 0x2f6   :  { %1058 = vmatmul.bf16.gmra.mxu0 %v1013_v34 }
 0x303   :  { %v1024_v41 = vpop.f32.mrf.mxu0 }
 0x304   :  { %v1025_v24 = vadd.f32 %v4074_v23, %v1024_v41  ;;  %v3343_v41 = vld [vmem:[#allocation10] sm:$0xff] }
 0x306   :  { %3167 = vtanh.f32 %v1025_v24 }
 0x30b   :  { %v1026_v55 = vpop.f32.mrf.mxu0 }
 0x30c   :  { %v3168_v62 = vpop.eup %3167  ;;  %v1027_v8 = vadd.f32 %v4074_v23, %v1026_v55 }
 0x30d   :  { %v1201_v63 = vmul.f32 %v3168_v62, %v3168_v62 }
 0x30e   :  { %3169 = vtanh.f32 %v1027_v8 }
 0x30f   :  { %v1217_v60 = vsub.f32 1.0, %v1201_v63 }
 0x311   :  { %v1233_v43 = vmul.f32 %v4081_v61, %v1217_v60 }
 0x313   :  { %v1029_v46 = vpop.f32.mrf.mxu0  ;;  %1249 = vadd.xlane.f32.xlu2 %v1233_v43 }
 0x314   :  { %v3170_v0 = vpop.eup %3169  ;;  %v1030_v47 = vadd.f32 %v4074_v23, %v1029_v46 }
 0x315   :  { %v1080_v48 = vpack.c.bf16 %v3170_v0, %v3168_v62  ;;  %v1202_v52 = vmul.f32 %v3170_v0, %v3170_v0 }
 0x316   :  { %3171 = vtanh.f32 %v1030_v47 }
 0x317   :  { %1096 = vmatmul.bf16.vlgmr.msrb.gmra.mxu1 %v1080_v48  ;;  %v1218_v2 = vsub.f32 1.0, %v1202_v52 }
 0x318   :  { %2584 = vmatpush.bf16.msrb.mxu1 %v3336_v44 }
 0x319   :  { %v1234_v20 = vmul.f32 %v4081_v61, %v1218_v2 }
 0x31b   :  { %v1031_v53 = vpop.f32.mrf.mxu0  ;;  %1251 = vadd.xlane.f32.xlu0 %v1234_v20 }
 0x31c   :  { %v3172_v21 = vpop.eup %3171  ;;  %v1032_v14 = vadd.f32 %v4074_v23, %v1031_v53  ;;  %2585 = vmatpush.bf16.msrb.mxu1 %v3337_v22 }
 0x31d   :  { %v1203_v3 = vmul.f32 %v3172_v21, %v3172_v21 }
 0x31e   :  { %3173 = vtanh.f32 %v1032_v14 }
 0x31f   :  { %v1219_v27 = vsub.f32 1.0, %v1203_v3 }
 0x320   :  { %2586 = vmatpush.bf16.msrb.mxu1 %v3338_v18 }
 0x321   :  { %v1235_v40 = vmul.f32 %v4081_v61, %v1219_v27 }
 0x323   :  { %v1034_v19 = vpop.f32.mrf.mxu0  ;;  %1253 = vadd.xlane.f32.xlu1 %v1235_v40 }
 0x324   :  { %v3174_v35 = vpop.eup %3173  ;;  %v1035_v11 = vadd.f32 %v4074_v23, %v1034_v19  ;;  %2587 = vmatpush.bf16.msrb.mxu1 %v3339_v16 }
 0x325   :  { %v1081_v17 = vpack.c.bf16 %v3174_v35, %v3172_v21  ;;  %v1204_v56 = vmul.f32 %v3174_v35, %v3174_v35 }
 0x326   :  { %3175 = vtanh.f32 %v1035_v11 }
 0x327   :  { %1101 = vmatmul.bf16.gmra.mxu1 %v1081_v17  ;;  %v1220_v37 = vsub.f32 1.0, %v1204_v56 }
 0x328   :  { %2588 = vmatpush.bf16.msrb.mxu1 %v3340_v25 }
 0x329   :  { %v1236_v15 = vmul.f32 %v4081_v61, %v1220_v37 }
 0x32b   :  { %v1036_v4 = vpop.f32.mrf.mxu0  ;;  %1255 = vadd.xlane.f32.xlu2 %v1236_v15 }
 0x32c   :  { %v3176_v1 = vpop.eup %3175  ;;  %v1037_v5 = vadd.f32 %v4074_v23, %v1036_v4  ;;  %2589 = vmatpush.bf16.msrb.mxu1 %v3341_v51 }
 0x32d   :  { %v1205_v12 = vmul.f32 %v3176_v1, %v3176_v1 }
 0x32e   :  { %3177 = vtanh.f32 %v1037_v5 }
 0x32f   :  { %v1221_v13 = vsub.f32 1.0, %v1205_v12 }
 0x330   :  { %2590 = vmatpush.bf16.msrb.mxu1 %v3342_v6 }
 0x331   :  { %v1237_v31 = vmul.f32 %v4081_v61, %v1221_v13 }
 0x333   :  { %v1039_v58 = vpop.f32.mrf.mxu0  ;;  %1257 = vadd.xlane.f32.xlu0 %v1237_v31 }
 0x334   :  { %v3178_v32 = vpop.eup %3177  ;;  %v1040_v34 = vadd.f32 %v4074_v23, %v1039_v58  ;;  %2591 = vmatpush.bf16.msrb.mxu1 %v3343_v41 }
 0x335   :  { %v1082_v24 = vpack.c.bf16 %v3178_v32, %v3176_v1  ;;  %v1206_v55 = vmul.f32 %v3178_v32, %v3178_v32 }
 0x336   :  { %3179 = vtanh.f32 %v1040_v34 }
 0x337   :  { %1106 = vmatmul.bf16.gmra.mxu1 %v1082_v24  ;;  %v1222_v62 = vsub.f32 1.0, %v1206_v55 }
 0x339   :  { %v1238_v8 = vmul.f32 %v4081_v61, %v1222_v62 }
 0x33b   :  { %v1041_v63 = vpop.f32.mrf.mxu0  ;;  %1259 = vadd.xlane.f32.xlu1 %v1238_v8 }
 0x33c   :  { %v3180_v60 = vpop.eup %3179  ;;  %v1042_v43 = vadd.f32 %v4074_v23, %v1041_v63 }
 0x33d   :  { %v1207_v46 = vmul.f32 %v3180_v60, %v3180_v60 }
 0x33e   :  { %3181 = vtanh.f32 %v1042_v43 }
 0x33f   :  { %v1223_v0 = vsub.f32 1.0, %v1207_v46 }
 0x341   :  { %v1239_v47 = vmul.f32 %v4081_v61, %v1223_v0 }
 0x343   :  { %v1044_v48 = vpop.f32.mrf.mxu0  ;;  %1261 = vadd.xlane.f32.xlu2 %v1239_v47 }
 0x344   :  { %v3182_v52 = vpop.eup %3181  ;;  %v1045_v2 = vadd.f32 %v4074_v23, %v1044_v48 }
 0x345   :  { %v1083_v44 = vpack.c.bf16 %v3182_v52, %v3180_v60  ;;  %v1208_v20 = vmul.f32 %v3182_v52, %v3182_v52 }
 0x346   :  { %3183 = vtanh.f32 %v1045_v2 }
 0x347   :  { %1111 = vmatmul.bf16.gmra.mxu1 %v1083_v44  ;;  %v1224_v53 = vsub.f32 1.0, %v1208_v20 }
 0x349   :  { %v1240_v21 = vmul.f32 %v4081_v61, %v1224_v53 }
 0x34b   :  { %v1046_v14 = vpop.f32.mrf.mxu0  ;;  %1263 = vadd.xlane.f32.xlu0 %v1240_v21 }
 0x34c   :  { %v3184_v22 = vpop.eup %3183  ;;  %v1047_v3 = vadd.f32 %v4074_v23, %v1046_v14 }
 0x34d   :  { %v1209_v27 = vmul.f32 %v3184_v22, %v3184_v22 }
 0x34e   :  { %3185 = vtanh.f32 %v1047_v3 }
 0x34f   :  { %v1225_v18 = vsub.f32 1.0, %v1209_v27 }
 0x351   :  { %v1241_v40 = vmul.f32 %v4081_v61, %v1225_v18 }
 0x353   :  { %v1049_v19 = vpop.f32.mrf.mxu0  ;;  %1265 = vadd.xlane.f32.xlu1 %v1241_v40 }
 0x354   :  { %v3186_v35 = vpop.eup %3185  ;;  %v1050_v11 = vadd.f32 %v4074_v23, %v1049_v19 }
 0x355   :  { %v1084_v16 = vpack.c.bf16 %v3186_v35, %v3184_v22  ;;  %v1210_v17 = vmul.f32 %v3186_v35, %v3186_v35 }
 0x356   :  { %3187 = vtanh.f32 %v1050_v11 }
 0x357   :  { %1116 = vmatmul.bf16.gmra.mxu1 %v1084_v16  ;;  %v1226_v56 = vsub.f32 1.0, %v1210_v17  ;;  %v4119_v16 = vstv %s3045_s16 }
 0x359   :  { %v1242_v37 = vmul.f32 %v4081_v61, %v1226_v56 }
 0x35b   :  { %v1051_v25 = vpop.f32.mrf.mxu0  ;;  %1267 = vadd.xlane.f32.xlu2 %v1242_v37 }
 0x35c   :  { %v3188_v15 = vpop.eup %3187  ;;  %v1052_v4 = vadd.f32 %v4074_v23, %v1051_v25 }
 0x35d   :  { %v1211_v1 = vmul.f32 %v3188_v15, %v3188_v15 }
 0x35e   :  { %3189 = vtanh.f32 %v1052_v4 }
 0x35f   :  { %v1227_v5 = vsub.f32 1.0, %v1211_v1 }
 0x361   :  { %v1243_v51 = vmul.f32 %v4081_v61, %v1227_v5 }
 0x363   :  { %v1054_v12 = vpop.f32.mrf.mxu0  ;;  %1269 = vadd.xlane.f32.xlu0 %v1243_v51 }
 0x364   :  { %v3190_v13 = vpop.eup %3189  ;;  %v1055_v6 = vadd.f32 %v4074_v23, %v1054_v12 }
 0x365   :  { %v1085_v31 = vpack.c.bf16 %v3190_v13, %v3188_v15  ;;  %v1212_v58 = vmul.f32 %v3190_v13, %v3190_v13 }
 0x366   :  { %3191 = vtanh.f32 %v1055_v6 }
 0x367   :  { %1121 = vmatmul.bf16.gmra.mxu1 %v1085_v31  ;;  %v1228_v32 = vsub.f32 1.0, %v1212_v58 }
 0x369   :  { %v1244_v34 = vmul.f32 %v4081_v61, %v1228_v32 }
 0x36b   :  { %v1056_v41 = vpop.f32.mrf.mxu0  ;;  %1271 = vadd.xlane.f32.xlu1 %v1244_v34 }
 0x36c   :  { %v3192_v24 = vpop.eup %3191  ;;  %v1057_v55 = vadd.f32 %v4074_v23, %v1056_v41 }
 0x36d   :  { %v1213_v62 = vmul.f32 %v3192_v24, %v3192_v24 }
 0x36e   :  { %3193 = vtanh.f32 %v1057_v55 }
 0x36f   :  { %v1229_v8 = vsub.f32 1.0, %v1213_v62 }
 0x371   :  { %v1245_v63 = vmul.f32 %v4081_v61, %v1229_v8 }
 0x373   :  { %v1059_v60 = vpop.f32.mrf.mxu0  ;;  %1273 = vadd.xlane.f32.xlu2 %v1245_v63 }
 0x374   :  { %v3194_v43 = vpop.eup %3193  ;;  %v1060_v46 = vadd.f32 %v4074_v23, %v1059_v60 }
 0x375   :  { %v1086_v0 = vpack.c.bf16 %v3194_v43, %v3192_v24  ;;  %v1214_v47 = vmul.f32 %v3194_v43, %v3194_v43 }
 0x376   :  { %3195 = vtanh.f32 %v1060_v46 }
 0x377   :  { %1126 = vmatmul.bf16.gmra.mxu1 %v1086_v0  ;;  %v1230_v48 = vsub.f32 1.0, %v1214_v47 }
 0x379   :  { %v1246_v52 = vmul.f32 %v4081_v61, %v1230_v48 }
 0x37b   :  { %v1061_v2 = vpop.f32.mrf.mxu0  ;;  %1275 = vadd.xlane.f32.xlu0 %v1246_v52 }
 0x37c   :  { %v3196_v44 = vpop.eup %3195  ;;  %v1062_v20 = vadd.f32 %v4074_v23, %v1061_v2  ;;  %v4116_v23 = vld [vmem:[%s5624_s5] ss:$0 sm:$0xff] }
 0x37d   :  { %v1215_v53 = vmul.f32 %v3196_v44, %v3196_v44 }
 0x37e   :  { %3197 = vtanh.f32 %v1062_v20 }
 0x37f   :  { %v1231_v21 = vsub.f32 1.0, %v1215_v53 }
 0x381   :  { %v1247_v14 = vmul.f32 %v4081_v61, %v1231_v21 }
 0x383   :  { %1277 = vadd.xlane.f32.xlu1 %v1247_v14 }
 0x384   :  { %v3198_v22 = vpop.eup %3197 }
 0x385   :  { %v1087_v3 = vpack.c.bf16 %v3198_v22, %v3196_v44  ;;  %v1216_v27 = vmul.f32 %v3198_v22, %v3198_v22 }
 0x387   :  { %1131 = vmatmul.bf16.gmra.mxu1 %v1087_v3  ;;  %v1232_v18 = vsub.f32 1.0, %v1216_v27 }
 0x389   :  { %v1248_v40 = vmul.f32 %v4081_v61, %v1232_v18 }
 0x38b   :  { %1279 = vadd.xlane.f32.xlu2 %v1248_v40 }
 0x394   :  { %v1097_v19 = vpop.f32.mrf.mxu1 }
 0x395   :  { %v1098_v35 = vadd.f32 %v4116_v23, %v1097_v19 }
 0x397   :  { %v1137_v11 = vmul.f32 %v1098_v35, %v1098_v35  ;;  %v1282_v56 = vmul.f32 %v4119_v16, %v1098_v35 }
 0x399   :  { %1153 = vadd.xlane.f32.xlu1 %v1137_v11  ;;  %v4125_v4 = vadd.f32 %v1282_v56, %v3983_v29 }
 0x39c   :  { %v1099_v17 = vpop.f32.mrf.mxu1 }
 0x39d   :  { %v1100_v37 = vadd.f32 %v4116_v23, %v1099_v17 }
 0x39f   :  { %v1283_v25 = vmul.f32 %v4119_v16, %v1100_v37  ;;  %v1138_v15 = vmul.f32 %v1100_v37, %v1100_v37 }
 0x3a1   :  { %v4128_v1 = vadd.f32 %v1283_v25, %v3986_v49  ;;  %1155 = vadd.xlane.f32.xlu2 %v1138_v15 }
 0x3a3   :  { %v1380_v5 = vpack.c.bf16 %v4128_v1, %v4125_v4 }
 0x3a4   :  { %v1102_v51 = vpop.f32.mrf.mxu1 }
 0x3a5   :  { %v1103_v12 = vadd.f32 %v4116_v23, %v1102_v51  ;;  %1397 = vmatmul.bf16.vlgmr.msra.gmra.mxu2 %v1380_v5  ;;  %v4183_v5 = vpop.xlane.xlu2 %503 }
 0x3a6   :  { %5642 = vst [vmem:[#allocation22_spill] sm:$0xff] %v4183_v5 }
 0x3a7   :  { %v1139_v13 = vmul.f32 %v1103_v12, %v1103_v12  ;;  %v1284_v31 = vmul.f32 %v4119_v16, %v1103_v12 }
 0x3a9   :  { %1157 = vadd.xlane.f32.xlu0 %v1139_v13  ;;  %v4137_v49 = vadd.f32 %v1284_v31, %v3995_v57 }
 0x3ac   :  { %v1104_v6 = vpop.f32.mrf.mxu1 }
 0x3ad   :  { %v1105_v58 = vadd.f32 %v4116_v23, %v1104_v6  ;;  %v4190_v31 = vpop.xlane.xlu2 %521 }
 0x3ae   :  { %5644 = vst [vmem:[#allocation24_spill] sm:$0xff] %v4190_v31 }
 0x3af   :  { %v1285_v29 = vmul.f32 %v4119_v16, %v1105_v58  ;;  %v1140_v32 = vmul.f32 %v1105_v58, %v1105_v58 }
 0x3b1   :  { %v4140_v34 = vadd.f32 %v1285_v29, %v3998_v36  ;;  %1159 = vadd.xlane.f32.xlu1 %v1140_v32 }
 0x3b3   :  { %v1381_v41 = vpack.c.bf16 %v4140_v34, %v4137_v49 }
 0x3b4   :  { %v1107_v24 = vpop.f32.mrf.mxu1 }
 0x3b5   :  { %v1108_v55 = vadd.f32 %v4116_v23, %v1107_v24  ;;  %1402 = vmatmul.bf16.gmra.mxu2 %v1381_v41 }
 0x3b7   :  { %v1141_v62 = vmul.f32 %v1108_v55, %v1108_v55  ;;  %v1286_v63 = vmul.f32 %v4119_v16, %v1108_v55 }
 0x3b9   :  { %1161 = vadd.xlane.f32.xlu2 %v1141_v62  ;;  %v4149_v36 = vadd.f32 %v1286_v63, %v4007_v39 }
 0x3bc   :  { %v1109_v8 = vpop.f32.mrf.mxu1 }
 0x3bd   :  { %v1110_v60 = vadd.f32 %v4116_v23, %v1109_v8  ;;  %v4203_v8 = vpop.xlane.xlu2 %509 }
 0x3be   :  { %5646 = vst [vmem:[#allocation26_spill] sm:$0xff] %v4203_v8 }
 0x3bf   :  { %v1287_v57 = vmul.f32 %v4119_v16, %v1110_v60  ;;  %v1142_v43 = vmul.f32 %v1110_v60, %v1110_v60 }
 0x3c1   :  { %v4152_v46 = vadd.f32 %v1287_v57, %v4010_v28  ;;  %1163 = vadd.xlane.f32.xlu0 %v1142_v43 }
 0x3c3   :  { %v1382_v0 = vpack.c.bf16 %v4152_v46, %v4149_v36 }
 0x3c4   :  { %v1112_v47 = vpop.f32.mrf.mxu1 }
 0x3c5   :  { %v1113_v48 = vadd.f32 %v4116_v23, %v1112_v47  ;;  %1407 = vmatmul.bf16.gmra.mxu2 %v1382_v0 }
 0x3c7   :  { %v1143_v52 = vmul.f32 %v1113_v48, %v1113_v48  ;;  %v1288_v44 = vmul.f32 %v4119_v16, %v1113_v48  ;;  %v4216_v48 = vpop.xlane.xlu2 %527 }
 0x3c9   :  { %1165 = vadd.xlane.f32.xlu1 %v1143_v52  ;;  %v4161_v28 = vadd.f32 %v1288_v44, %v4019_v7 }
 0x3cc   :  { %v1114_v2 = vpop.f32.mrf.mxu1 }
 0x3cd   :  { %v1115_v20 = vadd.f32 %v4116_v23, %v1114_v2  ;;  %v4220_v2 = vpop.xlane.xlu0 %517 }
 0x3ce   :  { %5647 = vst [vmem:[#allocation27_spill] sm:$0xff] %v4220_v2 }
 0x3cf   :  { %v1289_v39 = vmul.f32 %v4119_v16, %v1115_v20  ;;  %v1144_v53 = vmul.f32 %v1115_v20, %v1115_v20 }
 0x3d1   :  { %v4164_v21 = vadd.f32 %v1289_v39, %v4022_v9  ;;  %1167 = vadd.xlane.f32.xlu2 %v1144_v53  ;;  %v4172_v9 = vpop.xlane.xlu1 %501 }
 0x3d2   :  { %5641 = vst [vmem:[#allocation21_spill] sm:$0xff] %v4172_v9 }
 0x3d3   :  { %v1383_v14 = vpack.c.bf16 %v4164_v21, %v4161_v28 }
 0x3d4   :  { %v1117_v22 = vpop.f32.mrf.mxu1 }
 0x3d5   :  { %v1118_v3 = vadd.f32 %v4116_v23, %v1117_v22  ;;  %1412 = vmatmul.bf16.gmra.mxu2 %v1383_v14  ;;  %v4225_v14 = vpop.xlane.xlu2 %515 }
 0x3d6   :  { %5649 = vst [vmem:[#allocation29_spill] sm:$0xff] %v4225_v14 }
 0x3d7   :  { %v1145_v27 = vmul.f32 %v1118_v3, %v1118_v3  ;;  %v1290_v40 = vmul.f32 %v4119_v16, %v1118_v3 }
 0x3d9   :  { %1169 = vadd.xlane.f32.xlu0 %v1145_v27  ;;  %v4175_v11 = vadd.f32 %v1290_v40, %v4031_v45  ;;  %v4185_v51 = vpop.xlane.xlu1 %519  ;;  %v4231_v27 = vpop.xlane.xlu0 %505 }
 0x3da   :  { %5643 = vst [vmem:[#allocation23_spill] sm:$0xff] %v4185_v51 }
 0x3db   :  { %5650 = vst [vmem:[#allocation30_spill] sm:$0xff] %v4231_v27 }
 0x3dc   :  { %v1119_v18 = vpop.f32.mrf.mxu1 }
 0x3dd   :  { %v1120_v19 = vadd.f32 %v4116_v23, %v1119_v18 }
 0x3df   :  { %v1291_v7 = vmul.f32 %v4119_v16, %v1120_v19  ;;  %v1146_v35 = vmul.f32 %v1120_v19, %v1120_v19 }
 0x3e1   :  { %v4178_v17 = vadd.f32 %v1291_v7, %v4034_v30  ;;  %1171 = vadd.xlane.f32.xlu1 %v1146_v35  ;;  %v4198_v32 = vpop.xlane.xlu1 %507 }
 0x3e2   :  { %5645 = vst [vmem:[#allocation25_spill] sm:$0xff] %v4198_v32 }
 0x3e3   :  { %v1384_v56 = vpack.c.bf16 %v4178_v17, %v4175_v11 }
 0x3e4   :  { %v1122_v37 = vpop.f32.mrf.mxu1 }
 0x3e5   :  { %v1123_v25 = vadd.f32 %v4116_v23, %v1122_v37  ;;  %1417 = vmatmul.bf16.gmra.mxu2 %v1384_v56  ;;  %v4244_v37 = vpop.xlane.xlu2 %418 }
 0x3e7   :  { %v1147_v15 = vmul.f32 %v1123_v25, %v1123_v25  ;;  %v1292_v45 = vmul.f32 %v4119_v16, %v1123_v25  ;;  %v4246_v25 = vpop.xlane.xlu0 %523 }
 0x3e8   :  { %5651 = vst [vmem:[#allocation31_spill] sm:$0xff] %v4246_v25 }
 0x3e9   :  { %1173 = vadd.xlane.f32.xlu2 %v1147_v15  ;;  %v4193_v58 = vadd.f32 %v1292_v45, %v4043_v54  ;;  %v4205_v63 = vpop.xlane.xlu1 %525  ;;  %v4254_v45 = vld [vmem:[#allocation6 + $0x3] ss:$0 sm:$0xff] }
 0x3ec   :  { %v1124_v12 = vpop.f32.mrf.mxu1 }
 0x3ed   :  { %v1125_v30 = vadd.f32 %v4116_v23, %v1124_v12  ;;  %v4250_v12 = vpop.xlane.xlu2 %410 }
 0x3ef   :  { %v1293_v13 = vmul.f32 %v4119_v16, %v1125_v30  ;;  %v1148_v6 = vmul.f32 %v1125_v30, %v1125_v30 }
 0x3f1   :  { %v4196_v29 = vadd.f32 %v1293_v13, %v4046_v10  ;;  %1175 = vadd.xlane.f32.xlu0 %v1148_v6  ;;  %v4222_v20 = vpop.xlane.xlu1 %513 }
 0x3f2   :  { %5648 = vst [vmem:[#allocation28_spill] sm:$0xff] %v4222_v20 }
 0x3f3   :  { %v1385_v41 = vpack.c.bf16 %v4196_v29, %v4193_v58 }
 0x3f4   :  { %v1127_v24 = vpop.f32.mrf.mxu1 }
 0x3f5   :  { %v1128_v55 = vadd.f32 %v4116_v23, %v1127_v24  ;;  %1422 = vmatmul.bf16.gmra.mxu2 %v1385_v41  ;;  %v4260_v6 = vpop.xlane.xlu2 %424 }
 0x3f6   :  { %5655 = vst [vmem:[#allocation35_spill] sm:$0xff] %v4260_v6 }
 0x3f7   :  { %v1149_v62 = vmul.f32 %v1128_v55, %v1128_v55  ;;  %v1294_v10 = vmul.f32 %v4119_v16, %v1128_v55 }
 0x3f9   :  { %1177 = vadd.xlane.f32.xlu1 %v1149_v62  ;;  %v4211_v0 = vadd.f32 %v1294_v10, %v4055_v42 }
 0x3fc   :  { %v1129_v54 = vpop.f32.mrf.mxu1 }
 0x3fd   :  { %v1130_v60 = vadd.f32 %v4116_v23, %v1129_v54 }
 0x3ff   :  { %v1295_v57 = vmul.f32 %v4119_v16, %v1130_v60  ;;  %v1150_v43 = vmul.f32 %v1130_v60, %v1130_v60 }
 0x401   :  { %v4214_v47 = vadd.f32 %v1295_v57, %v4058_v38  ;;  %1179 = vadd.xlane.f32.xlu2 %v1150_v43  ;;  %v4227_v38 = vpop.xlane.xlu1 %531  ;;  %v4268_v57 = vpop.xlane.xlu2 %412 }
 0x403   :  { %v1386_v52 = vpack.c.bf16 %v4214_v47, %v4211_v0 }
 0x404   :  { %v1132_v44 = vpop.f32.mrf.mxu1 }
 0x405   :  { %v1133_v39 = vadd.f32 %v4116_v23, %v1132_v44  ;;  %1427 = vmatmul.bf16.gmra.mxu2 %v1386_v52 }
 0x407   :  { %v1151_v53 = vmul.f32 %v1133_v39, %v1133_v39  ;;  %v1296_v22 = vmul.f32 %v4119_v16, %v1133_v39 }
 0x409   :  { %1181 = vadd.xlane.f32.xlu0 %v1151_v53  ;;  %v4235_v19 = vadd.f32 %v1296_v22, %v4067_v50  ;;  %v4242_v56 = vpop.xlane.xlu1 %406  ;;  %v4252_v50 = vpop.xlane.xlu0 %511 }
 0x40a   :  { %5652 = vst [vmem:[#allocation32_spill] sm:$0xff] %v4252_v50 }
 0x40c   :  { %v1134_v42 = vpop.f32.mrf.mxu1 }
 0x40d   :  { %v1135_v3 = vadd.f32 %v4116_v23, %v1134_v42 }
 0x40f   :  { %v1297_v18 = vmul.f32 %v4119_v16, %v1135_v3  ;;  %v1152_v40 = vmul.f32 %v1135_v3, %v1135_v3 }
 0x411   :  { %v4238_v7 = vadd.f32 %v1297_v18, %v4070_v33  ;;  %1183 = vadd.xlane.f32.xlu1 %v1152_v40  ;;  %v4248_v15 = vpop.xlane.xlu1 %408  ;;  %v4258_v30 = vpop.xlane.xlu0 %529 }
 0x412   :  { %5654 = vst [vmem:[#allocation34_spill] sm:$0xff] %v4258_v30  ;;  %v4276_v40 = vpop.xlane.xlu2 %430 }
 0x413   :  { %v1387_v35 = vpack.c.bf16 %v4238_v7, %v4235_v19  ;;  %5657 = vst [vmem:[#allocation37_spill] sm:$0xff] %v4276_v40 }
 0x415   :  { %1432 = vmatmul.bf16.gmra.mxu2 %v1387_v35 }
 0x419   :  { %v4256_v33 = vpop.xlane.xlu1 %422  ;;  %v4263_v24 = vpop.xlane.xlu0 %402 }
 0x41a   :  { %5653 = vst [vmem:[#allocation33_spill] sm:$0xff] %v4256_v33 }
 0x421   :  { %v4265_v54 = vpop.xlane.xlu1 %428  ;;  %v4272_v42 = vpop.xlane.xlu0 %404 }
 0x422   :  { %5656 = vst [vmem:[#allocation36_spill] sm:$0xff] %v4265_v54 }
 0x428   :  { %v1398_v13 = vpop.f32.mrf.mxu2 }
 0x429   :  { %v1399_v41 = vadd.f32 %v4254_v45, %v1398_v13  ;;  %v4274_v18 = vpop.xlane.xlu1 %416 }
 0x42b   :  { %3199 = vtanh.f32 %v1399_v41 }
 0x430   :  { %v1400_v55 = vpop.f32.mrf.mxu2 }
 0x431   :  { %v3200_v62 = vpop.eup %3199  ;;  %v1401_v10 = vadd.f32 %v4254_v45, %v1400_v55 }
 0x432   :  { %v1575_v60 = vmul.f32 %v3200_v62, %v3200_v62 }
 0x433   :  { %3201 = vtanh.f32 %v1401_v10 }
 0x434   :  { %v1591_v43 = vsub.f32 1.0, %v1575_v60  ;;  %v4280_v60 = vpop.xlane.xlu0 %420 }
 0x435   :  { %5658 = vst [vmem:[#allocation38_spill] sm:$0xff] %v4280_v60 }
 0x436   :  { %v1607_v52 = vmul.f32 %v4081_v61, %v1591_v43 }
 0x438   :  { %v1403_v44 = vpop.f32.mrf.mxu2  ;;  %1623 = vadd.xlane.f32.xlu1 %v1607_v52  ;;  %v4282_v52 = vpop.xlane.xlu1 %877 }
 0x439   :  { %v3202_v39 = vpop.eup %3201  ;;  %v1404_v53 = vadd.f32 %v4254_v45, %v1403_v44  ;;  %5659 = vst [vmem:[#allocation39_spill] sm:$0xff] %v4282_v52 }
 0x43a   :  { %v1454_v22 = vpack.c.bf16 %v3202_v39, %v3200_v62  ;;  %v1576_v3 = vmul.f32 %v3202_v39, %v3202_v39  ;;  %v4284_v62 = vpop.xlane.xlu2 %879 }
 0x43b   :  { %3203 = vtanh.f32 %v1404_v53  ;;  %5660 = vst [vmem:[#allocation40_spill] sm:$0xff] %v4284_v62 }
 0x43c   :  { %1470 = vmatmul.bf16.vlgmr.msra.gmra.mxu3 %v1454_v22  ;;  %v1592_v35 = vsub.f32 1.0, %v1576_v3  ;;  %v4292_v31 = vpop.xlane.xlu0 %426 }
 0x43d   :  { %5663 = vst [vmem:[#allocation43_spill] sm:$0xff] %v4292_v31 }
 0x43e   :  { %v1608_v13 = vmul.f32 %v4081_v61, %v1592_v35 }
 0x440   :  { %v1405_v41 = vpop.f32.mrf.mxu2  ;;  %1625 = vadd.xlane.f32.xlu2 %v1608_v13  ;;  %v4288_v30 = vpop.xlane.xlu1 %883 }
 0x441   :  { %v3204_v55 = vpop.eup %3203  ;;  %v1406_v10 = vadd.f32 %v4254_v45, %v1405_v41  ;;  %5661 = vst [vmem:[#allocation41_spill] sm:$0xff] %v4288_v30 }
 0x442   :  { %v1577_v43 = vmul.f32 %v3204_v55, %v3204_v55  ;;  %v4290_v41 = vpop.xlane.xlu2 %885 }
 0x443   :  { %3205 = vtanh.f32 %v1406_v10  ;;  %5662 = vst [vmem:[#allocation42_spill] sm:$0xff] %v4290_v41 }
 0x444   :  { %v1593_v44 = vsub.f32 1.0, %v1577_v43 }
 0x446   :  { %v1609_v39 = vmul.f32 %v4081_v61, %v1593_v44 }
 0x448   :  { %v1408_v53 = vpop.f32.mrf.mxu2  ;;  %1627 = vadd.xlane.f32.xlu0 %v1609_v39 }
 0x449   :  { %v3206_v22 = vpop.eup %3205  ;;  %v1409_v3 = vadd.f32 %v4254_v45, %v1408_v53  ;;  %v4296_v53 = vpop.xlane.xlu1 %889 }
 0x44a   :  { %v1455_v35 = vpack.c.bf16 %v3206_v22, %v3204_v55  ;;  %v1578_v13 = vmul.f32 %v3206_v22, %v3206_v22  ;;  %5664 = vst [vmem:[#allocation44_spill] sm:$0xff] %v4296_v53  ;;  %v4298_v55 = vpop.xlane.xlu2 %891 }
 0x44b   :  { %3207 = vtanh.f32 %v1409_v3  ;;  %5665 = vst [vmem:[#allocation45_spill] sm:$0xff] %v4298_v55 }
 0x44c   :  { %1475 = vmatmul.bf16.gmra.mxu3 %v1455_v35  ;;  %v1594_v25 = vsub.f32 1.0, %v1578_v13  ;;  %v4301_v35 = vpop.xlane.xlu0 %414 }
 0x44e   :  { %v1610_v10 = vmul.f32 %v4081_v61, %v1594_v25 }
 0x450   :  { %v1410_v43 = vpop.f32.mrf.mxu2  ;;  %1629 = vadd.xlane.f32.xlu1 %v1610_v10 }
 0x451   :  { %v3208_v44 = vpop.eup %3207  ;;  %v1411_v39 = vadd.f32 %v4254_v45, %v1410_v43  ;;  %v4304_v20 = vpop.xlane.xlu1 %895 }
 0x452   :  { %v1579_v51 = vmul.f32 %v3208_v44, %v3208_v44  ;;  %5666 = vst [vmem:[#allocation46_spill] sm:$0xff] %v4304_v20  ;;  %v4306_v43 = vpop.xlane.xlu2 %897 }
 0x453   :  { %3209 = vtanh.f32 %v1411_v39  ;;  %5667 = vst [vmem:[#allocation47_spill] sm:$0xff] %v4306_v43 }
 0x454   :  { %v1595_v22 = vsub.f32 1.0, %v1579_v51  ;;  %v4309_v39 = vpop.xlane.xlu0 %432 }
 0x455   :  { %5668 = vst [vmem:[#allocation48_spill] sm:$0xff] %v4309_v39 }
 0x456   :  { %v1611_v3 = vmul.f32 %v4081_v61, %v1595_v22 }
 0x458   :  { %v1413_v13 = vpop.f32.mrf.mxu2  ;;  %1631 = vadd.xlane.f32.xlu2 %v1611_v3 }
 0x459   :  { %v3210_v2 = vpop.eup %3209  ;;  %v1414_v25 = vadd.f32 %v4254_v45, %v1413_v13  ;;  %v4312_v13 = vpop.xlane.xlu1 %901 }
 0x45a   :  { %v1456_v10 = vpack.c.bf16 %v3210_v2, %v3208_v44  ;;  %v1580_v14 = vmul.f32 %v3210_v2, %v3210_v2  ;;  %v4314_v2 = vpop.xlane.xlu2 %903 }
 0x45b   :  { %3211 = vtanh.f32 %v1414_v25  ;;  %5669 = vst [vmem:[#allocation49_spill] sm:$0xff] %v4314_v2 }
 0x45c   :  { %1480 = vmatmul.bf16.gmra.mxu3 %v1456_v10  ;;  %v1596_v55 = vsub.f32 1.0, %v1580_v14  ;;  %v4317_v10 = vpop.xlane.xlu0 %875 }
 0x45d   :  { %5670 = vst [vmem:[#allocation50_spill] sm:$0xff] %v4317_v10 }
 0x45e   :  { %v1612_v51 = vmul.f32 %v4081_v61, %v1596_v55 }
 0x460   :  { %v1415_v22 = vpop.f32.mrf.mxu2  ;;  %1633 = vadd.xlane.f32.xlu0 %v1612_v51 }
 0x461   :  { %v3212_v53 = vpop.eup %3211  ;;  %v1416_v3 = vadd.f32 %v4254_v45, %v1415_v22  ;;  %v4322_v22 = vpop.xlane.xlu1 %783 }
 0x462   :  { %v1581_v50 = vmul.f32 %v3212_v53, %v3212_v53  ;;  %v4320_v41 = vpop.xlane.xlu2 %779 }
 0x463   :  { %3213 = vtanh.f32 %v1416_v3 }
 0x464   :  { %v1597_v44 = vsub.f32 1.0, %v1581_v50  ;;  %v4325_v3 = vpop.xlane.xlu0 %881 }
 0x465   :  { %5671 = vst [vmem:[#allocation51_spill] sm:$0xff] %v4325_v3 }
 0x466   :  { %v1613_v25 = vmul.f32 %v4081_v61, %v1597_v44 }
 0x468   :  { %v1418_v14 = vpop.f32.mrf.mxu2  ;;  %1635 = vadd.xlane.f32.xlu1 %v1613_v25 }
 0x469   :  { %v3214_v55 = vpop.eup %3213  ;;  %v1419_v43 = vadd.f32 %v4254_v45, %v1418_v14 }
 0x46a   :  { %v1457_v51 = vpack.c.bf16 %v3214_v55, %v3212_v53  ;;  %v1582_v20 = vmul.f32 %v3214_v55, %v3214_v55  ;;  %v4328_v14 = vpop.xlane.xlu2 %785  ;;  %v4330_v53 = vpop.xlane.xlu1 %789 }
 0x46b   :  { %3215 = vtanh.f32 %v1419_v43 }
 0x46c   :  { %1485 = vmatmul.bf16.gmra.mxu3 %v1457_v51  ;;  %v1598_v2 = vsub.f32 1.0, %v1582_v20  ;;  %v4333_v51 = vpop.xlane.xlu0 %887 }
 0x46d   :  { %5672 = vst [vmem:[#allocation52_spill] sm:$0xff] %v4333_v51 }
 0x46e   :  { %v1614_v50 = vmul.f32 %v4081_v61, %v1598_v2 }
 0x470   :  { %v1420_v44 = vpop.f32.mrf.mxu2  ;;  %1637 = vadd.xlane.f32.xlu2 %v1614_v50 }
 0x471   :  { %v3216_v8 = vpop.eup %3215  ;;  %v1421_v25 = vadd.f32 %v4254_v45, %v1420_v44 }
 0x472   :  { %v1583_v30 = vmul.f32 %v3216_v8, %v3216_v8  ;;  %v4336_v27 = vpop.xlane.xlu2 %791  ;;  %v4338_v44 = vpop.xlane.xlu1 %795 }
 0x473   :  { %3217 = vtanh.f32 %v1421_v25 }
 0x474   :  { %v1599_v55 = vsub.f32 1.0, %v1583_v30  ;;  %v4341_v25 = vpop.xlane.xlu0 %893 }
 0x475   :  { %5673 = vst [vmem:[#allocation53_spill] sm:$0xff] %v4341_v25 }
 0x476   :  { %v1615_v43 = vmul.f32 %v4081_v61, %v1599_v55 }
 0x478   :  { %v1423_v20 = vpop.f32.mrf.mxu2  ;;  %1639 = vadd.xlane.f32.xlu0 %v1615_v43 }
 0x479   :  { %v3218_v2 = vpop.eup %3217  ;;  %v1424_v32 = vadd.f32 %v4254_v45, %v1423_v20 }
 0x47a   :  { %v1458_v50 = vpack.c.bf16 %v3218_v2, %v3216_v8  ;;  %v1584_v3 = vmul.f32 %v3218_v2, %v3218_v2  ;;  %v4344_v20 = vpop.xlane.xlu2 %797  ;;  %v4346_v8 = vpop.xlane.xlu1 %801 }
 0x47b   :  { %3219 = vtanh.f32 %v1424_v32  ;;  %5674 = vst [vmem:[#allocation54_spill] sm:$0xff] %v4346_v8 }
 0x47c   :  { %1490 = vmatmul.bf16.gmra.mxu3 %v1458_v50  ;;  %v1600_v62 = vsub.f32 1.0, %v1584_v3  ;;  %v4349_v50 = vpop.xlane.xlu0 %899 }
 0x47e   :  { %v1616_v30 = vmul.f32 %v4081_v61, %v1600_v62 }
 0x480   :  { %v1425_v55 = vpop.f32.mrf.mxu2  ;;  %1641 = vadd.xlane.f32.xlu1 %v1616_v30 }
 0x481   :  { %v3220_v51 = vpop.eup %3219  ;;  %v1426_v43 = vadd.f32 %v4254_v45, %v1425_v55 }
 0x482   :  { %v1585_v5 = vmul.f32 %v3220_v51, %v3220_v51  ;;  %v4352_v9 = vpop.xlane.xlu2 %803  ;;  %v4354_v55 = vpop.xlane.xlu1 %807 }
 0x483   :  { %3221 = vtanh.f32 %v1426_v43  ;;  %5675 = vst [vmem:[#allocation55_spill] sm:$0xff] %v4352_v9 }
 0x484   :  { %v1601_v2 = vsub.f32 1.0, %v1585_v5  ;;  %5676 = vst [vmem:[#allocation56_spill] sm:$0xff] %v4354_v55  ;;  %v4357_v43 = vpop.xlane.xlu0 %905 }
 0x486   :  { %v1617_v32 = vmul.f32 %v4081_v61, %v1601_v2 }
 0x488   :  { %v1428_v3 = vpop.f32.mrf.mxu2  ;;  %1643 = vadd.xlane.f32.xlu2 %v1617_v32 }
 0x489   :  { %v3222_v62 = vpop.eup %3221  ;;  %v1429_v25 = vadd.f32 %v4254_v45, %v1428_v3 }
 0x48a   :  { %v1459_v30 = vpack.c.bf16 %v3222_v62, %v3220_v51  ;;  %v1586_v52 = vmul.f32 %v3222_v62, %v3222_v62  ;;  %v4360_v3 = vpop.xlane.xlu2 %809  ;;  %v4362_v51 = vpop.xlane.xlu1 %1253 }
 0x48b   :  { %3223 = vtanh.f32 %v1429_v25  ;;  %5677 = vst [vmem:[#allocation57_spill] sm:$0xff] %v4360_v3 }
 0x48c   :  { %1495 = vmatmul.bf16.gmra.mxu3 %v1459_v30  ;;  %v1602_v10 = vsub.f32 1.0, %v1586_v52  ;;  %5678 = vst [vmem:[#allocation58_spill] sm:$0xff] %v4362_v51  ;;  %v4365_v30 = vpop.xlane.xlu0 %781 }
 0x48e   :  { %v1618_v5 = vmul.f32 %v4081_v61, %v1602_v10 }
 0x490   :  { %v1430_v2 = vpop.f32.mrf.mxu2  ;;  %1645 = vadd.xlane.f32.xlu0 %v1618_v5 }
 0x491   :  { %v3224_v39 = vpop.eup %3223  ;;  %v1431_v32 = vadd.f32 %v4254_v45, %v1430_v2 }
 0x492   :  { %v1587_v40 = vmul.f32 %v3224_v39, %v3224_v39  ;;  %v4368_v31 = vpop.xlane.xlu2 %1249  ;;  %v4370_v2 = vpop.xlane.xlu1 %1259 }
 0x493   :  { %3225 = vtanh.f32 %v1431_v32  ;;  %5679 = vst [vmem:[#allocation59_spill] sm:$0xff] %v4368_v31 }
 0x494   :  { %v1603_v62 = vsub.f32 1.0, %v1587_v40  ;;  %5680 = vst [vmem:[#allocation60_spill] sm:$0xff] %v4370_v2  ;;  %v4373_v32 = vpop.xlane.xlu0 %787 }
 0x496   :  { %v1619_v25 = vmul.f32 %v4081_v61, %v1603_v62 }
 0x498   :  { %v1433_v52 = vpop.f32.mrf.mxu2  ;;  %1647 = vadd.xlane.f32.xlu1 %v1619_v25 }
 0x499   :  { %v3226_v10 = vpop.eup %3225  ;;  %v1434_v55 = vadd.f32 %v4254_v45, %v1433_v52 }
 0x49a   :  { %v1460_v5 = vpack.c.bf16 %v3226_v10, %v3224_v39  ;;  %v1588_v54 = vmul.f32 %v3226_v10, %v3226_v10  ;;  %v4376_v52 = vpop.xlane.xlu2 %1255  ;;  %v4378_v39 = vpop.xlane.xlu1 %1265 }
 0x49b   :  { %3227 = vtanh.f32 %v1434_v55  ;;  %5681 = vst [vmem:[#allocation61_spill] sm:$0xff] %v4376_v52 }
 0x49c   :  { %1500 = vmatmul.bf16.gmra.mxu3 %v1460_v5  ;;  %v1604_v51 = vsub.f32 1.0, %v1588_v54  ;;  %5682 = vst [vmem:[#allocation62_spill] sm:$0xff] %v4378_v39  ;;  %v4381_v5 = vpop.xlane.xlu0 %793 }
 0x49e   :  { %v1620_v40 = vmul.f32 %v4081_v61, %v1604_v51 }
 0x4a0   :  { %v1435_v62 = vpop.f32.mrf.mxu2  ;;  %1649 = vadd.xlane.f32.xlu2 %v1620_v40 }
 0x4a1   :  { %v3228_v3 = vpop.eup %3227  ;;  %v1436_v25 = vadd.f32 %v4254_v45, %v1435_v62 }
 0x4a2   :  { %v1589_v9 = vmul.f32 %v3228_v3, %v3228_v3  ;;  %v4383_v31 = vpop.xlane.xlu2 %1261  ;;  %v4385_v40 = vpop.xlane.xlu1 %1271 }
 0x4a3   :  { %3229 = vtanh.f32 %v1436_v25  ;;  %5683 = vst [vmem:[#allocation63_spill] sm:$0xff] %v4383_v31 }
 0x4a4   :  { %v1605_v10 = vsub.f32 1.0, %v1589_v9  ;;  %5684 = vst [vmem:[#allocation64_spill] sm:$0xff] %v4385_v40  ;;  %v4388_v52 = vpop.xlane.xlu0 %799 }
 0x4a5   :  { %5685 = vst [vmem:[#allocation65_spill] sm:$0xff] %v4388_v52 }
 0x4a6   :  { %v1621_v55 = vmul.f32 %v4081_v61, %v1605_v10 }
 0x4a8   :  { %1651 = vadd.xlane.f32.xlu0 %v1621_v55 }
 0x4a9   :  { %v3230_v54 = vpop.eup %3229 }
 0x4aa   :  { %v1461_v51 = vpack.c.bf16 %v3230_v54, %v3228_v3  ;;  %v1590_v2 = vmul.f32 %v3230_v54, %v3230_v54  ;;  %v4390_v9 = vpop.xlane.xlu2 %1267  ;;  %v4392_v25 = vpop.xlane.xlu1 %1277 }
 0x4ab   :  { %5686 = vst [vmem:[#allocation66_spill] sm:$0xff] %v4390_v9 }
 0x4ac   :  { %1505 = vmatmul.bf16.gmra.mxu3 %v1461_v51  ;;  %v1606_v45 = vsub.f32 1.0, %v1590_v2  ;;  %5687 = vst [vmem:[#allocation67_spill] sm:$0xff] %v4392_v25  ;;  %v4394_v10 = vpop.xlane.xlu0 %805  ;;  %v4409_v25 = vstv %s3046_s18 }
 0x4ad   :  { %5688 = vst [vmem:[#allocation68_spill] sm:$0xff] %v4394_v10 }
 0x4ae   :  { %v1622_v62 = vmul.f32 %v4081_v61, %v1606_v45 }
 0x4b0   :  { %1653 = vadd.xlane.f32.xlu1 %v1622_v62 }
 0x4b2   :  { %v4396_v55 = vpop.xlane.xlu2 %1273  ;;  %v4398_v3 = vpop.xlane.xlu1 %1153 }
 0x4b4   :  { %v4400_v54 = vpop.xlane.xlu0 %1251 }
 0x4b5   :  { %5689 = vst [vmem:[#allocation69_spill] sm:$0xff] %v4400_v54 }
 0x4ba   :  { %v4403_v45 = vpop.xlane.xlu2 %1279  ;;  %v4405_v62 = vpop.xlane.xlu1 %1159 }
 0x4bc   :  { %v4407_v40 = vpop.xlane.xlu0 %1257 }
 0x4bd   :  { %5690 = vst [vmem:[#allocation70_spill] sm:$0xff] %v4407_v40 }
 0x4bf   :  { %v1471_v51 = vpop.f32.mrf.mxu3 }
 0x4c0   :  { %v1472_v2 = vadd.f32 %v4116_v23, %v1471_v51 }
 0x4c2   :  { %v1511_v61 = vmul.f32 %v1472_v2, %v1472_v2  ;;  %v1656_v39 = vmul.f32 %v4409_v25, %v1472_v2  ;;  %v4414_v6 = vpop.xlane.xlu2 %1155  ;;  %v4416_v51 = vpop.xlane.xlu1 %1165 }
 0x4c4   :  { %1527 = vadd.xlane.f32.xlu0 %v1511_v61  ;;  %v4419_v8 = vadd.f32 %v1656_v39, %v4125_v4  ;;  %v4426_v2 = vpop.xlane.xlu0 %1263 }
 0x4c5   :  { %5693 = vst [vmem:[#allocation73_spill] sm:$0xff] %v4426_v2 }
 0x4c6   :  { %5691 = vst [vmem:[#allocation71_spill] sm:$0xff] %v4419_v8 }
 0x4c7   :  { %v1473_v9 = vpop.f32.mrf.mxu3 }
 0x4c8   :  { %v1474_v31 = vadd.f32 %v4116_v23, %v1473_v9 }
 0x4ca   :  { %v1657_v54 = vmul.f32 %v4409_v25, %v1474_v31  ;;  %v1512_v10 = vmul.f32 %v1474_v31, %v1474_v31  ;;  %v4429_v52 = vpop.xlane.xlu2 %1161  ;;  %v4431_v60 = vpop.xlane.xlu1 %1171 }
 0x4cb   :  { %5694 = vst [vmem:[#allocation74_spill] sm:$0xff] %v4431_v60 }
 0x4cc   :  { %v4422_v61 = vadd.f32 %v1657_v54, %v4128_v1  ;;  %1529 = vadd.xlane.f32.xlu1 %v1512_v10  ;;  %v4433_v4 = vpop.xlane.xlu0 %1269 }
 0x4cd   :  { %5695 = vst [vmem:[#allocation75_spill] sm:$0xff] %v4433_v4 }
 0x4ce   :  { %5692 = vst [vmem:[#allocation72_spill] sm:$0xff] %v4422_v61  ;;  %v1754_v40 = vpack.c.bf16 %v4422_v61, %v4419_v8 }
 0x4cf   :  { %v1476_v9 = vpop.f32.mrf.mxu3 }
 0x4d0   :  { %v1477_v33 = vadd.f32 %v4116_v23, %v1476_v9  ;;  %1771 = vmatmul.bf16.vlgmr.msra.gmra.mxu0 %v1754_v40 }
 0x4d2   :  { %v1513_v31 = vmul.f32 %v1477_v33, %v1477_v33  ;;  %v1658_v39 = vmul.f32 %v4409_v25, %v1477_v33  ;;  %v4438_v61 = vpop.xlane.xlu2 %1167  ;;  %v4440_v9 = vpop.xlane.xlu1 %1177 }
 0x4d3   :  { %5696 = vst [vmem:[#allocation76_spill] sm:$0xff] %v4440_v9 }
 0x4d4   :  { %1531 = vadd.xlane.f32.xlu2 %v1513_v31  ;;  %v4443_v40 = vadd.f32 %v1658_v39, %v4137_v49  ;;  %v4450_v33 = vpop.xlane.xlu0 %1275 }
 0x4d6   :  { %5697 = vst [vmem:[#allocation77_spill] sm:$0xff] %v4443_v40 }
 0x4d7   :  { %v1478_v1 = vpop.f32.mrf.mxu3 }
 0x4d8   :  { %v1479_v10 = vadd.f32 %v4116_v23, %v1478_v1 }
 0x4da   :  { %v1659_v54 = vmul.f32 %v4409_v25, %v1479_v10  ;;  %v1514_v2 = vmul.f32 %v1479_v10, %v1479_v10  ;;  %v4453_v60 = vpop.xlane.xlu2 %1173  ;;  %v4455_v9 = vpop.xlane.xlu1 %1183 }
 0x4db   :  { %5699 = vst [vmem:[#allocation79_spill] sm:$0xff] %v4453_v60 }
 0x4dc   :  { %v4446_v8 = vadd.f32 %v1659_v54, %v4140_v34  ;;  %1533 = vadd.xlane.f32.xlu0 %v1514_v2  ;;  %5700 = vst [vmem:[#allocation80_spill] sm:$0xff] %v4455_v9  ;;  %v4457_v49 = vpop.xlane.xlu0 %1157 }
 0x4de   :  { %5698 = vst [vmem:[#allocation78_spill] sm:$0xff] %v4446_v8  ;;  %v1755_v31 = vpack.c.bf16 %v4446_v8, %v4443_v40 }
 0x4df   :  { %v1481_v1 = vpop.f32.mrf.mxu3 }
 0x4e0   :  { %v1482_v4 = vadd.f32 %v4116_v23, %v1481_v1  ;;  %1776 = vmatmul.bf16.gmra.mxu0 %v1755_v31 }
 0x4e2   :  { %v1515_v10 = vmul.f32 %v1482_v4, %v1482_v4  ;;  %v1660_v2 = vmul.f32 %v4409_v25, %v1482_v4  ;;  %v4462_v40 = vpop.xlane.xlu2 %1179  ;;  %v4464_v1 = vpop.xlane.xlu1 %1623 }
 0x4e3   :  { %5701 = vst [vmem:[#allocation81_spill] sm:$0xff] %v4462_v40 }
 0x4e4   :  { %1535 = vadd.xlane.f32.xlu1 %v1515_v10  ;;  %5702 = vst [vmem:[#allocation82_spill] sm:$0xff] %v4464_v1  ;;  %v4467_v31 = vadd.f32 %v1660_v2, %v4149_v36  ;;  %v4474_v4 = vpop.xlane.xlu0 %1163 }
 0x4e6   :  { %5703 = vst [vmem:[#allocation83_spill] sm:$0xff] %v4467_v31 }
 0x4e7   :  { %v1483_v34 = vpop.f32.mrf.mxu3 }
 0x4e8   :  { %v1484_v39 = vadd.f32 %v4116_v23, %v1483_v34 }
 0x4ea   :  { %v1661_v54 = vmul.f32 %v4409_v25, %v1484_v39  ;;  %v1516_v8 = vmul.f32 %v1484_v39, %v1484_v39  ;;  %v4477_v40 = vpop.xlane.xlu2 %1625  ;;  %v4479_v1 = vpop.xlane.xlu1 %1629 }
 0x4eb   :  { %5705 = vst [vmem:[#allocation85_spill] sm:$0xff] %v4477_v40 }
 0x4ec   :  { %v4470_v9 = vadd.f32 %v1661_v54, %v4152_v46  ;;  %1537 = vadd.xlane.f32.xlu2 %v1516_v8  ;;  %5706 = vst [vmem:[#allocation86_spill] sm:$0xff] %v4479_v1  ;;  %v4481_v36 = vpop.xlane.xlu0 %1169 }
 0x4ee   :  { %5704 = vst [vmem:[#allocation84_spill] sm:$0xff] %v4470_v9  ;;  %v1756_v10 = vpack.c.bf16 %v4470_v9, %v4467_v31 }
 0x4ef   :  { %v1486_v34 = vpop.f32.mrf.mxu3 }
 0x4f0   :  { %v1487_v60 = vadd.f32 %v4116_v23, %v1486_v34  ;;  %1781 = vmatmul.bf16.gmra.mxu0 %v1756_v10 }
 0x4f2   :  { %v1517_v39 = vmul.f32 %v1487_v60, %v1487_v60  ;;  %v1662_v8 = vmul.f32 %v4409_v25, %v1487_v60  ;;  %v4486_v31 = vpop.xlane.xlu2 %1631  ;;  %v4488_v34 = vpop.xlane.xlu1 %1635 }
 0x4f3   :  { %5707 = vst [vmem:[#allocation87_spill] sm:$0xff] %v4486_v31 }
 0x4f4   :  { %1539 = vadd.xlane.f32.xlu0 %v1517_v39  ;;  %5708 = vst [vmem:[#allocation88_spill] sm:$0xff] %v4488_v34  ;;  %v4491_v10 = vadd.f32 %v1662_v8, %v4161_v28  ;;  %v4498_v60 = vpop.xlane.xlu0 %1175  ;;  %v984_v28 = vmul.f32 %v3977_v26, %v4349_v50  ;;  %v610_v8 = vmul.f32 %v3814_v59, %v4205_v63 }
 0x4f6   :  { %5709 = vst [vmem:[#allocation89_spill] sm:$0xff] %v4491_v10 }
 0x4f7   :  { %v1488_v46 = vpop.f32.mrf.mxu3 }
 0x4f8   :  { %v1489_v2 = vadd.f32 %v4116_v23, %v1488_v46 }
 0x4fa   :  { %v1663_v54 = vmul.f32 %v4409_v25, %v1489_v2  ;;  %v1518_v9 = vmul.f32 %v1489_v2, %v1489_v2  ;;  %v4501_v31 = vpop.xlane.xlu2 %1637  ;;  %v4503_v34 = vpop.xlane.xlu1 %1641 }
 0x4fb   :  { %5711 = vst [vmem:[#allocation91_spill] sm:$0xff] %v4501_v31 }
 0x4fc   :  { %v4494_v1 = vadd.f32 %v1663_v54, %v4164_v21  ;;  %1541 = vadd.xlane.f32.xlu1 %v1518_v9  ;;  %5712 = vst [vmem:[#allocation92_spill] sm:$0xff] %v4503_v34  ;;  %v4507_v21 = vpop.xlane.xlu0 %1181  ;;  %v1358_v54 = vmul.f32 %v4119_v16, %v4396_v55 }
 0x4fd   :  { %5713 = vst [vmem:[#allocation93_spill] sm:$0xff] %v4507_v21 }
 0x4fe   :  { %5710 = vst [vmem:[#allocation90_spill] sm:$0xff] %v4494_v1  ;;  %v1757_v39 = vpack.c.bf16 %v4494_v1, %v4491_v10  ;;  %v1000_v1 = vadd.f32 %v984_v28, %v610_v8 }
 0x4ff   :  { %v1491_v46 = vpop.f32.mrf.mxu3 }
 0x500   :  { %v1492_v40 = vadd.f32 %v4116_v23, %v1491_v46  ;;  %1786 = vmatmul.bf16.gmra.mxu0 %v1757_v39  ;;  %v1374_v31 = vadd.f32 %v1358_v54, %v1000_v1 }
 0x502   :  { %v1519_v2 = vmul.f32 %v1492_v40, %v1492_v40  ;;  %v1664_v39 = vmul.f32 %v4409_v25, %v1492_v40  ;;  %v4516_v34 = vpop.xlane.xlu2 %1643  ;;  %v985_v40 = vmul.f32 %v3977_v26, %v4312_v13 }
 0x504   :  { %1543 = vadd.xlane.f32.xlu2 %v1519_v2  ;;  %v4519_v21 = vadd.f32 %v1664_v39, %v4175_v11  ;;  %v4531_v8 = vpop.xlane.xlu0 %1627  ;;  %v611_v11 = vmul.f32 %v3814_v59, %v4216_v48 }
 0x506   :  { %v1001_v54 = vadd.f32 %v985_v40, %v611_v11  ;;  %v987_v11 = vmul.f32 %v3977_v26, %v4357_v43 }
 0x507   :  { %v1493_v9 = vpop.f32.mrf.mxu3 }
 0x508   :  { %v1494_v46 = vadd.f32 %v4116_v23, %v1493_v9 }
 0x50a   :  { %v1665_v10 = vmul.f32 %v4409_v25, %v1494_v46  ;;  %v1520_v2 = vmul.f32 %v1494_v46, %v1494_v46 }
 0x50b   :  { %v1648_v50 = vpop.xlane.xlu1 %1647 }
 0x50c   :  { %v4522_v63 = vadd.f32 %v1665_v10, %v4178_v17  ;;  %v1732_v55 = vmul.f32 %v4409_v25, %v1648_v50  ;;  %1545 = vadd.xlane.f32.xlu0 %v1520_v2  ;;  %v1359_v17 = vmul.f32 %v4119_v16, %v4450_v33  ;;  %v4541_v50 = vpop.xlane.xlu0 %1633 }
 0x50e   :  { %v4527_v28 = vadd.f32 %v1732_v55, %v1374_v31  ;;  %v1758_v9 = vpack.c.bf16 %v4522_v63, %v4519_v21  ;;  %v1375_v31 = vadd.f32 %v1359_v17, %v1001_v54 }
 0x50f   :  { %v1496_v1 = vpop.f32.mrf.mxu3 }
 0x510   :  { %5714 = vst [vmem:[#allocation94_spill] sm:$0xff] %v4527_v28  ;;  %v1497_v10 = vadd.f32 %v4116_v23, %v1496_v1  ;;  %1791 = vmatmul.bf16.gmra.mxu0 %v1758_v9 }
 0x512   :  { %v1521_v39 = vmul.f32 %v1497_v10, %v1497_v10  ;;  %v1666_v48 = vmul.f32 %v4409_v25, %v1497_v10 }
 0x513   :  { %v1650_v13 = vpop.xlane.xlu2 %1649 }
 0x514   :  { %v1733_v46 = vmul.f32 %v4409_v25, %v1650_v13  ;;  %1547 = vadd.xlane.f32.xlu1 %v1521_v39  ;;  %v4547_v40 = vadd.f32 %v1666_v48, %v4193_v58  ;;  %v4556_v54 = vpop.xlane.xlu0 %1639  ;;  %v613_v39 = vmul.f32 %v3814_v59, %v4227_v38  ;;  %v1361_v58 = vmul.f32 %v4119_v16, %v4403_v45 }
 0x516   :  { %v4539_v2 = vadd.f32 %v1733_v46, %v1375_v31 }
 0x517   :  { %v1498_v55 = vpop.f32.mrf.mxu3 }
 0x518   :  { %v1499_v28 = vadd.f32 %v4116_v23, %v1498_v55 }
 0x51a   :  { %v1667_v33 = vmul.f32 %v4409_v25, %v1499_v28  ;;  %v1522_v1 = vmul.f32 %v1499_v28, %v1499_v28 }
 0x51c   :  { %v4550_v9 = vadd.f32 %v1667_v33, %v4196_v29  ;;  %1549 = vadd.xlane.f32.xlu2 %v1522_v1  ;;  %v1003_v29 = vadd.f32 %v987_v11, %v613_v39  ;;  %v4566_v48 = vpop.xlane.xlu0 %1645 }
 0x51e   :  { %v1759_v17 = vpack.c.bf16 %v4550_v9, %v4547_v40  ;;  %v1377_v46 = vadd.f32 %v1361_v58, %v1003_v29  ;;  %v811_v58 = vmul.f32 0.5, %v4320_v41 }
 0x51f   :  { %v1501_v10 = vpop.f32.mrf.mxu3 }
 0x520   :  { %v1502_v28 = vadd.f32 %v4116_v23, %v1501_v10  ;;  %1796 = vmatmul.bf16.gmra.mxu0 %v1759_v17 }
 0x522   :  { %v1523_v13 = vmul.f32 %v1502_v28, %v1502_v28  ;;  %v1668_v38 = vmul.f32 %v4409_v25, %v1502_v28 }
 0x523   :  { %v1654_v31 = vpop.xlane.xlu1 %1653 }
 0x524   :  { %v1735_v43 = vmul.f32 %v4409_v25, %v1654_v31  ;;  %1551 = vadd.xlane.f32.xlu0 %v1523_v13  ;;  %v4572_v11 = vadd.f32 %v1668_v38, %v4211_v0  ;;  %v4580_v29 = vpop.xlane.xlu0 %1651  ;;  %v434_v31 = vmul.f32 0.5, %v4263_v24  ;;  %v1185_v0 = vmul.f32 0.5, %v4398_v3 }
 0x525   :  { %v435_v3 = vmul.f32 0.5, %v4272_v42 }
 0x526   :  { %v4564_v55 = vadd.f32 %v1735_v43, %v1377_v46  ;;  %v566_v43 = vmul.f32 %v3814_v59, %v434_v31 }
 0x527   :  { %v1503_v33 = vpop.f32.mrf.mxu3  ;;  %v567_v42 = vmul.f32 %v3814_v59, %v435_v3 }
 0x528   :  { %v1504_v1 = vadd.f32 %v4116_v23, %v1503_v33  ;;  %v1314_v33 = vmul.f32 %v4119_v16, %v1185_v0 }
 0x52a   :  { %v1669_v45 = vmul.f32 %v4409_v25, %v1504_v1  ;;  %v1524_v10 = vmul.f32 %v1504_v1, %v1504_v1 }
 0x52c   :  { %v4575_v17 = vadd.f32 %v1669_v45, %v4214_v47  ;;  %1553 = vadd.xlane.f32.xlu1 %v1524_v10  ;;  %v940_v47 = vmul.f32 %v3977_v26, %v811_v58  ;;  %v812_v45 = vmul.f32 0.5, %v4365_v30  ;;  %v1186_v58 = vmul.f32 0.5, %v4414_v6 }
 0x52e   :  { %v1760_v39 = vpack.c.bf16 %v4575_v17, %v4572_v11  ;;  %v956_v38 = vadd.f32 %v940_v47, %v566_v43  ;;  %v941_v47 = vmul.f32 %v3977_v26, %v812_v45  ;;  %v1315_v6 = vmul.f32 %v4119_v16, %v1186_v58 }
 0x52f   :  { %v1506_v28 = vpop.f32.mrf.mxu3  ;;  %v1187_v45 = vmul.f32 0.5, %v4457_v49  ;;  %v1188_v49 = vmul.f32 0.5, %v4405_v62 }
 0x530   :  { %v1507_v13 = vadd.f32 %v4116_v23, %v1506_v28  ;;  %1801 = vmatmul.bf16.gmra.mxu0 %v1760_v39  ;;  %v1330_v28 = vadd.f32 %v1314_v33, %v956_v38  ;;  %v957_v38 = vadd.f32 %v941_v47, %v567_v42  ;;  %v4621_v42 = vld [vmem:[#allocation6 + $0x4] ss:$0 sm:$0xff] }
 0x532   :  { %v1525_v46 = vmul.f32 %v1507_v13, %v1507_v13  ;;  %v1670_v10 = vmul.f32 %v4409_v25, %v1507_v13 }
 0x534   :  { %1555 = vadd.xlane.f32.xlu2 %v1525_v46  ;;  %v4597_v43 = vadd.f32 %v1670_v10, %v4235_v19  ;;  %v436_v19 = vmul.f32 0.5, %v4242_v56  ;;  %v437_v56 = vmul.f32 0.5, %v4248_v15 }
 0x536   :  { %v568_v3 = vmul.f32 %v3814_v59, %v436_v19  ;;  %v815_v19 = vmul.f32 0.5, %v4373_v32 }
 0x537   :  { %v1508_v41 = vpop.f32.mrf.mxu3  ;;  %v1528_v1 = vpop.xlane.xlu0 %1527 }
 0x538   :  { %v1509_v39 = vadd.f32 %v4116_v23, %v1508_v41  ;;  %v1559_v24 = vmul.f32 0.5, %v1528_v1  ;;  %v813_v41 = vmul.f32 0.5, %v4322_v22  ;;  %v814_v22 = vmul.f32 0.5, %v4328_v14 }
 0x53a   :  { %v1671_v46 = vmul.f32 %v4409_v25, %v1509_v39  ;;  %v1688_v31 = vmul.f32 %v4409_v25, %v1559_v24  ;;  %v1526_v0 = vmul.f32 %v1509_v39, %v1509_v39  ;;  %v942_v39 = vmul.f32 %v3977_v26, %v813_v41 }
 0x53b   :  { %v1317_v41 = vmul.f32 %v4119_v16, %v1188_v49  ;;  %v816_v49 = vmul.f32 0.5, %v4330_v53 }
 0x53c   :  { %v4600_v30 = vadd.f32 %v1671_v46, %v4238_v7  ;;  %v4602_v23 = vadd.f32 %v1688_v31, %v1330_v28  ;;  %1557 = vadd.xlane.f32.xlu0 %v1526_v0  ;;  %v1331_v7 = vadd.f32 %v1315_v6, %v957_v38  ;;  %v1316_v28 = vmul.f32 %v4119_v16, %v1187_v45 }
 0x53d   :  { %v958_v46 = vadd.f32 %v942_v39, %v568_v3  ;;  %v943_v6 = vmul.f32 %v3977_v26, %v814_v22  ;;  %v569_v38 = vmul.f32 %v3814_v59, %v437_v56  ;;  %v944_v3 = vmul.f32 %v3977_v26, %v815_v19 }
 0x53e   :  { %v1761_v13 = vpack.c.bf16 %v4600_v30, %v4597_v43 }
 0x53f   :  { %v1530_v33 = vpop.xlane.xlu1 %1529  ;;  %v1332_v0 = vadd.f32 %v1316_v28, %v958_v46  ;;  %v959_v15 = vadd.f32 %v943_v6, %v569_v38  ;;  %v439_v6 = vmul.f32 0.5, %v4268_v57  ;;  %v1190_v38 = vmul.f32 0.5, %v4474_v4 }
 0x540   :  { %v1560_v1 = vmul.f32 0.5, %v1530_v33  ;;  %1806 = vmatmul.bf16.gmra.mxu0 %v1761_v13 }
 0x541   :  { %v1333_v45 = vadd.f32 %v1317_v41, %v959_v15  ;;  %v945_v15 = vmul.f32 %v3977_v26, %v816_v49  ;;  %v571_v57 = vmul.f32 %v3814_v59, %v439_v6  ;;  %v1319_v4 = vmul.f32 %v4119_v16, %v1190_v38 }
 0x542   :  { %v1689_v10 = vmul.f32 %v4409_v25, %v1560_v1 }
 0x544   :  { %v4613_v24 = vadd.f32 %v1689_v10, %v1331_v7  ;;  %v438_v7 = vmul.f32 0.5, %v4250_v12  ;;  %v1189_v10 = vmul.f32 0.5, %v4429_v52 }
 0x546   :  { %v570_v22 = vmul.f32 %v3814_v59, %v438_v7 }
 0x547   :  { %v1532_v58 = vpop.xlane.xlu2 %1531 }
 0x548   :  { %v1561_v31 = vmul.f32 0.5, %v1532_v58  ;;  %v960_v12 = vadd.f32 %v944_v3, %v570_v22  ;;  %v961_v3 = vadd.f32 %v945_v15, %v571_v57 }
 0x54a   :  { %v1690_v47 = vmul.f32 %v4409_v25, %v1561_v31  ;;  %v1318_v31 = vmul.f32 %v4119_v16, %v1189_v10 }
 0x54c   :  { %v4624_v13 = vadd.f32 %v1690_v47, %v1332_v0 }
 0x54d   :  { %v1772_v33 = vpop.f32.mrf.mxu0 }
 0x54e   :  { %v1773_v14 = vadd.f32 %v4621_v42, %v1772_v33  ;;  %v1334_v33 = vadd.f32 %v1318_v31, %v960_v12 }
 0x54f   :  { %v1534_v1 = vpop.xlane.xlu0 %1533 }
 0x550   :  { %3231 = vtanh.f32 %v1773_v14  ;;  %v1562_v62 = vmul.f32 0.5, %v1534_v1  ;;  %v4646_v14 = vld [vmem:[%s5625_s6] ss:$0 sm:$0xff] }
 0x552   :  { %v1691_v39 = vmul.f32 %v4409_v25, %v1562_v62 }
 0x554   :  { %v4634_v28 = vadd.f32 %v1691_v39, %v1333_v45 }
 0x555   :  { %v1774_v58 = vpop.f32.mrf.mxu0 }
 0x556   :  { %v3232_v46 = vpop.eup %3231  ;;  %v1775_v32 = vadd.f32 %v4621_v42, %v1774_v58  ;;  %v817_v58 = vmul.f32 0.5, %v4336_v27 }
 0x557   :  { %v1536_v56 = vpop.xlane.xlu1 %1535  ;;  %v1949_v0 = vmul.f32 %v3232_v46, %v3232_v46 }
 0x558   :  { %3233 = vtanh.f32 %v1775_v32  ;;  %v1563_v52 = vmul.f32 0.5, %v1536_v56  ;;  %v440_v32 = vmul.f32 0.5, %v4301_v35  ;;  %v1335_v56 = vadd.f32 %v1319_v4, %v961_v3 }
 0x559   :  { %v1965_v47 = vsub.f32 1.0, %v1949_v0  ;;  %v1191_v0 = vmul.f32 0.5, %v4416_v51  ;;  %v1192_v4 = vmul.f32 0.5, %v4438_v61 }
 0x55a   :  { %v1692_v41 = vmul.f32 %v4409_v25, %v1563_v52  ;;  %v572_v6 = vmul.f32 %v3814_v59, %v440_v32 }
 0x55b   :  { %v1981_v1 = vmul.f32 %v4646_v14, %v1965_v47 }
 0x55c   :  { %v4650_v53 = vadd.f32 %v1692_v41, %v1334_v33  ;;  %v1320_v33 = vmul.f32 %v4119_v16, %v1191_v0  ;;  %v819_v0 = vmul.f32 0.5, %v4338_v44 }
 0x55d   :  { %v1777_v19 = vpop.f32.mrf.mxu0  ;;  %1997 = vadd.xlane.f32.xlu0 %v1981_v1  ;;  %v818_v1 = vmul.f32 0.5, %v4381_v5 }
 0x55e   :  { %v3234_v62 = vpop.eup %3233  ;;  %v1778_v7 = vadd.f32 %v4621_v42, %v1777_v19 }
 0x55f   :  { %v1828_v45 = vpack.c.bf16 %v3234_v62, %v3232_v46  ;;  %v1538_v10 = vpop.xlane.xlu2 %1537  ;;  %v1950_v39 = vmul.f32 %v3234_v62, %v3234_v62  ;;  %v946_v46 = vmul.f32 %v3977_v26, %v817_v58  ;;  %v441_v62 = vmul.f32 0.5, %v4274_v18 }
 0x560   :  { %3235 = vtanh.f32 %v1778_v7  ;;  %v1564_v22 = vmul.f32 0.5, %v1538_v10  ;;  %v947_v10 = vmul.f32 %v3977_v26, %v818_v1 }
 0x561   :  { %1844 = vmatmul.bf16.vlgmr.msra.gmra.mxu1 %v1828_v45  ;;  %v1966_v31 = vsub.f32 1.0, %v1950_v39  ;;  %v962_v51 = vadd.f32 %v946_v46, %v572_v6  ;;  %v573_v5 = vmul.f32 %v3814_v59, %v441_v62  ;;  %v442_v46 = vmul.f32 0.5, %v4244_v37 }
 0x562   :  { %v1693_v12 = vmul.f32 %v4409_v25, %v1564_v22  ;;  %v1321_v22 = vmul.f32 %v4119_v16, %v1192_v4  ;;  %v1193_v6 = vmul.f32 0.5, %v4481_v36  ;;  %v820_v62 = vmul.f32 0.5, %v4344_v20 }
 0x563   :  { %v1982_v49 = vmul.f32 %v4646_v14, %v1966_v31  ;;  %v1336_v57 = vadd.f32 %v1320_v33, %v962_v51  ;;  %v574_v51 = vmul.f32 %v3814_v59, %v442_v46 }
 0x564   :  { %v4661_v52 = vadd.f32 %v1693_v12, %v1335_v56  ;;  %v963_v56 = vadd.f32 %v947_v10, %v573_v5  ;;  %v1322_v1 = vmul.f32 %v4119_v16, %v1193_v6  ;;  %v5717_v6 = vld [vmem:[#allocation65_spill] sm:$0xff] }
 0x565   :  { %v1779_v47 = vpop.f32.mrf.mxu0  ;;  %1999 = vadd.xlane.f32.xlu1 %v1982_v49 }
 0x566   :  { %v3236_v27 = vpop.eup %3235  ;;  %v1780_v35 = vadd.f32 %v4621_v42, %v1779_v47  ;;  %v1337_v47 = vadd.f32 %v1321_v22, %v963_v56 }
 0x567   :  { %v1540_v38 = vpop.xlane.xlu0 %1539  ;;  %v1951_v41 = vmul.f32 %v3236_v27, %v3236_v27 }
 0x568   :  { %3237 = vtanh.f32 %v1780_v35  ;;  %v1565_v15 = vmul.f32 0.5, %v1540_v38  ;;  %v948_v38 = vmul.f32 %v3977_v26, %v819_v0 }
 0x569   :  { %v1967_v19 = vsub.f32 1.0, %v1951_v41 }
 0x56a   :  { %v1694_v7 = vmul.f32 %v4409_v25, %v1565_v15  ;;  %v964_v36 = vadd.f32 %v948_v38, %v574_v51 }
 0x56b   :  { %v1983_v45 = vmul.f32 %v4646_v14, %v1967_v19 }
 0x56c   :  { %v4672_v39 = vadd.f32 %v1694_v7, %v1336_v57  ;;  %v5715_v7 = vld [vmem:[#allocation38_spill] sm:$0xff]  ;;  %v1338_v10 = vadd.f32 %v1322_v1, %v964_v36 }
 0x56d   :  { %v1782_v3 = vpop.f32.mrf.mxu0  ;;  %2001 = vadd.xlane.f32.xlu2 %v1983_v45  ;;  %v443_v45 = vmul.f32 0.5, %v5715_v7 }
 0x56e   :  { %v3238_v58 = vpop.eup %3237  ;;  %v1783_v18 = vadd.f32 %v4621_v42, %v1782_v3  ;;  %v5716_v3 = vld [vmem:[#allocation74_spill] sm:$0xff] }
 0x56f   :  { %v1542_v31 = vpop.xlane.xlu1 %1541  ;;  %v1829_v32 = vpack.c.bf16 %v3238_v58, %v3236_v27  ;;  %v1952_v61 = vmul.f32 %v3238_v58, %v3238_v58  ;;  %v1194_v58 = vmul.f32 0.5, %v5716_v3  ;;  %v575_v20 = vmul.f32 %v3814_v59, %v443_v45 }
 0x570   :  { %3239 = vtanh.f32 %v1783_v18  ;;  %v1566_v12 = vmul.f32 0.5, %v1542_v31  ;;  %v949_v18 = vmul.f32 %v3977_v26, %v820_v62 }
 0x571   :  { %1849 = vmatmul.bf16.gmra.mxu1 %v1829_v32  ;;  %v1968_v49 = vsub.f32 1.0, %v1952_v61  ;;  %v1323_v56 = vmul.f32 %v4119_v16, %v1194_v58 }
 0x572   :  { %v1695_v33 = vmul.f32 %v4409_v25, %v1566_v12 }
 0x573   :  { %v1984_v35 = vmul.f32 %v4646_v14, %v1968_v49 }
 0x574   :  { %v4683_v27 = vadd.f32 %v1695_v33, %v1337_v47  ;;  %v965_v47 = vadd.f32 %v949_v18, %v575_v20  ;;  %v821_v33 = vmul.f32 0.5, %v5717_v6  ;;  %v5721_v20 = vld [vmem:[#allocation35_spill] sm:$0xff] }
 0x575   :  { %v1784_v41 = vpop.f32.mrf.mxu0  ;;  %2003 = vadd.xlane.f32.xlu0 %v1984_v35 }
 0x576   :  { %v3240_v44 = vpop.eup %3239  ;;  %v1785_v37 = vadd.f32 %v4621_v42, %v1784_v41  ;;  %v5718_v41 = vld [vmem:[#allocation33_spill] sm:$0xff]  ;;  %v1339_v1 = vadd.f32 %v1323_v56, %v965_v47  ;;  %v950_v62 = vmul.f32 %v3977_v26, %v821_v33  ;;  %v445_v56 = vmul.f32 0.5, %v5721_v20 }
 0x577   :  { %v1544_v15 = vpop.xlane.xlu2 %1543  ;;  %v1953_v19 = vmul.f32 %v3240_v44, %v3240_v44  ;;  %v444_v51 = vmul.f32 0.5, %v5718_v41 }
 0x578   :  { %3241 = vtanh.f32 %v1785_v37  ;;  %v1567_v57 = vmul.f32 0.5, %v1544_v15  ;;  %v5719_v37 = vld [vmem:[#allocation79_spill] sm:$0xff] }
 0x579   :  { %v1969_v4 = vsub.f32 1.0, %v1953_v19  ;;  %v1195_v15 = vmul.f32 0.5, %v5719_v37  ;;  %v576_v7 = vmul.f32 %v3814_v59, %v444_v51 }
 0x57a   :  { %v1696_v5 = vmul.f32 %v4409_v25, %v1567_v57 }
 0x57b   :  { %v1985_v22 = vmul.f32 %v4646_v14, %v1969_v4  ;;  %v1324_v45 = vmul.f32 %v4119_v16, %v1195_v15 }
 0x57c   :  { %v4694_v31 = vadd.f32 %v1696_v5, %v1338_v10  ;;  %v966_v5 = vadd.f32 %v950_v62, %v576_v7  ;;  %v5723_v7 = vld [vmem:[#allocation43_spill] sm:$0xff] }
 0x57d   :  { %v1787_v32 = vpop.f32.mrf.mxu0  ;;  %2005 = vadd.xlane.f32.xlu1 %v1985_v22  ;;  %v5720_v22 = vld [vmem:[#allocation54_spill] sm:$0xff] }
 0x57e   :  { %v3242_v61 = vpop.eup %3241  ;;  %v1788_v0 = vadd.f32 %v4621_v42, %v1787_v32  ;;  %v822_v18 = vmul.f32 0.5, %v5720_v22 }
 0x57f   :  { %v1546_v12 = vpop.xlane.xlu0 %1545  ;;  %v1830_v49 = vpack.c.bf16 %v3242_v61, %v3240_v44  ;;  %v1954_v46 = vmul.f32 %v3242_v61, %v3242_v61 }
 0x580   :  { %3243 = vtanh.f32 %v1788_v0  ;;  %v1568_v35 = vmul.f32 0.5, %v1546_v12  ;;  %v1340_v0 = vadd.f32 %v1324_v45, %v966_v5  ;;  %v1196_v12 = vmul.f32 0.5, %v4498_v60 }
 0x581   :  { %1854 = vmatmul.bf16.gmra.mxu1 %v1830_v49  ;;  %v1970_v38 = vsub.f32 1.0, %v1954_v46  ;;  %v951_v47 = vmul.f32 %v3977_v26, %v822_v18  ;;  %v446_v45 = vmul.f32 0.5, %v5723_v7 }
 0x582   :  { %v1697_v19 = vmul.f32 %v4409_v25, %v1568_v35  ;;  %v1325_v41 = vmul.f32 %v4119_v16, %v1196_v12 }
 0x583   :  { %v1986_v36 = vmul.f32 %v4646_v14, %v1970_v38  ;;  %v577_v38 = vmul.f32 %v3814_v59, %v445_v56  ;;  %v578_v20 = vmul.f32 %v3814_v59, %v446_v45 }
 0x584   :  { %v4705_v44 = vadd.f32 %v1697_v19, %v1339_v1  ;;  %v5722_v19 = vld [vmem:[#allocation55_spill] sm:$0xff] }
 0x585   :  { %v1789_v57 = vpop.f32.mrf.mxu0  ;;  %2007 = vadd.xlane.f32.xlu2 %v1986_v36  ;;  %v967_v15 = vadd.f32 %v951_v47, %v577_v38  ;;  %v823_v36 = vmul.f32 0.5, %v5722_v19  ;;  %v5725_v47 = vld [vmem:[#allocation68_spill] sm:$0xff] }
 0x586   :  { %v3244_v4 = vpop.eup %3243  ;;  %v1790_v10 = vadd.f32 %v4621_v42, %v1789_v57 }
 0x587   :  { %v1548_v3 = vpop.xlane.xlu1 %1547  ;;  %v1955_v58 = vmul.f32 %v3244_v4, %v3244_v4  ;;  %v952_v18 = vmul.f32 %v3977_v26, %v823_v36 }
 0x588   :  { %3245 = vtanh.f32 %v1790_v10  ;;  %v1569_v32 = vmul.f32 0.5, %v1548_v3  ;;  %v1341_v10 = vadd.f32 %v1325_v41, %v967_v15  ;;  %v5724_v3 = vld [vmem:[#allocation76_spill] sm:$0xff] }
 0x589   :  { %v1971_v61 = vsub.f32 1.0, %v1955_v58  ;;  %v1197_v58 = vmul.f32 0.5, %v5724_v3  ;;  %v5726_v41 = vld [vmem:[#allocation36_spill] sm:$0xff] }
 0x58a   :  { %v1698_v49 = vmul.f32 %v4409_v25, %v1569_v32 }
 0x58b   :  { %v1987_v46 = vmul.f32 %v4646_v14, %v1971_v61  ;;  %v1326_v56 = vmul.f32 %v4119_v16, %v1197_v58 }
 0x58c   :  { %v4716_v6 = vadd.f32 %v1698_v49, %v1340_v0 }
 0x58d   :  { %v1792_v33 = vpop.f32.mrf.mxu0  ;;  %2009 = vadd.xlane.f32.xlu0 %v1987_v46  ;;  %v968_v46 = vadd.f32 %v952_v18, %v578_v20 }
 0x58e   :  { %v3246_v35 = vpop.eup %3245  ;;  %v1793_v51 = vadd.f32 %v4621_v42, %v1792_v33  ;;  %v824_v33 = vmul.f32 0.5, %v5725_v47  ;;  %v5730_v47 = vld [vmem:[#allocation93_spill] sm:$0xff] }
 0x58f   :  { %v1550_v1 = vpop.xlane.xlu2 %1549  ;;  %v1831_v37 = vpack.c.bf16 %v3246_v35, %v3244_v4  ;;  %v1956_v60 = vmul.f32 %v3246_v35, %v3246_v35 }
 0x590   :  { %3247 = vtanh.f32 %v1793_v51  ;;  %v1570_v62 = vmul.f32 0.5, %v1550_v1  ;;  %v447_v51 = vmul.f32 0.5, %v5726_v41  ;;  %v1342_v1 = vadd.f32 %v1326_v56, %v968_v46 }
 0x591   :  { %1859 = vmatmul.bf16.gmra.mxu1 %v1831_v37  ;;  %v1972_v57 = vsub.f32 1.0, %v1956_v60  ;;  %v5727_v37 = vld [vmem:[#allocation81_spill] sm:$0xff]  ;;  %v953_v36 = vmul.f32 %v3977_v26, %v824_v33  ;;  %v1199_v33 = vmul.f32 0.5, %v5730_v47 }
 0x592   :  { %v1699_v5 = vmul.f32 %v4409_v25, %v1570_v62  ;;  %v1198_v60 = vmul.f32 0.5, %v5727_v37  ;;  %v579_v45 = vmul.f32 %v3814_v59, %v447_v51 }
 0x593   :  { %v1988_v22 = vmul.f32 %v4646_v14, %v1972_v57 }
 0x594   :  { %v4727_v4 = vadd.f32 %v1699_v5, %v1341_v10  ;;  %v1327_v10 = vmul.f32 %v4119_v16, %v1198_v60  ;;  %v969_v18 = vadd.f32 %v953_v36, %v579_v45  ;;  %v1328_v60 = vmul.f32 %v4119_v16, %v1199_v33 }
 0x595   :  { %v1794_v32 = vpop.f32.mrf.mxu0  ;;  %2011 = vadd.xlane.f32.xlu1 %v1988_v22 }
 0x596   :  { %v3248_v61 = vpop.eup %3247  ;;  %v1795_v0 = vadd.f32 %v4621_v42, %v1794_v32  ;;  %v5728_v32 = vld [vmem:[#allocation56_spill] sm:$0xff]  ;;  %v1343_v46 = vadd.f32 %v1327_v10, %v969_v18 }
 0x597   :  { %v1552_v12 = vpop.xlane.xlu0 %1551  ;;  %v1957_v49 = vmul.f32 %v3248_v61, %v3248_v61  ;;  %v825_v20 = vmul.f32 0.5, %v5728_v32  ;;  %v5733_v18 = vld [vmem:[#allocation80_spill] sm:$0xff] }
 0x598   :  { %3249 = vtanh.f32 %v1795_v0  ;;  %v1571_v35 = vmul.f32 0.5, %v1552_v12  ;;  %v5729_v12 = vld [vmem:[#allocation37_spill] sm:$0xff]  ;;  %v1200_v32 = vmul.f32 0.5, %v5733_v18 }
 0x599   :  { %v1973_v38 = vsub.f32 1.0, %v1957_v49  ;;  %v448_v49 = vmul.f32 0.5, %v5729_v12  ;;  %v954_v41 = vmul.f32 %v3977_v26, %v825_v20 }
 0x59a   :  { %v1700_v15 = vmul.f32 %v4409_v25, %v1571_v35  ;;  %v1329_v33 = vmul.f32 %v4119_v16, %v1200_v32 }
 0x59b   :  { %v1989_v19 = vmul.f32 %v4646_v14, %v1973_v38  ;;  %v580_v37 = vmul.f32 %v3814_v59, %v448_v49 }
 0x59c   :  { %v4738_v62 = vadd.f32 %v1700_v15, %v1342_v1 }
 0x59d   :  { %v1797_v57 = vpop.f32.mrf.mxu0  ;;  %2013 = vadd.xlane.f32.xlu2 %v1989_v19 }
 0x59e   :  { %v3250_v7 = vpop.eup %3249  ;;  %v1798_v3 = vadd.f32 %v4621_v42, %v1797_v57  ;;  %v970_v57 = vadd.f32 %v954_v41, %v580_v37 }
 0x59f   :  { %v1554_v58 = vpop.xlane.xlu1 %1553  ;;  %v1832_v5 = vpack.c.bf16 %v3250_v7, %v3248_v61  ;;  %v1958_v22 = vmul.f32 %v3250_v7, %v3250_v7  ;;  %v5731_v7 = vld [vmem:[#allocation57_spill] sm:$0xff] }
 0x5a0   :  { %3251 = vtanh.f32 %v1798_v3  ;;  %v1572_v56 = vmul.f32 0.5, %v1554_v58  ;;  %v826_v45 = vmul.f32 0.5, %v5731_v7  ;;  %v5732_v58 = vld [vmem:[#allocation48_spill] sm:$0xff] }
 0x5a1   :  { %1864 = vmatmul.bf16.gmra.mxu1 %v1832_v5  ;;  %v1974_v0 = vsub.f32 1.0, %v1958_v22  ;;  %v449_v5 = vmul.f32 0.5, %v5732_v58  ;;  %v1344_v22 = vadd.f32 %v1328_v60, %v970_v57 }
 0x5a2   :  { %v1701_v35 = vmul.f32 %v4409_v25, %v1572_v56 }
 0x5a3   :  { %v1990_v38 = vmul.f32 %v4646_v14, %v1974_v0  ;;  %v955_v0 = vmul.f32 %v3977_v26, %v826_v45  ;;  %v581_v47 = vmul.f32 %v3814_v59, %v449_v5 }
 0x5a4   :  { %v4749_v61 = vadd.f32 %v1701_v35, %v1343_v46 }
 0x5a5   :  { %v1799_v51 = vpop.f32.mrf.mxu0  ;;  %2015 = vadd.xlane.f32.xlu0 %v1990_v38  ;;  %v971_v37 = vadd.f32 %v955_v0, %v581_v47 }
 0x5a6   :  { %v3252_v1 = vpop.eup %3251  ;;  %v1800_v15 = vadd.f32 %v4621_v42, %v1799_v51 }
 0x5a7   :  { %v1556_v19 = vpop.xlane.xlu2 %1555  ;;  %v1959_v36 = vmul.f32 %v3252_v1, %v3252_v1 }
 0x5a8   :  { %3253 = vtanh.f32 %v1800_v15  ;;  %v1573_v10 = vmul.f32 0.5, %v1556_v19  ;;  %v1345_v19 = vadd.f32 %v1329_v33, %v971_v37  ;;  %v5735_v37 = vld [vmem:[#allocation21_spill] sm:$0xff] }
 0x5a9   :  { %v1975_v3 = vsub.f32 1.0, %v1959_v36 }
 0x5aa   :  { %v1702_v20 = vmul.f32 %v4409_v25, %v1573_v10 }
 0x5ab   :  { %v1991_v56 = vmul.f32 %v4646_v14, %v1975_v3 }
 0x5ac   :  { %v4760_v12 = vadd.f32 %v1702_v20, %v1344_v22 }
 0x5ad   :  { %v1802_v49 = vpop.f32.mrf.mxu0  ;;  %2017 = vadd.xlane.f32.xlu1 %v1991_v56 }
 0x5ae   :  { %v3254_v46 = vpop.eup %3253  ;;  %v1803_v35 = vadd.f32 %v4621_v42, %v1802_v49 }
 0x5af   :  { %v1558_v38 = vpop.xlane.xlu0 %1557  ;;  %v1833_v41 = vpack.c.bf16 %v3254_v46, %v3252_v1  ;;  %v1960_v51 = vmul.f32 %v3254_v46, %v3254_v46 }
 0x5b0   :  { %3255 = vtanh.f32 %v1803_v35  ;;  %v1574_v60 = vmul.f32 0.5, %v1558_v38  ;;  %v5734_v38 = vld [vmem:[#allocation50_spill] sm:$0xff] }
 0x5b1   :  { %1869 = vmatmul.bf16.gmra.mxu1 %v1833_v41  ;;  %v1976_v15 = vsub.f32 1.0, %v1960_v51  ;;  %v972_v41 = vmul.f32 %v3977_v26, %v5734_v38 }
 0x5b2   :  { %v1703_v36 = vmul.f32 %v4409_v25, %v1574_v60  ;;  %v598_v60 = vmul.f32 %v3814_v59, %v5735_v37 }
 0x5b3   :  { %v1992_v57 = vmul.f32 %v4646_v14, %v1976_v15  ;;  %v5736_v15 = vld [vmem:[#allocation59_spill] sm:$0xff] }
 0x5b4   :  { %v4767_v7 = vadd.f32 %v1703_v36, %v1345_v19  ;;  %v1346_v19 = vmul.f32 %v4119_v16, %v5736_v15 }
 0x5b5   :  { %v1804_v45 = vpop.f32.mrf.mxu0  ;;  %2019 = vadd.xlane.f32.xlu2 %v1992_v57  ;;  %v988_v57 = vadd.f32 %v972_v41, %v598_v60 }
 0x5b6   :  { %v3256_v10 = vpop.eup %3255  ;;  %v1805_v3 = vadd.f32 %v4621_v42, %v1804_v45  ;;  %v5737_v45 = vld [vmem:[#allocation82_spill] sm:$0xff] }
 0x5b7   :  { %v1961_v58 = vmul.f32 %v3256_v10, %v3256_v10 }
 0x5b8   :  { %3257 = vtanh.f32 %v1805_v3  ;;  %v4783_v3 = vstv %s3047_s21 }
 0x5b9   :  { %v1977_v1 = vsub.f32 1.0, %v1961_v58  ;;  %v1362_v58 = vadd.f32 %v1346_v19, %v988_v57  ;;  %v5742_v19 = vld [vmem:[#allocation40_spill] sm:$0xff] }
 0x5bb   :  { %v1993_v5 = vmul.f32 %v4646_v14, %v1977_v1 }
 0x5bd   :  { %v1807_v22 = vpop.f32.mrf.mxu0  ;;  %2021 = vadd.xlane.f32.xlu0 %v1993_v5 }
 0x5be   :  { %v3258_v18 = vpop.eup %3257  ;;  %v1808_v32 = vadd.f32 %v4621_v42, %v1807_v22 }
 0x5bf   :  { %v1834_v20 = vpack.c.bf16 %v3258_v18, %v3256_v10  ;;  %v1962_v56 = vmul.f32 %v3258_v18, %v3258_v18  ;;  %v1720_v10 = vmul.f32 %v4409_v25, %v5737_v45  ;;  %v5738_v18 = vld [vmem:[#allocation39_spill] sm:$0xff] }
 0x5c0   :  { %3259 = vtanh.f32 %v1808_v32  ;;  %v973_v32 = vmul.f32 %v3977_v26, %v5738_v18 }
 0x5c1   :  { %1874 = vmatmul.bf16.gmra.mxu1 %v1834_v20  ;;  %v1978_v0 = vsub.f32 1.0, %v1962_v56  ;;  %v1736_v20 = vadd.f32 %v1720_v10, %v1362_v58  ;;  %v5743_v10 = vld [vmem:[#allocation30_spill] sm:$0xff] }
 0x5c2   :  { %v5744_v58 = vld [vmem:[#allocation58_spill] sm:$0xff] }
 0x5c3   :  { %v1994_v49 = vmul.f32 %v4646_v14, %v1978_v0 }
 0x5c5   :  { %v1809_v46 = vpop.f32.mrf.mxu0  ;;  %2023 = vadd.xlane.f32.xlu1 %v1994_v49  ;;  %v5739_v49 = vld [vmem:[#allocation22_spill] sm:$0xff] }
 0x5c6   :  { %v3260_v47 = vpop.eup %3259  ;;  %v1810_v33 = vadd.f32 %v4621_v42, %v1809_v46  ;;  %v599_v46 = vmul.f32 %v3814_v59, %v5739_v49  ;;  %v5745_v49 = vld [vmem:[#allocation51_spill] sm:$0xff] }
 0x5c7   :  { %v1963_v35 = vmul.f32 %v3260_v47, %v3260_v47 }
 0x5c8   :  { %3261 = vtanh.f32 %v1810_v33  ;;  %v5740_v33 = vld [vmem:[#allocation69_spill] sm:$0xff]  ;;  %v989_v41 = vadd.f32 %v973_v32, %v599_v46  ;;  %v975_v46 = vmul.f32 %v3977_v26, %v5745_v49  ;;  %v5750_v49 = vld [vmem:[#allocation26_spill] sm:$0xff] }
 0x5c9   :  { %v1979_v51 = vsub.f32 1.0, %v1963_v35  ;;  %v1347_v35 = vmul.f32 %v4119_v16, %v5740_v33 }
 0x5cb   :  { %v1995_v36 = vmul.f32 %v4646_v14, %v1979_v51  ;;  %v5741_v51 = vld [vmem:[#allocation85_spill] sm:$0xff]  ;;  %v1363_v60 = vadd.f32 %v1347_v35, %v989_v41 }
 0x5cc   :  { %v1721_v37 = vmul.f32 %v4409_v25, %v5741_v51  ;;  %v5746_v41 = vld [vmem:[#allocation25_spill] sm:$0xff] }
 0x5cd   :  { %2025 = vadd.xlane.f32.xlu2 %v1995_v36  ;;  %v974_v36 = vmul.f32 %v3977_v26, %v5742_v19  ;;  %v5747_v51 = vld [vmem:[#allocation61_spill] sm:$0xff]  ;;  %v5748_v19 = vld [vmem:[#allocation86_spill] sm:$0xff] }
 0x5ce   :  { %v3262_v42 = vpop.eup %3261  ;;  %v1737_v57 = vadd.f32 %v1721_v37, %v1363_v60  ;;  %v1349_v37 = vmul.f32 %v4119_v16, %v5747_v51 }
 0x5cf   :  { %v1835_v1 = vpack.c.bf16 %v3262_v42, %v3260_v47  ;;  %v1964_v5 = vmul.f32 %v3262_v42, %v3262_v42  ;;  %v600_v42 = vmul.f32 %v3814_v59, %v5743_v10 }
 0x5d0   :  { %v1998_v22 = vpop.xlane.xlu0 %1997 }
 0x5d1   :  { %v2094_v56 = vmul.f32 %v4783_v3, %v1998_v22  ;;  %1879 = vmatmul.bf16.gmra.mxu1 %v1835_v1  ;;  %v1980_v0 = vsub.f32 1.0, %v1964_v5  ;;  %v1348_v1 = vmul.f32 %v4119_v16, %v5744_v58  ;;  %v990_v5 = vadd.f32 %v974_v36, %v600_v42  ;;  %v5749_v58 = vld [vmem:[#allocation41_spill] sm:$0xff] }
 0x5d2   :  { %v1722_v22 = vmul.f32 %v4409_v25, %v4531_v8  ;;  %v601_v8 = vmul.f32 %v3814_v59, %v5746_v41  ;;  %v1723_v36 = vmul.f32 %v4409_v25, %v5748_v19  ;;  %v5753_v41 = vld [vmem:[#allocation72_spill] sm:$0xff] }
 0x5d3   :  { %v4792_v38 = vadd.f32 %v2094_v56, %v1736_v20  ;;  %v1996_v47 = vmul.f32 %v4646_v14, %v1980_v0  ;;  %v1364_v32 = vadd.f32 %v1348_v1, %v990_v5  ;;  %v4811_v20 = vld [vmem:[%s5624_s5] ss:$0 sm:$0xff]  ;;  %v976_v1 = vmul.f32 %v3977_v26, %v5749_v58  ;;  %v5755_v58 = vld [vmem:[#allocation42_spill] sm:$0xff] }
 0x5d5   :  { %2027 = vadd.xlane.f32.xlu0 %v1996_v47  ;;  %v1738_v33 = vadd.f32 %v1722_v22, %v1364_v32 }
 0x5d8   :  { %v2000_v15 = vpop.xlane.xlu1 %1999 }
 0x5d9   :  { %v2095_v45 = vmul.f32 %v4783_v3, %v2000_v15  ;;  %v991_v15 = vadd.f32 %v975_v46, %v601_v8  ;;  %v602_v46 = vmul.f32 %v3814_v59, %v5750_v49  ;;  %v5757_v49 = vld [vmem:[#allocation60_spill] sm:$0xff] }
 0x5db   :  { %v4804_v14 = vadd.f32 %v2095_v45, %v1737_v57  ;;  %v1365_v45 = vadd.f32 %v1349_v37, %v991_v15  ;;  %v992_v37 = vadd.f32 %v976_v1, %v602_v46  ;;  %v5754_v15 = vld [vmem:[#allocation87_spill] sm:$0xff]  ;;  %v5756_v1 = vld [vmem:[#allocation32_spill] sm:$0xff]  ;;  %v1351_v46 = vmul.f32 %v4119_v16, %v5757_v49  ;;  %v5763_v49 = vld [vmem:[#allocation78_spill] sm:$0xff] }
 0x5dc   :  { %v1724_v19 = vmul.f32 %v4409_v25, %v5754_v15 }
 0x5dd   :  { %v1739_v22 = vadd.f32 %v1723_v36, %v1365_v45 }
 0x5de   :  { %v1845_v18 = vpop.f32.mrf.mxu1 }
 0x5df   :  { %v1846_v56 = vadd.f32 %v4811_v20, %v1845_v18 }
 0x5e0   :  { %v2002_v0 = vpop.xlane.xlu2 %2001 }
 0x5e1   :  { %v2096_v35 = vmul.f32 %v4783_v3, %v2002_v0  ;;  %v1885_v47 = vmul.f32 %v1846_v56, %v1846_v56  ;;  %v2030_v10 = vmul.f32 %v4783_v3, %v1846_v56 }
 0x5e3   :  { %v4821_v60 = vadd.f32 %v2096_v35, %v1738_v33  ;;  %1901 = vadd.xlane.f32.xlu2 %v1885_v47  ;;  %v5751_v33 = vld [vmem:[#allocation70_spill] sm:$0xff]  ;;  %v5752_v47 = vld [vmem:[#allocation71_spill] sm:$0xff] }
 0x5e4   :  { %v1350_v35 = vmul.f32 %v4119_v16, %v5751_v33  ;;  %v4836_v56 = vadd.f32 %v2030_v10, %v5752_v47  ;;  %v1725_v47 = vmul.f32 %v4409_v25, %v4541_v50  ;;  %v5760_v50 = vld [vmem:[#allocation63_spill] sm:$0xff] }
 0x5e6   :  { %v1847_v57 = vpop.f32.mrf.mxu1  ;;  %v1366_v45 = vadd.f32 %v1350_v35, %v992_v37 }
 0x5e7   :  { %v1848_v42 = vadd.f32 %v4811_v20, %v1847_v57 }
 0x5e8   :  { %v2004_v5 = vpop.xlane.xlu0 %2003 }
 0x5e9   :  { %v1886_v18 = vmul.f32 %v1848_v42, %v1848_v42  ;;  %v2031_v32 = vmul.f32 %v4783_v3, %v1848_v42  ;;  %v2097_v0 = vmul.f32 %v4783_v3, %v2004_v5  ;;  %v977_v5 = vmul.f32 %v3977_v26, %v5755_v58 }
 0x5eb   :  { %v4839_v8 = vadd.f32 %v2031_v32, %v5753_v41  ;;  %v4841_v51 = vadd.f32 %v2097_v0, %v1739_v22  ;;  %1903 = vadd.xlane.f32.xlu0 %v1886_v18  ;;  %v1740_v32 = vadd.f32 %v1724_v19, %v1366_v45  ;;  %v603_v0 = vmul.f32 %v3814_v59, %v5756_v1 }
 0x5ec   :  { %v1352_v1 = vmul.f32 %v4119_v16, %v5760_v50  ;;  %v5767_v50 = vld [vmem:[#allocation44_spill] sm:$0xff] }
 0x5ed   :  { %v2128_v36 = vpack.c.bf16 %v4839_v8, %v4836_v56  ;;  %v993_v35 = vadd.f32 %v977_v5, %v603_v0  ;;  %v5759_v5 = vld [vmem:[#allocation28_spill] sm:$0xff]  ;;  %v5761_v0 = vld [vmem:[#allocation77_spill] sm:$0xff] }
 0x5ee   :  { %v1850_v57 = vpop.f32.mrf.mxu1 }
 0x5ef   :  { %v1851_v42 = vadd.f32 %v4811_v20, %v1850_v57  ;;  %2145 = vmatmul.bf16.vlgmr.msrb.gmra.mxu2 %v2128_v36  ;;  %v1367_v37 = vadd.f32 %v1351_v46, %v993_v35  ;;  %v5758_v36 = vld [vmem:[#allocation52_spill] sm:$0xff] }
 0x5f0   :  { %v2006_v10 = vpop.xlane.xlu1 %2005  ;;  %v978_v57 = vmul.f32 %v3977_v26, %v5758_v36 }
 0x5f1   :  { %v2098_v22 = vmul.f32 %v4783_v3, %v2006_v10  ;;  %v1887_v18 = vmul.f32 %v1851_v42, %v1851_v42  ;;  %v2032_v15 = vmul.f32 %v4783_v3, %v1851_v42  ;;  %v1741_v10 = vadd.f32 %v1725_v47, %v1367_v37 }
 0x5f3   :  { %v4855_v33 = vadd.f32 %v2098_v22, %v1740_v32  ;;  %1905 = vadd.xlane.f32.xlu1 %v1887_v18  ;;  %v604_v18 = vmul.f32 %v3814_v59, %v5759_v5  ;;  %v4870_v42 = vadd.f32 %v2032_v15, %v5761_v0 }
 0x5f5   :  { %5762 = vst [vmem:[#allocation38_spill] sm:$0xff] %v4870_v42  ;;  %v994_v47 = vadd.f32 %v978_v57, %v604_v18  ;;  %v5768_v57 = vld [vmem:[#allocation29_spill] sm:$0xff] }
 0x5f6   :  { %v1852_v41 = vpop.f32.mrf.mxu1  ;;  %v5769_v18 = vld [vmem:[#allocation73_spill] sm:$0xff] }
 0x5f7   :  { %v1853_v19 = vadd.f32 %v4811_v20, %v1852_v41  ;;  %v5766_v41 = vld [vmem:[#allocation88_spill] sm:$0xff] }
 0x5f8   :  { %v2008_v45 = vpop.xlane.xlu2 %2007  ;;  %v1726_v37 = vmul.f32 %v4409_v25, %v5766_v41 }
 0x5f9   :  { %v2033_v58 = vmul.f32 %v4783_v3, %v1853_v19  ;;  %v2099_v32 = vmul.f32 %v4783_v3, %v2008_v45  ;;  %v1888_v22 = vmul.f32 %v1853_v19, %v1853_v19  ;;  %v1368_v45 = vadd.f32 %v1352_v1, %v994_v47  ;;  %v5770_v47 = vld [vmem:[#allocation91_spill] sm:$0xff] }
 0x5fb   :  { %v4873_v46 = vadd.f32 %v2033_v58, %v5763_v49  ;;  %v4875_v35 = vadd.f32 %v2099_v32, %v1741_v10  ;;  %1907 = vadd.xlane.f32.xlu2 %v1888_v22  ;;  %v979_v58 = vmul.f32 %v3977_v26, %v5767_v50  ;;  %v1742_v0 = vadd.f32 %v1726_v37, %v1368_v45 }
 0x5fc   :  { %v605_v22 = vmul.f32 %v3814_v59, %v5768_v57  ;;  %v1353_v49 = vmul.f32 %v4119_v16, %v5769_v18 }
 0x5fd   :  { %5764 = vst [vmem:[#allocation74_spill] sm:$0xff] %v4873_v46  ;;  %v2129_v19 = vpack.c.bf16 %v4873_v46, %v4870_v42 }
 0x5fe   :  { %5765 = vst [vmem:[#allocation65_spill] sm:$0xff] %v4875_v35  ;;  %v1855_v36 = vpop.f32.mrf.mxu1  ;;  %v995_v1 = vadd.f32 %v979_v58, %v605_v22  ;;  %v5772_v58 = vld [vmem:[#allocation27_spill] sm:$0xff]  ;;  %v5773_v22 = vld [vmem:[#allocation62_spill] sm:$0xff] }
 0x5ff   :  { %v1856_v5 = vadd.f32 %v4811_v20, %v1855_v36  ;;  %2150 = vmatmul.bf16.gmra.mxu2 %v2129_v19  ;;  %v1727_v19 = vmul.f32 %v4409_v25, %v5770_v47  ;;  %v1354_v18 = vmul.f32 %v4119_v16, %v5773_v22  ;;  %v5779_v22 = vld [vmem:[#allocation53_spill] sm:$0xff] }
 0x600   :  { %v2010_v15 = vpop.xlane.xlu0 %2009  ;;  %v1369_v46 = vadd.f32 %v1353_v49, %v995_v1  ;;  %v5774_v49 = vld [vmem:[#allocation83_spill] sm:$0xff]  ;;  %v5776_v1 = vld [vmem:[#allocation84_spill] sm:$0xff] }
 0x601   :  { %v1889_v10 = vmul.f32 %v1856_v5, %v1856_v5  ;;  %v2100_v32 = vmul.f32 %v4783_v3, %v2010_v15  ;;  %v2034_v37 = vmul.f32 %v4783_v3, %v1856_v5  ;;  %v5771_v15 = vld [vmem:[#allocation45_spill] sm:$0xff] }
 0x602   :  { %v980_v50 = vmul.f32 %v3977_v26, %v5771_v15  ;;  %v1743_v42 = vadd.f32 %v1727_v19, %v1369_v46  ;;  %v1728_v19 = vmul.f32 %v4409_v25, %v4556_v54  ;;  %v5781_v54 = vld [vmem:[#allocation66_spill] sm:$0xff] }
 0x603   :  { %v4889_v41 = vadd.f32 %v2100_v32, %v1742_v0  ;;  %1909 = vadd.xlane.f32.xlu0 %v1889_v10  ;;  %v606_v32 = vmul.f32 %v3814_v59, %v5772_v58  ;;  %v4904_v5 = vadd.f32 %v2034_v37, %v5774_v49 }
 0x605   :  { %5775 = vst [vmem:[#allocation33_spill] sm:$0xff] %v4904_v5  ;;  %v996_v46 = vadd.f32 %v980_v50, %v606_v32  ;;  %v5780_v50 = vld [vmem:[#allocation23_spill] sm:$0xff]  ;;  %v1355_v32 = vmul.f32 %v4119_v16, %v5781_v54 }
 0x606   :  { %v1857_v36 = vpop.f32.mrf.mxu1 }
 0x607   :  { %v1858_v45 = vadd.f32 %v4811_v20, %v1857_v36 }
 0x608   :  { %v2012_v57 = vpop.xlane.xlu1 %2011 }
 0x609   :  { %v1890_v35 = vmul.f32 %v1858_v45, %v1858_v45  ;;  %v2035_v0 = vmul.f32 %v4783_v3, %v1858_v45  ;;  %v2101_v10 = vmul.f32 %v4783_v3, %v2012_v57  ;;  %v1370_v57 = vadd.f32 %v1354_v18, %v996_v46  ;;  %v5782_v46 = vld [vmem:[#allocation92_spill] sm:$0xff] }
 0x60b   :  { %v4907_v47 = vadd.f32 %v2035_v0, %v5776_v1  ;;  %v4909_v36 = vadd.f32 %v2101_v10, %v1743_v42  ;;  %1911 = vadd.xlane.f32.xlu1 %v1890_v35  ;;  %v981_v0 = vmul.f32 %v3977_v26, %v5779_v22  ;;  %v1744_v49 = vadd.f32 %v1728_v19, %v1370_v57 }
 0x60c   :  { %v607_v10 = vmul.f32 %v3814_v59, %v5780_v50 }
 0x60d   :  { %5777 = vst [vmem:[#allocation79_spill] sm:$0xff] %v4907_v47  ;;  %v2130_v45 = vpack.c.bf16 %v4907_v47, %v4904_v5 }
 0x60e   :  { %5778 = vst [vmem:[#allocation54_spill] sm:$0xff] %v4909_v36  ;;  %v1860_v15 = vpop.f32.mrf.mxu1  ;;  %v997_v18 = vadd.f32 %v981_v0, %v607_v10  ;;  %v5784_v0 = vld [vmem:[#allocation24_spill] sm:$0xff]  ;;  %v5785_v10 = vld [vmem:[#allocation75_spill] sm:$0xff] }
 0x60f   :  { %v1861_v58 = vadd.f32 %v4811_v20, %v1860_v15  ;;  %2155 = vmatmul.bf16.gmra.mxu2 %v2130_v45  ;;  %v1729_v45 = vmul.f32 %v4409_v25, %v5782_v46  ;;  %v1356_v54 = vmul.f32 %v4119_v16, %v5785_v10  ;;  %v5789_v10 = vld [vmem:[#allocation47_spill] sm:$0xff] }
 0x610   :  { %v2014_v37 = vpop.xlane.xlu2 %2013  ;;  %v1371_v47 = vadd.f32 %v1355_v32, %v997_v18  ;;  %v5786_v32 = vld [vmem:[#allocation89_spill] sm:$0xff]  ;;  %v5787_v18 = vld [vmem:[#allocation90_spill] sm:$0xff] }
 0x611   :  { %v1891_v42 = vmul.f32 %v1861_v58, %v1861_v58  ;;  %v2102_v35 = vmul.f32 %v4783_v3, %v2014_v37  ;;  %v2036_v19 = vmul.f32 %v4783_v3, %v1861_v58  ;;  %v5783_v37 = vld [vmem:[#allocation46_spill] sm:$0xff] }
 0x612   :  { %v982_v22 = vmul.f32 %v3977_v26, %v5783_v37  ;;  %v1745_v5 = vadd.f32 %v1729_v45, %v1371_v47  ;;  %v1730_v45 = vmul.f32 %v4409_v25, %v4516_v34  ;;  %v5791_v34 = vld [vmem:[#allocation64_spill] sm:$0xff] }
 0x613   :  { %v4923_v1 = vadd.f32 %v2102_v35, %v1744_v49  ;;  %1913 = vadd.xlane.f32.xlu2 %v1891_v42  ;;  %v608_v35 = vmul.f32 %v3814_v59, %v5784_v0  ;;  %v4938_v58 = vadd.f32 %v2036_v19, %v5786_v32 }
 0x615   :  { %v998_v47 = vadd.f32 %v982_v22, %v608_v35  ;;  %v5790_v22 = vld [vmem:[#allocation31_spill] sm:$0xff]  ;;  %v1357_v35 = vmul.f32 %v4119_v16, %v5791_v34 }
 0x616   :  { %v1862_v15 = vpop.f32.mrf.mxu1 }
 0x617   :  { %v1863_v57 = vadd.f32 %v4811_v20, %v1862_v15 }
 0x618   :  { %v2016_v50 = vpop.xlane.xlu0 %2015 }
 0x619   :  { %v1892_v36 = vmul.f32 %v1863_v57, %v1863_v57  ;;  %v2037_v49 = vmul.f32 %v4783_v3, %v1863_v57  ;;  %v2103_v42 = vmul.f32 %v4783_v3, %v2016_v50  ;;  %v1372_v50 = vadd.f32 %v1356_v54, %v998_v47 }
 0x61a   :  { %v1731_v47 = vmul.f32 %v4409_v25, %v4566_v48 }
 0x61b   :  { %v4941_v46 = vadd.f32 %v2037_v49, %v5787_v18  ;;  %v4943_v15 = vadd.f32 %v2103_v42, %v1745_v5  ;;  %1915 = vadd.xlane.f32.xlu0 %v1892_v36  ;;  %v983_v49 = vmul.f32 %v3977_v26, %v5789_v10  ;;  %v1746_v32 = vadd.f32 %v1730_v45, %v1372_v50 }
 0x61c   :  { %v609_v42 = vmul.f32 %v3814_v59, %v5790_v22 }
 0x61d   :  { %5788 = vst [vmem:[#allocation35_spill] sm:$0xff] %v4941_v46  ;;  %v2131_v57 = vpack.c.bf16 %v4941_v46, %v4938_v58 }
 0x61e   :  { %v1865_v37 = vpop.f32.mrf.mxu1  ;;  %v999_v54 = vadd.f32 %v983_v49, %v609_v42 }
 0x61f   :  { %v1866_v0 = vadd.f32 %v4811_v20, %v1865_v37  ;;  %2160 = vmatmul.bf16.gmra.mxu2 %v2131_v57 }
 0x620   :  { %v2018_v19 = vpop.xlane.xlu1 %2017  ;;  %v1373_v37 = vadd.f32 %v1357_v35, %v999_v54 }
 0x621   :  { %v1893_v5 = vmul.f32 %v1866_v0, %v1866_v0  ;;  %v2104_v36 = vmul.f32 %v4783_v3, %v2018_v19  ;;  %v2038_v45 = vmul.f32 %v4783_v3, %v1866_v0 }
 0x622   :  { %v1747_v10 = vadd.f32 %v1731_v47, %v1373_v37  ;;  %v5792_v47 = vld [vmem:[#allocation94_spill] sm:$0xff] }
 0x623   :  { %v4957_v18 = vadd.f32 %v2104_v36, %v1746_v32  ;;  %1917 = vadd.xlane.f32.xlu1 %v1893_v5  ;;  %v4966_v32 = vadd.f32 %v2038_v45, %v4519_v21  ;;  %v5793_v45 = vld [vmem:[#allocation49_spill] sm:$0xff] }
 0x626   :  { %v1867_v57 = vpop.f32.mrf.mxu1 }
 0x627   :  { %v1868_v50 = vadd.f32 %v4811_v20, %v1867_v57 }
 0x628   :  { %v2020_v19 = vpop.xlane.xlu2 %2019 }
 0x629   :  { %v1894_v46 = vmul.f32 %v1868_v50, %v1868_v50  ;;  %v2039_v22 = vmul.f32 %v4783_v3, %v1868_v50  ;;  %v2105_v34 = vmul.f32 %v4783_v3, %v2020_v19  ;;  %v986_v50 = vmul.f32 %v3977_v26, %v5793_v45 }
 0x62b   :  { %v4969_v49 = vadd.f32 %v2039_v22, %v4522_v63  ;;  %v4971_v48 = vadd.f32 %v2105_v34, %v1747_v10  ;;  %1919 = vadd.xlane.f32.xlu2 %v1894_v46  ;;  %v5794_v34 = vld [vmem:[#allocation34_spill] sm:$0xff] }
 0x62d   :  { %v2132_v0 = vpack.c.bf16 %v4969_v49, %v4966_v32 }
 0x62e   :  { %v1870_v5 = vpop.f32.mrf.mxu1 }
 0x62f   :  { %v1871_v36 = vadd.f32 %v4811_v20, %v1870_v5  ;;  %2165 = vmatmul.bf16.gmra.mxu2 %v2132_v0  ;;  %v612_v0 = vmul.f32 %v3814_v59, %v5794_v34  ;;  %v5795_v5 = vld [vmem:[#allocation67_spill] sm:$0xff] }
 0x630   :  { %v2022_v42 = vpop.xlane.xlu0 %2021 }
 0x631   :  { %v1895_v35 = vmul.f32 %v1871_v36, %v1871_v36  ;;  %v2106_v54 = vmul.f32 %v4783_v3, %v2022_v42  ;;  %v2040_v57 = vmul.f32 %v4783_v3, %v1871_v36  ;;  %v1360_v42 = vmul.f32 %v4119_v16, %v5795_v5 }
 0x632   :  { %v1002_v26 = vadd.f32 %v986_v50, %v612_v0 }
 0x633   :  { %v4978_v21 = vadd.f32 %v2106_v54, %v5792_v47  ;;  %1921 = vadd.xlane.f32.xlu0 %v1895_v35  ;;  %v4991_v35 = vadd.f32 %v2040_v57, %v4547_v40  ;;  %v1734_v47 = vmul.f32 %v4409_v25, %v4580_v29 }
 0x636   :  { %v1872_v63 = vpop.f32.mrf.mxu1 }
 0x637   :  { %v1873_v46 = vadd.f32 %v4811_v20, %v1872_v63 }
 0x638   :  { %v2024_v37 = vpop.xlane.xlu1 %2023 }
 0x639   :  { %v1896_v19 = vmul.f32 %v1873_v46, %v1873_v46  ;;  %v2041_v10 = vmul.f32 %v4783_v3, %v1873_v46  ;;  %v2107_v22 = vmul.f32 %v4783_v3, %v2024_v37  ;;  %v1376_v46 = vadd.f32 %v1360_v42, %v1002_v26 }
 0x63b   :  { %v4994_v36 = vadd.f32 %v2041_v10, %v4550_v9  ;;  %v4997_v54 = vadd.f32 %v2107_v22, %v4539_v2  ;;  %1923 = vadd.xlane.f32.xlu1 %v1896_v19  ;;  %v1750_v57 = vadd.f32 %v1734_v47, %v1376_v46 }
 0x63d   :  { %v2133_v59 = vpack.c.bf16 %v4994_v36, %v4991_v35 }
 0x63e   :  { %v1875_v63 = vpop.f32.mrf.mxu1 }
 0x63f   :  { %v1876_v16 = vadd.f32 %v4811_v20, %v1875_v63  ;;  %2170 = vmatmul.bf16.gmra.mxu2 %v2133_v59 }
 0x640   :  { %v2026_v40 = vpop.xlane.xlu2 %2025 }
 0x641   :  { %v1897_v9 = vmul.f32 %v1876_v16, %v1876_v16  ;;  %v2108_v37 = vmul.f32 %v4783_v3, %v2026_v40  ;;  %v2042_v50 = vmul.f32 %v4783_v3, %v1876_v16 }
 0x643   :  { %v5005_v2 = vadd.f32 %v2108_v37, %v1750_v57  ;;  %1925 = vadd.xlane.f32.xlu2 %v1897_v9  ;;  %v5012_v34 = vadd.f32 %v2042_v50, %v4572_v11 }
 0x646   :  { %v1877_v45 = vpop.f32.mrf.mxu1 }
 0x647   :  { %v1878_v25 = vadd.f32 %v4811_v20, %v1877_v45 }
 0x648   :  { %v2028_v29 = vpop.xlane.xlu0 %2027 }
 0x649   :  { %v1898_v19 = vmul.f32 %v1878_v25, %v1878_v25  ;;  %v2043_v10 = vmul.f32 %v4783_v3, %v1878_v25  ;;  %v2109_v22 = vmul.f32 %v4783_v3, %v2028_v29 }
 0x64b   :  { %v5015_v0 = vadd.f32 %v2043_v10, %v4575_v17  ;;  %v5018_v5 = vadd.f32 %v2109_v22, %v4564_v55  ;;  %1927 = vadd.xlane.f32.xlu0 %v1898_v19 }
 0x64d   :  { %v2134_v42 = vpack.c.bf16 %v5015_v0, %v5012_v34 }
 0x64e   :  { %v1880_v26 = vpop.f32.mrf.mxu1 }
 0x64f   :  { %v1881_v47 = vadd.f32 %v4811_v20, %v1880_v26  ;;  %2175 = vmatmul.bf16.gmra.mxu2 %v2134_v42 }
 0x651   :  { %v1899_v59 = vmul.f32 %v1881_v47, %v1881_v47  ;;  %v2044_v11 = vmul.f32 %v4783_v3, %v1881_v47  ;;  %v5046_v47 = vld [vmem:[#allocation6 + $0x5] ss:$0 sm:$0xff] }
 0x653   :  { %1929 = vadd.xlane.f32.xlu1 %v1899_v59  ;;  %v5028_v9 = vadd.f32 %v2044_v11, %v4597_v43 }
 0x656   :  { %v1882_v63 = vpop.f32.mrf.mxu1  ;;  %v1902_v46 = vpop.xlane.xlu2 %1901 }
 0x657   :  { %v1883_v17 = vadd.f32 %v4811_v20, %v1882_v63  ;;  %v1933_v16 = vmul.f32 0.5, %v1902_v46 }
 0x659   :  { %v1900_v40 = vmul.f32 %v1883_v17, %v1883_v17  ;;  %v2045_v55 = vmul.f32 %v4783_v3, %v1883_v17  ;;  %v2062_v57 = vmul.f32 %v4783_v3, %v1933_v16 }
 0x65b   :  { %v5031_v37 = vadd.f32 %v2045_v55, %v4600_v30  ;;  %v5034_v45 = vadd.f32 %v2062_v57, %v4602_v23  ;;  %1931 = vadd.xlane.f32.xlu2 %v1900_v40 }
 0x65d   :  { %v2135_v50 = vpack.c.bf16 %v5031_v37, %v5028_v9 }
 0x65e   :  { %v1904_v25 = vpop.xlane.xlu0 %1903 }
 0x65f   :  { %v1934_v29 = vmul.f32 0.5, %v1904_v25  ;;  %2180 = vmatmul.bf16.gmra.mxu2 %v2135_v50 }
 0x661   :  { %v2063_v19 = vmul.f32 %v4783_v3, %v1934_v29 }
 0x663   :  { %v5040_v10 = vadd.f32 %v2063_v19, %v4613_v24  ;;  %v5061_v19 = vld [vmem:[%s5625_s6] ss:$0 sm:$0xff] }
 0x666   :  { %v1906_v43 = vpop.xlane.xlu1 %1905 }
 0x667   :  { %v1935_v22 = vmul.f32 0.5, %v1906_v43 }
 0x669   :  { %v2064_v30 = vmul.f32 %v4783_v3, %v1935_v22 }
 0x66b   :  { %v5044_v42 = vadd.f32 %v2064_v30, %v4624_v13 }
 0x66e   :  { %v1908_v23 = vpop.xlane.xlu2 %1907 }
 0x66f   :  { %v1936_v26 = vmul.f32 0.5, %v1908_v23 }
 0x671   :  { %v2065_v59 = vmul.f32 %v4783_v3, %v1936_v26 }
 0x672   :  { %v2146_v63 = vpop.f32.mrf.mxu2 }
 0x673   :  { %v5050_v46 = vadd.f32 %v2065_v59, %v4634_v28  ;;  %v2147_v24 = vadd.f32 %v5046_v47, %v2146_v63 }
 0x675   :  { %3263 = vtanh.f32 %v2147_v24 }
 0x676   :  { %v1910_v11 = vpop.xlane.xlu0 %1909 }
 0x677   :  { %v1937_v17 = vmul.f32 0.5, %v1910_v11 }
 0x679   :  { %v2066_v16 = vmul.f32 %v4783_v3, %v1937_v17 }
 0x67a   :  { %v2148_v40 = vpop.f32.mrf.mxu2 }
 0x67b   :  { %v3264_v13 = vpop.eup %3263  ;;  %v5055_v55 = vadd.f32 %v2066_v16, %v4650_v53  ;;  %v2149_v57 = vadd.f32 %v5046_v47, %v2148_v40 }
 0x67c   :  { %v2323_v50 = vmul.f32 %v3264_v13, %v3264_v13 }
 0x67d   :  { %3265 = vtanh.f32 %v2149_v57 }
 0x67e   :  { %v1912_v25 = vpop.xlane.xlu1 %1911  ;;  %v2339_v29 = vsub.f32 1.0, %v2323_v50 }
 0x67f   :  { %v1938_v28 = vmul.f32 0.5, %v1912_v25 }
 0x680   :  { %v2355_v43 = vmul.f32 %v5061_v19, %v2339_v29 }
 0x681   :  { %v2067_v22 = vmul.f32 %v4783_v3, %v1938_v28 }
 0x682   :  { %v2151_v30 = vpop.f32.mrf.mxu2  ;;  %2371 = vadd.xlane.f32.xlu2 %v2355_v43 }
 0x683   :  { %v3266_v53 = vpop.eup %3265  ;;  %v5066_v23 = vadd.f32 %v2067_v22, %v4661_v52  ;;  %v2152_v26 = vadd.f32 %v5046_v47, %v2151_v30 }
 0x684   :  { %v2202_v59 = vpack.c.bf16 %v3266_v53, %v3264_v13  ;;  %v2324_v63 = vmul.f32 %v3266_v53, %v3266_v53 }
 0x685   :  { %3267 = vtanh.f32 %v2152_v26 }
 0x686   :  { %2218 = vmatmul.bf16.vlgmr.msrb.gmra.mxu3 %v2202_v59  ;;  %v1914_v24 = vpop.xlane.xlu2 %1913  ;;  %v2340_v11 = vsub.f32 1.0, %v2324_v63 }
 0x687   :  { %v1939_v17 = vmul.f32 0.5, %v1914_v24 }
 0x688   :  { %v2356_v16 = vmul.f32 %v5061_v19, %v2340_v11 }
 0x689   :  { %v2068_v40 = vmul.f32 %v4783_v3, %v1939_v17 }
 0x68a   :  { %v2153_v57 = vpop.f32.mrf.mxu2  ;;  %2373 = vadd.xlane.f32.xlu0 %v2356_v16 }
 0x68b   :  { %v3268_v50 = vpop.eup %3267  ;;  %v5072_v25 = vadd.f32 %v2068_v40, %v4672_v39  ;;  %v2154_v52 = vadd.f32 %v5046_v47, %v2153_v57 }
 0x68c   :  { %v2325_v29 = vmul.f32 %v3268_v50, %v3268_v50 }
 0x68d   :  { %3269 = vtanh.f32 %v2154_v52 }
 0x68e   :  { %v1916_v13 = vpop.xlane.xlu0 %1915  ;;  %v2341_v28 = vsub.f32 1.0, %v2325_v29 }
 0x68f   :  { %v1940_v43 = vmul.f32 0.5, %v1916_v13 }
 0x690   :  { %v2357_v22 = vmul.f32 %v5061_v19, %v2341_v28 }
 0x691   :  { %v2069_v30 = vmul.f32 %v4783_v3, %v1940_v43 }
 0x692   :  { %v2156_v53 = vpop.f32.mrf.mxu2  ;;  %2375 = vadd.xlane.f32.xlu1 %v2357_v22 }
 0x693   :  { %v3270_v26 = vpop.eup %3269  ;;  %v5078_v59 = vadd.f32 %v2069_v30, %v4683_v27  ;;  %v2157_v39 = vadd.f32 %v5046_v47, %v2156_v53 }
 0x694   :  { %v2203_v63 = vpack.c.bf16 %v3270_v26, %v3268_v50  ;;  %v2326_v24 = vmul.f32 %v3270_v26, %v3270_v26 }
 0x695   :  { %3271 = vtanh.f32 %v2157_v39 }
 0x696   :  { %2223 = vmatmul.bf16.gmra.mxu3 %v2203_v63  ;;  %v1918_v11 = vpop.xlane.xlu1 %1917  ;;  %v2342_v17 = vsub.f32 1.0, %v2326_v24 }
 0x697   :  { %v1941_v16 = vmul.f32 0.5, %v1918_v11 }
 0x698   :  { %v2358_v40 = vmul.f32 %v5061_v19, %v2342_v17 }
 0x699   :  { %v2070_v57 = vmul.f32 %v4783_v3, %v1941_v16 }
 0x69a   :  { %v2158_v52 = vpop.f32.mrf.mxu2  ;;  %2377 = vadd.xlane.f32.xlu2 %v2358_v40 }
 0x69b   :  { %v3272_v29 = vpop.eup %3271  ;;  %v5084_v13 = vadd.f32 %v2070_v57, %v4694_v31  ;;  %v2159_v27 = vadd.f32 %v5046_v47, %v2158_v52 }
 0x69c   :  { %v2327_v28 = vmul.f32 %v3272_v29, %v3272_v29 }
 0x69d   :  { %3273 = vtanh.f32 %v2159_v27 }
 0x69e   :  { %v1920_v50 = vpop.xlane.xlu2 %1919  ;;  %v2343_v43 = vsub.f32 1.0, %v2327_v28 }
 0x69f   :  { %v1942_v22 = vmul.f32 0.5, %v1920_v50 }
 0x6a0   :  { %v2359_v30 = vmul.f32 %v5061_v19, %v2343_v43 }
 0x6a1   :  { %v2071_v53 = vmul.f32 %v4783_v3, %v1942_v22 }
 0x6a2   :  { %v2161_v26 = vpop.f32.mrf.mxu2  ;;  %2379 = vadd.xlane.f32.xlu0 %v2359_v30 }
 0x6a3   :  { %v3274_v39 = vpop.eup %3273  ;;  %v5090_v63 = vadd.f32 %v2071_v53, %v4705_v44  ;;  %v2162_v31 = vadd.f32 %v5046_v47, %v2161_v26 }
 0x6a4   :  { %v2204_v24 = vpack.c.bf16 %v3274_v39, %v3272_v29  ;;  %v2328_v11 = vmul.f32 %v3274_v39, %v3274_v39 }
 0x6a5   :  { %3275 = vtanh.f32 %v2162_v31 }
 0x6a6   :  { %2228 = vmatmul.bf16.gmra.mxu3 %v2204_v24  ;;  %v1922_v17 = vpop.xlane.xlu0 %1921  ;;  %v2344_v16 = vsub.f32 1.0, %v2328_v11 }
 0x6a7   :  { %v1943_v40 = vmul.f32 0.5, %v1922_v17 }
 0x6a8   :  { %v2360_v57 = vmul.f32 %v5061_v19, %v2344_v16 }
 0x6a9   :  { %v2072_v52 = vmul.f32 %v4783_v3, %v1943_v40 }
 0x6aa   :  { %v2163_v27 = vpop.f32.mrf.mxu2  ;;  %2381 = vadd.xlane.f32.xlu1 %v2360_v57 }
 0x6ab   :  { %v3276_v28 = vpop.eup %3275  ;;  %v5096_v50 = vadd.f32 %v2072_v52, %v4716_v6  ;;  %v2164_v44 = vadd.f32 %v5046_v47, %v2163_v27 }
 0x6ac   :  { %v2329_v43 = vmul.f32 %v3276_v28, %v3276_v28 }
 0x6ad   :  { %3277 = vtanh.f32 %v2164_v44 }
 0x6ae   :  { %v1924_v29 = vpop.xlane.xlu1 %1923  ;;  %v2345_v22 = vsub.f32 1.0, %v2329_v43 }
 0x6af   :  { %v1944_v30 = vmul.f32 0.5, %v1924_v29 }
 0x6b0   :  { %v2361_v53 = vmul.f32 %v5061_v19, %v2345_v22 }
 0x6b1   :  { %v2073_v26 = vmul.f32 %v4783_v3, %v1944_v30 }
 0x6b2   :  { %v2166_v39 = vpop.f32.mrf.mxu2  ;;  %2383 = vadd.xlane.f32.xlu2 %v2361_v53 }
 0x6b3   :  { %v3278_v31 = vpop.eup %3277  ;;  %v5102_v24 = vadd.f32 %v2073_v26, %v4727_v4  ;;  %v2167_v6 = vadd.f32 %v5046_v47, %v2166_v39 }
 0x6b4   :  { %v2205_v11 = vpack.c.bf16 %v3278_v31, %v3276_v28  ;;  %v2330_v17 = vmul.f32 %v3278_v31, %v3278_v31 }
 0x6b5   :  { %3279 = vtanh.f32 %v2167_v6 }
 0x6b6   :  { %2233 = vmatmul.bf16.gmra.mxu3 %v2205_v11  ;;  %v1926_v16 = vpop.xlane.xlu2 %1925  ;;  %v2346_v40 = vsub.f32 1.0, %v2330_v17 }
 0x6b7   :  { %v1945_v57 = vmul.f32 0.5, %v1926_v16 }
 0x6b8   :  { %v2362_v52 = vmul.f32 %v5061_v19, %v2346_v40 }
 0x6b9   :  { %v2074_v27 = vmul.f32 %v4783_v3, %v1945_v57 }
 0x6ba   :  { %v2168_v44 = vpop.f32.mrf.mxu2  ;;  %2385 = vadd.xlane.f32.xlu0 %v2362_v52 }
 0x6bb   :  { %v3280_v43 = vpop.eup %3279  ;;  %v5108_v29 = vadd.f32 %v2074_v27, %v4738_v62  ;;  %v2169_v4 = vadd.f32 %v5046_v47, %v2168_v44 }
 0x6bc   :  { %v2331_v22 = vmul.f32 %v3280_v43, %v3280_v43 }
 0x6bd   :  { %3281 = vtanh.f32 %v2169_v4 }
 0x6be   :  { %v1928_v28 = vpop.xlane.xlu0 %1927  ;;  %v2347_v30 = vsub.f32 1.0, %v2331_v22 }
 0x6bf   :  { %v1946_v53 = vmul.f32 0.5, %v1928_v28 }
 0x6c0   :  { %v2363_v26 = vmul.f32 %v5061_v19, %v2347_v30 }
 0x6c1   :  { %v2075_v39 = vmul.f32 %v4783_v3, %v1946_v53 }
 0x6c2   :  { %v2171_v31 = vpop.f32.mrf.mxu2  ;;  %2387 = vadd.xlane.f32.xlu1 %v2363_v26 }
 0x6c3   :  { %v3282_v6 = vpop.eup %3281  ;;  %v5114_v11 = vadd.f32 %v2075_v39, %v4749_v61  ;;  %v2172_v62 = vadd.f32 %v5046_v47, %v2171_v31 }
 0x6c4   :  { %v2206_v17 = vpack.c.bf16 %v3282_v6, %v3280_v43  ;;  %v2332_v16 = vmul.f32 %v3282_v6, %v3282_v6 }
 0x6c5   :  { %3283 = vtanh.f32 %v2172_v62 }
 0x6c6   :  { %2238 = vmatmul.bf16.gmra.mxu3 %v2206_v17  ;;  %v1930_v40 = vpop.xlane.xlu1 %1929  ;;  %v2348_v57 = vsub.f32 1.0, %v2332_v16 }
 0x6c7   :  { %v1947_v52 = vmul.f32 0.5, %v1930_v40 }
 0x6c8   :  { %v2364_v27 = vmul.f32 %v5061_v19, %v2348_v57 }
 0x6c9   :  { %v2076_v44 = vmul.f32 %v4783_v3, %v1947_v52 }
 0x6ca   :  { %v2173_v4 = vpop.f32.mrf.mxu2  ;;  %2389 = vadd.xlane.f32.xlu2 %v2364_v27 }
 0x6cb   :  { %v3284_v22 = vpop.eup %3283  ;;  %v5120_v28 = vadd.f32 %v2076_v44, %v4760_v12  ;;  %v2174_v61 = vadd.f32 %v5046_v47, %v2173_v4 }
 0x6cc   :  { %v2333_v30 = vmul.f32 %v3284_v22, %v3284_v22 }
 0x6cd   :  { %3285 = vtanh.f32 %v2174_v61 }
 0x6ce   :  { %v1932_v43 = vpop.xlane.xlu2 %1931  ;;  %v2349_v53 = vsub.f32 1.0, %v2333_v30 }
 0x6cf   :  { %v1948_v26 = vmul.f32 0.5, %v1932_v43 }
 0x6d0   :  { %v2365_v39 = vmul.f32 %v5061_v19, %v2349_v53 }
 0x6d1   :  { %v2077_v31 = vmul.f32 %v4783_v3, %v1948_v26 }
 0x6d2   :  { %v2176_v6 = vpop.f32.mrf.mxu2  ;;  %2391 = vadd.xlane.f32.xlu0 %v2365_v39 }
 0x6d3   :  { %v3286_v62 = vpop.eup %3285  ;;  %v5126_v17 = vadd.f32 %v2077_v31, %v4767_v7  ;;  %v2177_v12 = vadd.f32 %v5046_v47, %v2176_v6 }
 0x6d4   :  { %v2207_v16 = vpack.c.bf16 %v3286_v62, %v3284_v22  ;;  %v2334_v40 = vmul.f32 %v3286_v62, %v3286_v62 }
 0x6d5   :  { %3287 = vtanh.f32 %v2177_v12 }
 0x6d6   :  { %2243 = vmatmul.bf16.gmra.mxu3 %v2207_v16  ;;  %v2350_v57 = vsub.f32 1.0, %v2334_v40 }
 0x6d8   :  { %v2366_v52 = vmul.f32 %v5061_v19, %v2350_v57 }
 0x6da   :  { %v2178_v27 = vpop.f32.mrf.mxu2  ;;  %2393 = vadd.xlane.f32.xlu1 %v2366_v52 }
 0x6db   :  { %v3288_v44 = vpop.eup %3287  ;;  %v2179_v3 = vadd.f32 %v5046_v47, %v2178_v27  ;;  %v5136_v27 = vstv %s3048_s25 }
 0x6dc   :  { %v2335_v4 = vmul.f32 %v3288_v44, %v3288_v44 }
 0x6dd   :  { %3289 = vtanh.f32 %v2179_v3 }
 0x6de   :  { %v2351_v61 = vsub.f32 1.0, %v2335_v4 }
 0x6e0   :  { %v2367_v7 = vmul.f32 %v5061_v19, %v2351_v61 }
 0x6e2   :  { %v2181_v30 = vpop.f32.mrf.mxu2  ;;  %2395 = vadd.xlane.f32.xlu2 %v2367_v7 }
 0x6e3   :  { %v3290_v43 = vpop.eup %3289  ;;  %v2182_v22 = vadd.f32 %v5046_v47, %v2181_v30 }
 0x6e4   :  { %v2208_v53 = vpack.c.bf16 %v3290_v43, %v3288_v44  ;;  %v2336_v26 = vmul.f32 %v3290_v43, %v3290_v43 }
 0x6e5   :  { %3291 = vtanh.f32 %v2182_v22 }
 0x6e6   :  { %2248 = vmatmul.bf16.gmra.mxu3 %v2208_v53  ;;  %v2352_v39 = vsub.f32 1.0, %v2336_v26 }
 0x6e8   :  { %v2368_v31 = vmul.f32 %v5061_v19, %v2352_v39 }
 0x6ea   :  { %v2183_v6 = vpop.f32.mrf.mxu2  ;;  %2397 = vadd.xlane.f32.xlu0 %v2368_v31 }
 0x6eb   :  { %v3292_v62 = vpop.eup %3291  ;;  %v2184_v12 = vadd.f32 %v5046_v47, %v2183_v6 }
 0x6ec   :  { %v2337_v16 = vmul.f32 %v3292_v62, %v3292_v62 }
 0x6ed   :  { %3293 = vtanh.f32 %v2184_v12 }
 0x6ee   :  { %v2353_v40 = vsub.f32 1.0, %v2337_v16 }
 0x6f0   :  { %v2369_v57 = vmul.f32 %v5061_v19, %v2353_v40 }
 0x6f2   :  { %2399 = vadd.xlane.f32.xlu1 %v2369_v57 }
 0x6f3   :  { %v3294_v52 = vpop.eup %3293 }
 0x6f4   :  { %v2209_v44 = vpack.c.bf16 %v3294_v52, %v3292_v62  ;;  %v2338_v3 = vmul.f32 %v3294_v52, %v3294_v52 }
 0x6f5   :  { %v2372_v4 = vpop.xlane.xlu2 %2371 }
 0x6f6   :  { %v2468_v61 = vmul.f32 %v5136_v27, %v2372_v4  ;;  %2253 = vmatmul.bf16.gmra.mxu3 %v2209_v44  ;;  %v2354_v7 = vsub.f32 1.0, %v2338_v3 }
 0x6f8   :  { %v5140_v30 = vadd.f32 %v2468_v61, %v4792_v38  ;;  %v2370_v47 = vmul.f32 %v5061_v19, %v2354_v7 }
 0x6fa   :  { %2401 = vadd.xlane.f32.xlu2 %v2370_v47 }
 0x6fd   :  { %v2374_v43 = vpop.xlane.xlu0 %2373 }
 0x6fe   :  { %v2469_v22 = vmul.f32 %v5136_v27, %v2374_v43 }
 0x700   :  { %v5145_v53 = vadd.f32 %v2469_v22, %v4804_v14 }
 0x705   :  { %v2376_v26 = vpop.xlane.xlu1 %2375 }
 0x706   :  { %v2470_v39 = vmul.f32 %v5136_v27, %v2376_v26 }
 0x708   :  { %v5149_v31 = vadd.f32 %v2470_v39, %v4821_v60 }
 0x709   :  { %v2219_v6 = vpop.f32.mrf.mxu3 }
 0x70a   :  { %v2220_v62 = vadd.f32 %v4811_v20, %v2219_v6 }
 0x70c   :  { %v2259_v38 = vmul.f32 %v2220_v62, %v2220_v62  ;;  %v2404_v14 = vmul.f32 %v5136_v27, %v2220_v62 }
 0x70d   :  { %v2378_v12 = vpop.xlane.xlu2 %2377 }
 0x70e   :  { %v2471_v16 = vmul.f32 %v5136_v27, %v2378_v12  ;;  %2275 = vadd.xlane.f32.xlu1 %v2259_v38  ;;  %v5160_v4 = vadd.f32 %v2404_v14, %v4836_v56  ;;  %v5797_v14 = vld [vmem:[#allocation38_spill] sm:$0xff] }
 0x710   :  { %v5154_v40 = vadd.f32 %v2471_v16, %v4841_v51 }
 0x711   :  { %v2221_v57 = vpop.f32.mrf.mxu3 }
 0x712   :  { %v2222_v52 = vadd.f32 %v4811_v20, %v2221_v57 }
 0x714   :  { %v2260_v44 = vmul.f32 %v2222_v52, %v2222_v52  ;;  %v2405_v60 = vmul.f32 %v5136_v27, %v2222_v52 }
 0x715   :  { %v2380_v3 = vpop.xlane.xlu0 %2379 }
 0x716   :  { %v5163_v61 = vadd.f32 %v2405_v60, %v4839_v8  ;;  %v2472_v7 = vmul.f32 %v5136_v27, %v2380_v3  ;;  %2277 = vadd.xlane.f32.xlu2 %v2260_v44  ;;  %v5796_v8 = vld [vmem:[#allocation65_spill] sm:$0xff]  ;;  %v5798_v44 = vld [vmem:[#allocation74_spill] sm:$0xff] }
 0x718   :  { %v2502_v51 = vpack.c.bf16 %v5163_v61, %v5160_v4  ;;  %v5169_v47 = vadd.f32 %v2472_v7, %v4855_v33 }
 0x719   :  { %v2224_v43 = vpop.f32.mrf.mxu3 }
 0x71a   :  { %v2225_v22 = vadd.f32 %v4811_v20, %v2224_v43  ;;  %2519 = vmatmul.bf16.vlgmr.msrb.gmra.mxu0 %v2502_v51 }
 0x71c   :  { %v2261_v26 = vmul.f32 %v2225_v22, %v2225_v22  ;;  %v2406_v38 = vmul.f32 %v5136_v27, %v2225_v22 }
 0x71d   :  { %v2382_v39 = vpop.xlane.xlu1 %2381 }
 0x71e   :  { %v2473_v56 = vmul.f32 %v5136_v27, %v2382_v39  ;;  %2279 = vadd.xlane.f32.xlu0 %v2261_v26  ;;  %v5180_v52 = vadd.f32 %v2406_v38, %v5797_v14  ;;  %v5801_v14 = vld [vmem:[#allocation33_spill] sm:$0xff] }
 0x720   :  { %v5174_v6 = vadd.f32 %v2473_v56, %v5796_v8  ;;  %v5799_v8 = vld [vmem:[#allocation54_spill] sm:$0xff] }
 0x721   :  { %v2226_v62 = vpop.f32.mrf.mxu3 }
 0x722   :  { %v2227_v12 = vadd.f32 %v4811_v20, %v2226_v62 }
 0x724   :  { %v2262_v16 = vmul.f32 %v2227_v12, %v2227_v12  ;;  %v2407_v33 = vmul.f32 %v5136_v27, %v2227_v12 }
 0x725   :  { %v2384_v57 = vpop.xlane.xlu2 %2383 }
 0x726   :  { %v5183_v60 = vadd.f32 %v2407_v33, %v5798_v44  ;;  %v2474_v3 = vmul.f32 %v5136_v27, %v2384_v57  ;;  %2281 = vadd.xlane.f32.xlu1 %v2262_v16 }
 0x728   :  { %v5187_v7 = vadd.f32 %v2474_v3, %v4889_v41  ;;  %v2503_v51 = vpack.c.bf16 %v5183_v60, %v5180_v52  ;;  %v5802_v3 = vld [vmem:[#allocation79_spill] sm:$0xff] }
 0x729   :  { %v2229_v43 = vpop.f32.mrf.mxu3 }
 0x72a   :  { %v2230_v22 = vadd.f32 %v4811_v20, %v2229_v43  ;;  %2524 = vmatmul.bf16.gmra.mxu0 %v2503_v51 }
 0x72c   :  { %v2263_v26 = vmul.f32 %v2230_v22, %v2230_v22  ;;  %v2408_v12 = vmul.f32 %v5136_v27, %v2230_v22 }
 0x72d   :  { %v2386_v39 = vpop.xlane.xlu0 %2385 }
 0x72e   :  { %v2475_v56 = vmul.f32 %v5136_v27, %v2386_v39  ;;  %2283 = vadd.xlane.f32.xlu2 %v2263_v26  ;;  %v5200_v44 = vadd.f32 %v2408_v12, %v5801_v14 }
 0x730   :  { %v5194_v62 = vadd.f32 %v2475_v56, %v5799_v8 }
 0x731   :  { %v2231_v38 = vpop.f32.mrf.mxu3 }
 0x732   :  { %5800 = vst [vmem:[#allocation55_spill] sm:$0xff] %v5194_v62  ;;  %v2232_v41 = vadd.f32 %v4811_v20, %v2231_v38 }
 0x734   :  { %v2264_v16 = vmul.f32 %v2232_v41, %v2232_v41  ;;  %v2409_v33 = vmul.f32 %v5136_v27, %v2232_v41 }
 0x735   :  { %v2388_v57 = vpop.xlane.xlu1 %2387 }
 0x736   :  { %v5203_v51 = vadd.f32 %v2409_v33, %v5802_v3  ;;  %v2476_v43 = vmul.f32 %v5136_v27, %v2388_v57  ;;  %2285 = vadd.xlane.f32.xlu0 %v2264_v16 }
 0x738   :  { %v5207_v26 = vadd.f32 %v2476_v43, %v4923_v1  ;;  %v2504_v22 = vpack.c.bf16 %v5203_v51, %v5200_v44  ;;  %v5220_v1 = vld [vmem:[%s5624_s5] ss:$0 sm:$0xff] }
 0x739   :  { %v2234_v39 = vpop.f32.mrf.mxu3 }
 0x73a   :  { %v2235_v56 = vadd.f32 %v4811_v20, %v2234_v39  ;;  %2529 = vmatmul.bf16.gmra.mxu0 %v2504_v22  ;;  %v5803_v22 = vld [vmem:[#allocation35_spill] sm:$0xff] }
 0x73c   :  { %v2265_v8 = vmul.f32 %v2235_v56, %v2235_v56  ;;  %v2410_v16 = vmul.f32 %v5136_v27, %v2235_v56 }
 0x73d   :  { %v2390_v38 = vpop.xlane.xlu2 %2389 }
 0x73e   :  { %v2477_v12 = vmul.f32 %v5136_v27, %v2390_v38  ;;  %2287 = vadd.xlane.f32.xlu1 %v2265_v8  ;;  %v5225_v43 = vadd.f32 %v2410_v16, %v4938_v58 }
 0x740   :  { %v5214_v41 = vadd.f32 %v2477_v12, %v4943_v15 }
 0x741   :  { %v2236_v33 = vpop.f32.mrf.mxu3 }
 0x742   :  { %v2237_v57 = vadd.f32 %v5220_v1, %v2236_v33 }
 0x744   :  { %v2266_v20 = vmul.f32 %v2237_v57, %v2237_v57  ;;  %v2411_v14 = vmul.f32 %v5136_v27, %v2237_v57 }
 0x745   :  { %v2392_v3 = vpop.xlane.xlu0 %2391 }
 0x746   :  { %v5228_v15 = vadd.f32 %v2411_v14, %v5803_v22  ;;  %v2478_v39 = vmul.f32 %v5136_v27, %v2392_v3  ;;  %2289 = vadd.xlane.f32.xlu2 %v2266_v20 }
 0x748   :  { %v5232_v56 = vadd.f32 %v2478_v39, %v4957_v18  ;;  %v2505_v8 = vpack.c.bf16 %v5228_v15, %v5225_v43 }
 0x749   :  { %v2239_v38 = vpop.f32.mrf.mxu3 }
 0x74a   :  { %5804 = vst [vmem:[#allocation43_spill] sm:$0xff] %v5232_v56  ;;  %v2240_v12 = vadd.f32 %v5220_v1, %v2239_v38  ;;  %2534 = vmatmul.bf16.gmra.mxu0 %v2505_v8 }
 0x74c   :  { %v2267_v33 = vmul.f32 %v2240_v12, %v2240_v12  ;;  %v2412_v20 = vmul.f32 %v5136_v27, %v2240_v12 }
 0x74d   :  { %v2394_v57 = vpop.xlane.xlu1 %2393 }
 0x74e   :  { %v2479_v58 = vmul.f32 %v5136_v27, %v2394_v57  ;;  %2291 = vadd.xlane.f32.xlu0 %v2267_v33  ;;  %v5245_v38 = vadd.f32 %v2412_v20, %v4966_v32 }
 0x750   :  { %v5239_v16 = vadd.f32 %v2479_v58, %v4971_v48 }
 0x751   :  { %v2241_v14 = vpop.f32.mrf.mxu3 }
 0x752   :  { %v2242_v18 = vadd.f32 %v5220_v1, %v2241_v14 }
 0x754   :  { %v2268_v3 = vmul.f32 %v2242_v18, %v2242_v18  ;;  %v2413_v22 = vmul.f32 %v5136_v27, %v2242_v18 }
 0x755   :  { %v2396_v39 = vpop.xlane.xlu2 %2395 }
 0x756   :  { %v5248_v8 = vadd.f32 %v2413_v22, %v4969_v49  ;;  %v2480_v33 = vmul.f32 %v5136_v27, %v2396_v39  ;;  %2293 = vadd.xlane.f32.xlu1 %v2268_v3 }
 0x758   :  { %v5252_v48 = vadd.f32 %v2480_v33, %v4978_v21  ;;  %v2506_v12 = vpack.c.bf16 %v5248_v8, %v5245_v38 }
 0x759   :  { %v2244_v57 = vpop.f32.mrf.mxu3 }
 0x75a   :  { %v2245_v58 = vadd.f32 %v5220_v1, %v2244_v57  ;;  %2539 = vmatmul.bf16.gmra.mxu0 %v2506_v12 }
 0x75c   :  { %v2269_v14 = vmul.f32 %v2245_v58, %v2245_v58  ;;  %v2414_v3 = vmul.f32 %v5136_v27, %v2245_v58 }
 0x75d   :  { %v2398_v18 = vpop.xlane.xlu0 %2397 }
 0x75e   :  { %v2481_v32 = vmul.f32 %v5136_v27, %v2398_v18  ;;  %2295 = vadd.xlane.f32.xlu2 %v2269_v14  ;;  %v5265_v57 = vadd.f32 %v2414_v3, %v4991_v35 }
 0x760   :  { %v5259_v49 = vadd.f32 %v2481_v32, %v4997_v54 }
 0x761   :  { %v2246_v20 = vpop.f32.mrf.mxu3 }
 0x762   :  { %5805 = vst [vmem:[#allocation76_spill] sm:$0xff] %v5259_v49  ;;  %v2247_v21 = vadd.f32 %v5220_v1, %v2246_v20 }
 0x764   :  { %v2270_v22 = vmul.f32 %v2247_v21, %v2247_v21  ;;  %v2415_v39 = vmul.f32 %v5136_v27, %v2247_v21 }
 0x765   :  { %v2400_v33 = vpop.xlane.xlu1 %2399 }
 0x766   :  { %v5268_v12 = vadd.f32 %v2415_v39, %v4994_v36  ;;  %v2482_v14 = vmul.f32 %v5136_v27, %v2400_v33  ;;  %2297 = vadd.xlane.f32.xlu0 %v2270_v22 }
 0x768   :  { %v5272_v54 = vadd.f32 %v2482_v14, %v5005_v2  ;;  %v2507_v58 = vpack.c.bf16 %v5268_v12, %v5265_v57 }
 0x769   :  { %v2249_v18 = vpop.f32.mrf.mxu3 }
 0x76a   :  { %5806 = vst [vmem:[#allocation68_spill] sm:$0xff] %v5272_v54  ;;  %v2250_v32 = vadd.f32 %v5220_v1, %v2249_v18  ;;  %2544 = vmatmul.bf16.gmra.mxu0 %v2507_v58 }
 0x76c   :  { %v2271_v20 = vmul.f32 %v2250_v32, %v2250_v32  ;;  %v2416_v22 = vmul.f32 %v5136_v27, %v2250_v32 }
 0x76d   :  { %v2402_v21 = vpop.xlane.xlu2 %2401 }
 0x76e   :  { %v2483_v35 = vmul.f32 %v5136_v27, %v2402_v21  ;;  %2299 = vadd.xlane.f32.xlu1 %v2271_v20  ;;  %v5285_v14 = vadd.f32 %v2416_v22, %v5012_v34 }
 0x770   :  { %v5279_v36 = vadd.f32 %v2483_v35, %v5018_v5 }
 0x771   :  { %v2251_v3 = vpop.f32.mrf.mxu3 }
 0x772   :  { %5807 = vst [vmem:[#allocation36_spill] sm:$0xff] %v5279_v36  ;;  %v2252_v2 = vadd.f32 %v5220_v1, %v2251_v3 }
 0x774   :  { %v2272_v39 = vmul.f32 %v2252_v2, %v2252_v2  ;;  %v2417_v33 = vmul.f32 %v5136_v27, %v2252_v2 }
 0x776   :  { %v5288_v58 = vadd.f32 %v2417_v33, %v5015_v0  ;;  %2301 = vadd.xlane.f32.xlu2 %v2272_v39 }
 0x778   :  { %v2508_v18 = vpack.c.bf16 %v5288_v58, %v5285_v14 }
 0x779   :  { %v2254_v5 = vpop.f32.mrf.mxu3 }
 0x77a   :  { %v2255_v20 = vadd.f32 %v5220_v1, %v2254_v5  ;;  %2549 = vmatmul.bf16.gmra.mxu0 %v2508_v18 }
 0x77c   :  { %v2273_v32 = vmul.f32 %v2255_v20, %v2255_v20  ;;  %v2418_v3 = vmul.f32 %v5136_v27, %v2255_v20 }
 0x77e   :  { %2303 = vadd.xlane.f32.xlu0 %v2273_v32  ;;  %v5298_v33 = vadd.f32 %v2418_v3, %v5028_v9 }
 0x781   :  { %v2256_v21 = vpop.f32.mrf.mxu3  ;;  %v2276_v35 = vpop.xlane.xlu1 %2275 }
 0x782   :  { %v2257_v34 = vadd.f32 %v5220_v1, %v2256_v21  ;;  %v2307_v22 = vmul.f32 0.5, %v2276_v35 }
 0x784   :  { %v2274_v2 = vmul.f32 %v2257_v34, %v2257_v34  ;;  %v2419_v0 = vmul.f32 %v5136_v27, %v2257_v34  ;;  %v2436_v39 = vmul.f32 %v5136_v27, %v2307_v22  ;;  %v5309_v34 = vld [vmem:[#allocation6 + $0x6] ss:$0 sm:$0xff] }
 0x786   :  { %v5301_v5 = vadd.f32 %v2419_v0, %v5031_v37  ;;  %v5304_v18 = vadd.f32 %v2436_v39, %v5034_v45  ;;  %2305 = vadd.xlane.f32.xlu1 %v2274_v2 }
 0x788   :  { %v2509_v20 = vpack.c.bf16 %v5301_v5, %v5298_v33 }
 0x789   :  { %v5315_v22 = vpop.xlane.xlu2 %2277 }
 0x78a   :  { %2554 = vmatmul.bf16.gmra.mxu0 %v2509_v20 }
 0x791   :  { %v2280_v32 = vpop.xlane.xlu0 %2279 }
 0x792   :  { %v2309_v21 = vmul.f32 0.5, %v2280_v32 }
 0x794   :  { %v2438_v35 = vmul.f32 %v5136_v27, %v2309_v21 }
 0x796   :  { %v5312_v9 = vadd.f32 %v2438_v35, %v5044_v42 }
 0x797   :  { %v2520_v3 = vpop.f32.mrf.mxu0 }
 0x798   :  { %v2521_v37 = vadd.f32 %v5309_v34, %v2520_v3 }
 0x799   :  { %v2282_v45 = vpop.xlane.xlu1 %2281 }
 0x79a   :  { %3295 = vtanh.f32 %v2521_v37  ;;  %v2310_v2 = vmul.f32 0.5, %v2282_v45 }
 0x79c   :  { %v2439_v0 = vmul.f32 %v5136_v27, %v2310_v2 }
 0x79e   :  { %v5319_v39 = vadd.f32 %v2439_v0, %v5050_v46 }
 0x79f   :  { %v2522_v20 = vpop.f32.mrf.mxu0 }
 0x7a0   :  { %v3296_v32 = vpop.eup %3295  ;;  %v2523_v21 = vadd.f32 %v5309_v34, %v2522_v20 }
 0x7a1   :  { %v2284_v54 = vpop.xlane.xlu2 %2283  ;;  %v2697_v42 = vmul.f32 %v3296_v32, %v3296_v32 }
 0x7a2   :  { %3297 = vtanh.f32 %v2523_v21  ;;  %v2311_v35 = vmul.f32 0.5, %v2284_v54 }
 0x7a3   :  { %v2713_v36 = vsub.f32 1.0, %v2697_v42 }
 0x7a4   :  { %v2440_v3 = vmul.f32 %v5136_v27, %v2311_v35 }
 0x7a5   :  { %v2729_v49 = vmul.f32 %v5061_v19, %v2713_v36 }
 0x7a6   :  { %v5325_v37 = vadd.f32 %v2440_v3, %v5055_v55 }
 0x7a7   :  { %v2525_v45 = vpop.f32.mrf.mxu0  ;;  %2745 = vadd.xlane.f32.xlu1 %v2729_v49 }
 0x7a8   :  { %v3298_v46 = vpop.eup %3297  ;;  %v2526_v2 = vadd.f32 %v5309_v34, %v2525_v45 }
 0x7a9   :  { %v2576_v0 = vpack.c.bf16 %v3298_v46, %v3296_v32  ;;  %v2286_v56 = vpop.xlane.xlu0 %2285  ;;  %v2698_v20 = vmul.f32 %v3298_v46, %v3298_v46 }
 0x7aa   :  { %3299 = vtanh.f32 %v2526_v2  ;;  %v2312_v62 = vmul.f32 0.5, %v2286_v56 }
 0x7ab   :  { %2592 = vmatmul.bf16.vlgmr.msrb.gmra.mxu1 %v2576_v0  ;;  %v2714_v54 = vsub.f32 1.0, %v2698_v20 }
 0x7ac   :  { %v2441_v21 = vmul.f32 %v5136_v27, %v2312_v62 }
 0x7ad   :  { %v2730_v42 = vmul.f32 %v5061_v19, %v2714_v54 }
 0x7ae   :  { %v5331_v36 = vadd.f32 %v2441_v21, %v5066_v23 }
 0x7af   :  { %v2527_v55 = vpop.f32.mrf.mxu0  ;;  %2747 = vadd.xlane.f32.xlu2 %v2730_v42 }
 0x7b0   :  { %v3300_v49 = vpop.eup %3299  ;;  %v2528_v35 = vadd.f32 %v5309_v34, %v2527_v55 }
 0x7b1   :  { %v2288_v3 = vpop.xlane.xlu1 %2287  ;;  %v2699_v32 = vmul.f32 %v3300_v49, %v3300_v49 }
 0x7b2   :  { %3301 = vtanh.f32 %v2528_v35  ;;  %v2313_v45 = vmul.f32 0.5, %v2288_v3 }
 0x7b3   :  { %v2715_v46 = vsub.f32 1.0, %v2699_v32 }
 0x7b4   :  { %v2442_v56 = vmul.f32 %v5136_v27, %v2313_v45 }
 0x7b5   :  { %v2731_v2 = vmul.f32 %v5061_v19, %v2715_v46 }
 0x7b6   :  { %v5337_v62 = vadd.f32 %v2442_v56, %v5072_v25 }
 0x7b7   :  { %v2530_v0 = vpop.f32.mrf.mxu0  ;;  %2749 = vadd.xlane.f32.xlu0 %v2731_v2 }
 0x7b8   :  { %v3302_v23 = vpop.eup %3301  ;;  %v2531_v20 = vadd.f32 %v5309_v34, %v2530_v0 }
 0x7b9   :  { %v2290_v54 = vpop.xlane.xlu2 %2289  ;;  %v2577_v21 = vpack.c.bf16 %v3302_v23, %v3300_v49  ;;  %v2700_v42 = vmul.f32 %v3302_v23, %v3302_v23 }
 0x7ba   :  { %3303 = vtanh.f32 %v2531_v20  ;;  %v2314_v55 = vmul.f32 0.5, %v2290_v54 }
 0x7bb   :  { %2597 = vmatmul.bf16.gmra.mxu1 %v2577_v21  ;;  %v2716_v35 = vsub.f32 1.0, %v2700_v42 }
 0x7bc   :  { %v2443_v3 = vmul.f32 %v5136_v27, %v2314_v55 }
 0x7bd   :  { %v2732_v32 = vmul.f32 %v5061_v19, %v2716_v35 }
 0x7be   :  { %v5343_v45 = vadd.f32 %v2443_v3, %v5078_v59 }
 0x7bf   :  { %v2532_v25 = vpop.f32.mrf.mxu0  ;;  %2751 = vadd.xlane.f32.xlu1 %v2732_v32 }
 0x7c0   :  { %v3304_v46 = vpop.eup %3303  ;;  %v2533_v56 = vadd.f32 %v5309_v34, %v2532_v25 }
 0x7c1   :  { %v2292_v2 = vpop.xlane.xlu0 %2291  ;;  %v2701_v0 = vmul.f32 %v3304_v46, %v3304_v46 }
 0x7c2   :  { %3305 = vtanh.f32 %v2533_v56  ;;  %v2315_v49 = vmul.f32 0.5, %v2292_v2 }
 0x7c3   :  { %v2717_v23 = vsub.f32 1.0, %v2701_v0 }
 0x7c4   :  { %v2444_v20 = vmul.f32 %v5136_v27, %v2315_v49 }
 0x7c5   :  { %v2733_v54 = vmul.f32 %v5061_v19, %v2717_v23 }
 0x7c6   :  { %v5349_v21 = vadd.f32 %v2444_v20, %v5084_v13 }
 0x7c7   :  { %v2535_v42 = vpop.f32.mrf.mxu0  ;;  %2753 = vadd.xlane.f32.xlu2 %v2733_v54 }
 0x7c8   :  { %v3306_v59 = vpop.eup %3305  ;;  %v2536_v55 = vadd.f32 %v5309_v34, %v2535_v42 }
 0x7c9   :  { %v2294_v35 = vpop.xlane.xlu1 %2293  ;;  %v2578_v3 = vpack.c.bf16 %v3306_v59, %v3304_v46  ;;  %v2702_v32 = vmul.f32 %v3306_v59, %v3306_v59 }
 0x7ca   :  { %3307 = vtanh.f32 %v2536_v55  ;;  %v2316_v25 = vmul.f32 0.5, %v2294_v35 }
 0x7cb   :  { %2602 = vmatmul.bf16.gmra.mxu1 %v2578_v3  ;;  %v2718_v56 = vsub.f32 1.0, %v2702_v32 }
 0x7cc   :  { %v2445_v2 = vmul.f32 %v5136_v27, %v2316_v25 }
 0x7cd   :  { %v2734_v0 = vmul.f32 %v5061_v19, %v2718_v56 }
 0x7ce   :  { %v5355_v49 = vadd.f32 %v2445_v2, %v5090_v63 }
 0x7cf   :  { %v2537_v13 = vpop.f32.mrf.mxu0  ;;  %2755 = vadd.xlane.f32.xlu0 %v2734_v0 }
 0x7d0   :  { %v3308_v23 = vpop.eup %3307  ;;  %v2538_v20 = vadd.f32 %v5309_v34, %v2537_v13 }
 0x7d1   :  { %v2296_v54 = vpop.xlane.xlu2 %2295  ;;  %v2703_v42 = vmul.f32 %v3308_v23, %v3308_v23 }
 0x7d2   :  { %3309 = vtanh.f32 %v2538_v20  ;;  %v2317_v46 = vmul.f32 0.5, %v2296_v54 }
 0x7d3   :  { %v2719_v59 = vsub.f32 1.0, %v2703_v42 }
 0x7d4   :  { %v2446_v55 = vmul.f32 %v5136_v27, %v2317_v46 }
 0x7d5   :  { %v2735_v35 = vmul.f32 %v5061_v19, %v2719_v59 }
 0x7d6   :  { %v5361_v3 = vadd.f32 %v2446_v55, %v5096_v50 }
 0x7d7   :  { %v2540_v32 = vpop.f32.mrf.mxu0  ;;  %2757 = vadd.xlane.f32.xlu1 %v2735_v35 }
 0x7d8   :  { %v3310_v63 = vpop.eup %3309  ;;  %v2541_v25 = vadd.f32 %v5309_v34, %v2540_v32 }
 0x7d9   :  { %v2298_v56 = vpop.xlane.xlu0 %2297  ;;  %v2579_v2 = vpack.c.bf16 %v3310_v63, %v3308_v23  ;;  %v2704_v0 = vmul.f32 %v3310_v63, %v3310_v63 }
 0x7da   :  { %3311 = vtanh.f32 %v2541_v25  ;;  %v2318_v13 = vmul.f32 0.5, %v2298_v56 }
 0x7db   :  { %2607 = vmatmul.bf16.gmra.mxu1 %v2579_v2  ;;  %v2720_v20 = vsub.f32 1.0, %v2704_v0 }
 0x7dc   :  { %v2447_v54 = vmul.f32 %v5136_v27, %v2318_v13 }
 0x7dd   :  { %v2736_v42 = vmul.f32 %v5061_v19, %v2720_v20 }
 0x7de   :  { %v5367_v46 = vadd.f32 %v2447_v54, %v5102_v24 }
 0x7df   :  { %v2542_v50 = vpop.f32.mrf.mxu0  ;;  %2759 = vadd.xlane.f32.xlu2 %v2736_v42 }
 0x7e0   :  { %v3312_v59 = vpop.eup %3311  ;;  %v2543_v55 = vadd.f32 %v5309_v34, %v2542_v50 }
 0x7e1   :  { %v2300_v35 = vpop.xlane.xlu1 %2299  ;;  %v2705_v32 = vmul.f32 %v3312_v59, %v3312_v59 }
 0x7e2   :  { %3313 = vtanh.f32 %v2543_v55  ;;  %v2319_v23 = vmul.f32 0.5, %v2300_v35 }
 0x7e3   :  { %v2721_v63 = vsub.f32 1.0, %v2705_v32 }
 0x7e4   :  { %v2448_v25 = vmul.f32 %v5136_v27, %v2319_v23 }
 0x7e5   :  { %v2737_v56 = vmul.f32 %v5061_v19, %v2721_v63 }
 0x7e6   :  { %v5373_v2 = vadd.f32 %v2448_v25, %v5108_v29 }
 0x7e7   :  { %v2545_v0 = vpop.f32.mrf.mxu0  ;;  %2761 = vadd.xlane.f32.xlu0 %v2737_v56 }
 0x7e8   :  { %v3314_v24 = vpop.eup %3313  ;;  %v2546_v13 = vadd.f32 %v5309_v34, %v2545_v0 }
 0x7e9   :  { %v2302_v20 = vpop.xlane.xlu2 %2301  ;;  %v2580_v54 = vpack.c.bf16 %v3314_v24, %v3312_v59  ;;  %v2706_v42 = vmul.f32 %v3314_v24, %v3314_v24 }
 0x7ea   :  { %3315 = vtanh.f32 %v2546_v13  ;;  %v2320_v50 = vmul.f32 0.5, %v2302_v20 }
 0x7eb   :  { %2612 = vmatmul.bf16.gmra.mxu1 %v2580_v54  ;;  %v2722_v55 = vsub.f32 1.0, %v2706_v42 }
 0x7ec   :  { %v2449_v35 = vmul.f32 %v5136_v27, %v2320_v50 }
 0x7ed   :  { %v2738_v32 = vmul.f32 %v5061_v19, %v2722_v55 }
 0x7ee   :  { %v5379_v23 = vadd.f32 %v2449_v35, %v5114_v11 }
 0x7ef   :  { %v2547_v29 = vpop.f32.mrf.mxu0  ;;  %2763 = vadd.xlane.f32.xlu1 %v2738_v32 }
 0x7f0   :  { %v3316_v63 = vpop.eup %3315  ;;  %v2548_v25 = vadd.f32 %v5309_v34, %v2547_v29 }
 0x7f1   :  { %v2304_v56 = vpop.xlane.xlu0 %2303  ;;  %v2707_v0 = vmul.f32 %v3316_v63, %v3316_v63 }
 0x7f2   :  { %3317 = vtanh.f32 %v2548_v25  ;;  %v2321_v59 = vmul.f32 0.5, %v2304_v56 }
 0x7f3   :  { %v2723_v24 = vsub.f32 1.0, %v2707_v0 }
 0x7f4   :  { %v2450_v13 = vmul.f32 %v5136_v27, %v2321_v59 }
 0x7f5   :  { %v2739_v20 = vmul.f32 %v5061_v19, %v2723_v24 }
 0x7f6   :  { %v5385_v54 = vadd.f32 %v2450_v13, %v5120_v28 }
 0x7f7   :  { %v2550_v42 = vpop.f32.mrf.mxu0  ;;  %2765 = vadd.xlane.f32.xlu2 %v2739_v20 }
 0x7f8   :  { %v3318_v11 = vpop.eup %3317  ;;  %v2551_v50 = vadd.f32 %v5309_v34, %v2550_v42  ;;  %v5397_v42 = vld [vmem:[%s5625_s6] ss:$0 sm:$0xff]  ;;  %s3049_s6 = sld [smem:[#allocation2 + $0x6]] }
 0x7f9   :  { %v2306_v55 = vpop.xlane.xlu1 %2305  ;;  %v2581_v35 = vpack.c.bf16 %v3318_v11, %v3316_v63  ;;  %v2708_v32 = vmul.f32 %v3318_v11, %v3318_v11 }
 0x7fa   :  { %3319 = vtanh.f32 %v2551_v50  ;;  %v2322_v29 = vmul.f32 0.5, %v2306_v55 }
 0x7fb   :  { %2617 = vmatmul.bf16.gmra.mxu1 %v2581_v35  ;;  %v2724_v25 = vsub.f32 1.0, %v2708_v32 }
 0x7fc   :  { %v2451_v56 = vmul.f32 %v5136_v27, %v2322_v29 }
 0x7fd   :  { %v2740_v0 = vmul.f32 %v5061_v19, %v2724_v25 }
 0x7fe   :  { %v5391_v59 = vadd.f32 %v2451_v56, %v5126_v17 }
 0x7ff   :  { %v2552_v28 = vpop.f32.mrf.mxu0  ;;  %2767 = vadd.xlane.f32.xlu0 %v2740_v0 }
 0x800   :  { %v3320_v24 = vpop.eup %3319  ;;  %v2553_v13 = vadd.f32 %v5309_v34, %v2552_v28 }
 0x801   :  { %v2709_v20 = vmul.f32 %v3320_v24, %v3320_v24 }
 0x802   :  { %3321 = vtanh.f32 %v2553_v13 }
 0x803   :  { %v2725_v63 = vsub.f32 1.0, %v2709_v20 }
 0x805   :  { %v2741_v11 = vmul.f32 %v5397_v42, %v2725_v63 }
 0x807   :  { %v2555_v50 = vpop.f32.mrf.mxu0  ;;  %2769 = vadd.xlane.f32.xlu1 %v2741_v11 }
 0x808   :  { %v5400_v19 = vpop.eup %3321  ;;  %v2556_v55 = vadd.f32 %v5309_v34, %v2555_v50 }
 0x809   :  { %v2582_v17 = vpack.c.bf16 %v5400_v19, %v3320_v24  ;;  %v5412_v24 = vstv %s3049_s6 }
 0x80a   :  { %3323 = vtanh.f32 %v2556_v55 }
 0x80b   :  { %2622 = vmatmul.bf16.gmra.mxu1 %v2582_v17 }
 0x80f   :  { %v2557_v35 = vpop.f32.mrf.mxu0 }
 0x810   :  { %v2558_v32 = vadd.f32 %v5309_v34, %v2557_v35  ;;  %v5405_v29 = vpop.eup %3323 }
 0x812   :  { %3325 = vtanh.f32 %v2558_v32 }
 0x818   :  { %v5407_v25 = vpop.eup %3325 }
 0x819   :  { %v2583_v56 = vpack.c.bf16 %v5407_v25, %v5405_v29 }
 0x81b   :  { %2627 = vmatmul.bf16.gmra.mxu1 %v2583_v56  ;;  %v5420_v56 = vpop.xlane.xlu1 %2745 }
 0x828   :  { %v2593_v0 = vpop.f32.mrf.mxu1 }
 0x829   :  { %v2594_v28 = vadd.f32 %v5220_v1, %v2593_v0 }
 0x82a   :  { %v5422_v0 = vpop.xlane.xlu0 %2749 }
 0x82b   :  { %v2633_v13 = vmul.f32 %v2594_v28, %v2594_v28  ;;  %v2778_v20 = vmul.f32 %v5412_v24, %v2594_v28 }
 0x82d   :  { %v2794_v34 = vadd.f32 %v2778_v20, %v5160_v4  ;;  %2649 = vadd.xlane.f32.xlu0 %v2633_v13 }
 0x82f   :  { %2874 = vst [vmem:[#allocation12] sm:$0xff] %v2794_v34 }
 0x830   :  { %v2595_v63 = vpop.f32.mrf.mxu1 }
 0x831   :  { %v2596_v11 = vadd.f32 %v5220_v1, %v2595_v63 }
 0x833   :  { %v2634_v50 = vmul.f32 %v2596_v11, %v2596_v11  ;;  %v2779_v17 = vmul.f32 %v5412_v24, %v2596_v11 }
 0x835   :  { %v2795_v55 = vadd.f32 %v2779_v17, %v5163_v61  ;;  %2651 = vadd.xlane.f32.xlu1 %v2634_v50  ;;  %v5427_v61 = vpop.xlane.xlu1 %2751 }
 0x837   :  { %2875 = vst [vmem:[#allocation12 + $0x8] sm:$0xff] %v2795_v55 }
 0x838   :  { %v2598_v35 = vpop.f32.mrf.mxu1 }
 0x839   :  { %v2599_v32 = vadd.f32 %v5220_v1, %v2598_v35 }
 0x83b   :  { %v2635_v4 = vmul.f32 %v2599_v32, %v2599_v32  ;;  %v2780_v28 = vmul.f32 %v5412_v24, %v2599_v32 }
 0x83d   :  { %v2796_v13 = vadd.f32 %v2780_v28, %v5180_v52  ;;  %2653 = vadd.xlane.f32.xlu2 %v2635_v4 }
 0x83f   :  { %2876 = vst [vmem:[#allocation12 + $0x10] sm:$0xff] %v2796_v13 }
 0x840   :  { %v2600_v20 = vpop.f32.mrf.mxu1 }
 0x841   :  { %v2601_v34 = vadd.f32 %v5220_v1, %v2600_v20 }
 0x842   :  { %v2756_v63 = vpop.xlane.xlu0 %2755 }
 0x843   :  { %v2636_v11 = vmul.f32 %v2601_v34, %v2601_v34  ;;  %v2781_v50 = vmul.f32 %v5412_v24, %v2601_v34  ;;  %v2847_v17 = vmul.f32 %v5412_v24, %v2756_v63 }
 0x845   :  { %v2797_v55 = vadd.f32 %v2781_v50, %v5183_v60  ;;  %v5433_v35 = vadd.f32 %v2847_v17, %v5174_v6  ;;  %2655 = vadd.xlane.f32.xlu0 %v2636_v11 }
 0x847   :  { %2877 = vst [vmem:[#allocation12 + $0x18] sm:$0xff] %v2797_v55 }
 0x848   :  { %v2603_v52 = vpop.f32.mrf.mxu1 }
 0x849   :  { %v2604_v32 = vadd.f32 %v5220_v1, %v2603_v52 }
 0x84a   :  { %v2758_v4 = vpop.xlane.xlu1 %2757 }
 0x84b   :  { %v2637_v28 = vmul.f32 %v2604_v32, %v2604_v32  ;;  %v2782_v13 = vmul.f32 %v5412_v24, %v2604_v32  ;;  %v2848_v20 = vmul.f32 %v5412_v24, %v2758_v4 }
 0x84d   :  { %v2798_v34 = vadd.f32 %v2782_v13, %v5200_v44  ;;  %v5440_v63 = vadd.f32 %v2848_v20, %v5187_v7  ;;  %2657 = vadd.xlane.f32.xlu1 %v2637_v28 }
 0x84f   :  { %2878 = vst [vmem:[#allocation12 + $0x20] sm:$0xff] %v2798_v34 }
 0x850   :  { %v2605_v6 = vpop.f32.mrf.mxu1 }
 0x851   :  { %v2606_v60 = vadd.f32 %v5220_v1, %v2605_v6 }
 0x853   :  { %v2638_v11 = vmul.f32 %v2606_v60, %v2606_v60  ;;  %v2783_v50 = vmul.f32 %v5412_v24, %v2606_v60 }
 0x855   :  { %v2799_v17 = vadd.f32 %v2783_v50, %v5203_v51  ;;  %2659 = vadd.xlane.f32.xlu2 %v2638_v11 }
 0x857   :  { %2879 = vst [vmem:[#allocation12 + $0x28] sm:$0xff] %v2799_v17 }
 0x858   :  { %v2608_v55 = vpop.f32.mrf.mxu1 }
 0x859   :  { %v2609_v52 = vadd.f32 %v5220_v1, %v2608_v55 }
 0x85a   :  { %v2762_v32 = vpop.xlane.xlu0 %2761 }
 0x85b   :  { %v2639_v44 = vmul.f32 %v2609_v52, %v2609_v52  ;;  %v2784_v7 = vmul.f32 %v5412_v24, %v2609_v52  ;;  %v2850_v4 = vmul.f32 %v5412_v24, %v2762_v32 }
 0x85d   :  { %v2800_v28 = vadd.f32 %v2784_v7, %v5225_v43  ;;  %v5450_v13 = vadd.f32 %v2850_v4, %v5207_v26  ;;  %2661 = vadd.xlane.f32.xlu0 %v2639_v44 }
 0x85f   :  { %2880 = vst [vmem:[#allocation12 + $0x30] sm:$0xff] %v2800_v28 }
 0x860   :  { %v2610_v20 = vpop.f32.mrf.mxu1 }
 0x861   :  { %v2611_v51 = vadd.f32 %v5220_v1, %v2610_v20 }
 0x862   :  { %v2764_v34 = vpop.xlane.xlu1 %2763 }
 0x863   :  { %v2640_v6 = vmul.f32 %v2611_v51, %v2611_v51  ;;  %v2785_v60 = vmul.f32 %v5412_v24, %v2611_v51  ;;  %v2851_v11 = vmul.f32 %v5412_v24, %v2764_v34 }
 0x865   :  { %v2801_v50 = vadd.f32 %v2785_v60, %v5228_v15  ;;  %v5457_v17 = vadd.f32 %v2851_v11, %v5214_v41  ;;  %2663 = vadd.xlane.f32.xlu1 %v2640_v6 }
 0x867   :  { %2881 = vst [vmem:[#allocation12 + $0x38] sm:$0xff] %v2801_v50 }
 0x868   :  { %v2613_v26 = vpop.f32.mrf.mxu1 }
 0x869   :  { %v2614_v43 = vadd.f32 %v5220_v1, %v2613_v26 }
 0x86b   :  { %v2641_v55 = vmul.f32 %v2614_v43, %v2614_v43  ;;  %v2786_v52 = vmul.f32 %v5412_v24, %v2614_v43 }
 0x86d   :  { %v2802_v32 = vadd.f32 %v2786_v52, %v5245_v38  ;;  %2665 = vadd.xlane.f32.xlu2 %v2641_v55 }
 0x86f   :  { %2882 = vst [vmem:[#allocation12 + $0x40] sm:$0xff] %v2802_v32 }
 0x870   :  { %v2615_v44 = vpop.f32.mrf.mxu1 }
 0x871   :  { %v2616_v7 = vadd.f32 %v5220_v1, %v2615_v44 }
 0x872   :  { %v2768_v4 = vpop.xlane.xlu0 %2767 }
 0x873   :  { %v2642_v15 = vmul.f32 %v2616_v7, %v2616_v7  ;;  %v2787_v41 = vmul.f32 %v5412_v24, %v2616_v7  ;;  %v2853_v28 = vmul.f32 %v5412_v24, %v2768_v4  ;;  %v3527_v7 = vmov 0.0  }
 0x874   :  { %2890 = vst [vmem:[#allocation13] sm:$0xff] %v3527_v7 }
 0x875   :  { %v2803_v20 = vadd.f32 %v2787_v41, %v5248_v8  ;;  %v5467_v51 = vadd.f32 %v2853_v28, %v5239_v16  ;;  %2667 = vadd.xlane.f32.xlu0 %v2642_v15  ;;  %2891 = vst [vmem:[#allocation13 + $0x8] sm:$0xff] %v3527_v7 }
 0x876   :  { %2892 = vst [vmem:[#allocation13 + $0x10] sm:$0xff] %v3527_v7 }
 0x877   :  { %2883 = vst [vmem:[#allocation12 + $0x48] sm:$0xff] %v2803_v20 }
 0x878   :  { %v2618_v34 = vpop.f32.mrf.mxu1  ;;  %2893 = vst [vmem:[#allocation13 + $0x18] sm:$0xff] %v3527_v7 }
 0x879   :  { %v2619_v38 = vadd.f32 %v5220_v1, %v2618_v34  ;;  %2894 = vst [vmem:[#allocation13 + $0x20] sm:$0xff] %v3527_v7 }
 0x87a   :  { %v2770_v6 = vpop.xlane.xlu1 %2769  ;;  %2895 = vst [vmem:[#allocation13 + $0x28] sm:$0xff] %v3527_v7 }
 0x87b   :  { %v2643_v60 = vmul.f32 %v2619_v38, %v2619_v38  ;;  %v2788_v11 = vmul.f32 %v5412_v24, %v2619_v38  ;;  %v2854_v50 = vmul.f32 %v5412_v24, %v2770_v6  ;;  %2896 = vst [vmem:[#allocation13 + $0x30] sm:$0xff] %v3527_v7  ;;  %v2712_v38 = vmul.f32 %v5407_v25, %v5407_v25 }
 0x87c   :  { %2897 = vst [vmem:[#allocation13 + $0x38] sm:$0xff] %v3527_v7 }
 0x87d   :  { %v2804_v26 = vadd.f32 %v2788_v11, %v5265_v57  ;;  %v5474_v43 = vadd.f32 %v2854_v50, %v5252_v48  ;;  %2669 = vadd.xlane.f32.xlu1 %v2643_v60  ;;  %2898 = vst [vmem:[#allocation13 + $0x40] sm:$0xff] %v3527_v7  ;;  %v2728_v60 = vsub.f32 1.0, %v2712_v38 }
 0x87e   :  { %2899 = vst [vmem:[#allocation13 + $0x48] sm:$0xff] %v3527_v7 }
 0x87f   :  { %2884 = vst [vmem:[#allocation12 + $0x50] sm:$0xff] %v2804_v26  ;;  %v2710_v26 = vmul.f32 %v5400_v19, %v5400_v19  ;;  %v2308_v19 = vmul.f32 0.5, %v5315_v22 }
 0x880   :  { %v2620_v16 = vpop.f32.mrf.mxu1  ;;  %2900 = vst [vmem:[#allocation13 + $0x50] sm:$0xff] %v3527_v7 }
 0x881   :  { %v2621_v8 = vadd.f32 %v5220_v1, %v2620_v16  ;;  %2901 = vst [vmem:[#allocation13 + $0x58] sm:$0xff] %v3527_v7  ;;  %v2437_v22 = vmul.f32 %v5136_v27, %v2308_v19 }
 0x882   :  { %2902 = vst [vmem:[#allocation13 + $0x60] sm:$0xff] %v3527_v7 }
 0x883   :  { %v2644_v55 = vmul.f32 %v2621_v8, %v2621_v8  ;;  %v2789_v52 = vmul.f32 %v5412_v24, %v2621_v8  ;;  %2903 = vst [vmem:[#allocation13 + $0x68] sm:$0xff] %v3527_v7  ;;  %v2453_v27 = vadd.f32 %v2437_v22, %v5040_v10 }
 0x884   :  { %2904 = vst [vmem:[#allocation13 + $0x70] sm:$0xff] %v3527_v7 }
 0x885   :  { %v2805_v32 = vadd.f32 %v2789_v52, %v5268_v12  ;;  %2671 = vadd.xlane.f32.xlu2 %v2644_v55  ;;  %v5482_v12 = vpop.xlane.xlu2 %2747  ;;  %2905 = vst [vmem:[#allocation13 + $0x78] sm:$0xff] %v3527_v7  ;;  %v2726_v55 = vsub.f32 1.0, %v2710_v26 }
 0x886   :  { %v2843_v38 = vmul.f32 %v5412_v24, %v5482_v12 }
 0x887   :  { %2885 = vst [vmem:[#allocation12 + $0x58] sm:$0xff] %v2805_v32 }
 0x888   :  { %v2623_v44 = vpop.f32.mrf.mxu1 }
 0x889   :  { %v2624_v57 = vadd.f32 %v5220_v1, %v2623_v44 }
 0x88b   :  { %v2645_v48 = vmul.f32 %v2624_v57, %v2624_v57  ;;  %v2790_v4 = vmul.f32 %v5412_v24, %v2624_v57 }
 0x88d   :  { %v2806_v15 = vadd.f32 %v2790_v4, %v5285_v14  ;;  %2673 = vadd.xlane.f32.xlu0 %v2645_v48  ;;  %v5489_v6 = vpop.xlane.xlu2 %2753  ;;  %v2742_v48 = vmul.f32 %v5397_v42, %v2726_v55  ;;  %v2711_v4 = vmul.f32 %v5405_v29, %v5405_v29 }
 0x88f   :  { %2886 = vst [vmem:[#allocation12 + $0x60] sm:$0xff] %v2806_v15 }
 0x890   :  { %v2625_v41 = vpop.f32.mrf.mxu1 }
 0x891   :  { %v2626_v28 = vadd.f32 %v5220_v1, %v2625_v41 }
 0x893   :  { %v2646_v20 = vmul.f32 %v2626_v28, %v2626_v28  ;;  %v2791_v34 = vmul.f32 %v5412_v24, %v2626_v28 }
 0x895   :  { %v2807_v14 = vadd.f32 %v2791_v34, %v5288_v58  ;;  %2675 = vadd.xlane.f32.xlu1 %v2646_v20  ;;  %v2744_v58 = vmul.f32 %v5397_v42, %v2728_v60  ;;  %v5497_v52 = vpop.xlane.xlu2 %2759 }
 0x897   :  { %2887 = vst [vmem:[#allocation12 + $0x68] sm:$0xff] %v2807_v14 }
 0x898   :  { %v2628_v11 = vpop.f32.mrf.mxu1 }
 0x899   :  { %v2629_v50 = vadd.f32 %v5220_v1, %v2628_v11  ;;  %v2859_v11 = vadd.f32 %v2843_v38, %v5145_v53  ;;  %v5809_v38 = vld [vmem:[#allocation43_spill] sm:$0xff] }
 0x89b   :  { %v2647_v25 = vmul.f32 %v2629_v50, %v2629_v50  ;;  %v2792_v16 = vmul.f32 %v5412_v24, %v2629_v50 }
 0x89d   :  { %v2808_v8 = vadd.f32 %v2792_v16, %v5298_v33  ;;  %2775 = vadd.xlane.f32.xlu1 %v2744_v58  ;;  %2677 = vadd.xlane.f32.xlu2 %v2647_v25  ;;  %v2842_v33 = vmul.f32 %v5412_v24, %v5420_v56  ;;  %v5515_v56 = vpop.xlane.xlu2 %2765  ;;  %v2844_v25 = vmul.f32 %v5412_v24, %v5422_v0 }
 0x89e   :  { %v2845_v58 = vmul.f32 %v5412_v24, %v5427_v61 }
 0x89f   :  { %2888 = vst [vmem:[#allocation12 + $0x70] sm:$0xff] %v2808_v8  ;;  %v2858_v29 = vadd.f32 %v2842_v33, %v5140_v30  ;;  %v2860_v16 = vadd.f32 %v2844_v25, %v5149_v31 }
 0x8a0   :  { %v2630_v32 = vpop.f32.mrf.mxu1  ;;  %v2650_v44 = vpop.xlane.xlu0 %2649  ;;  %v2861_v0 = vadd.f32 %v2845_v58, %v5154_v40 }
 0x8a1   :  { %v2631_v7 = vadd.f32 %v5220_v1, %v2630_v32  ;;  %v2681_v57 = vmul.f32 0.5, %v2650_v44  ;;  %v2846_v32 = vmul.f32 %v5412_v24, %v5489_v6 }
 0x8a3   :  { %v2648_v15 = vmul.f32 %v2631_v7, %v2631_v7  ;;  %v2793_v41 = vmul.f32 %v5412_v24, %v2631_v7  ;;  %v2810_v28 = vmul.f32 %v5412_v24, %v2681_v57  ;;  %v2862_v61 = vadd.f32 %v2846_v32, %v5169_v47 }
 0x8a5   :  { %v2809_v20 = vadd.f32 %v2793_v41, %v5301_v5  ;;  %v2826_v1 = vadd.f32 %v2810_v28, %v5304_v18  ;;  %2771 = vadd.xlane.f32.xlu2 %v2742_v48  ;;  %2679 = vadd.xlane.f32.xlu0 %v2648_v15  ;;  %v2727_v5 = vsub.f32 1.0, %v2711_v4  ;;  %v5808_v41 = vld [vmem:[#allocation55_spill] sm:$0xff] }
 0x8a7   :  { %2889 = vst [vmem:[#allocation12 + $0x78] sm:$0xff] %v2809_v20  ;;  %v2743_v14 = vmul.f32 %v5397_v42, %v2727_v5 }
 0x8a8   :  { %2907 = vst.msk [vmem:[#allocation13] sm:$0xff] %vm2906_vm0, %v2826_v1  ;;  %v2652_v18 = vpop.xlane.xlu1 %2651  ;;  %2952 = dma.vmem_to_hbm [thread:$0]  %s2945_s29, 2048, %s2947_s30, [#allocation4], %s3519_s13, %s3519_s13, %s3520_s14  }
 0x8a9   :  { %2924 = vst.msk [vmem:[#allocation13] sm:$0xff] %vm2923_vm1, %v2858_v29  ;;  %v2682_v34 = vmul.f32 0.5, %v2652_v18 }
 0x8ab   :  { %v2811_v30 = vmul.f32 %v5412_v24, %v2682_v34 }
 0x8ad   :  { %v2827_v60 = vadd.f32 %v2811_v30, %v2453_v27  ;;  %2773 = vadd.xlane.f32.xlu0 %v2743_v14 }
 0x8af   :  { %2908 = vst.msk [vmem:[#allocation13 + $0x8] sm:$0xff] %vm2906_vm0, %v2827_v60 }
 0x8b0   :  { %2925 = vst.msk [vmem:[#allocation13 + $0x8] sm:$0xff] %vm2923_vm1, %v2859_v11  ;;  %v2654_v50 = vpop.xlane.xlu2 %2653 }
 0x8b1   :  { %v2683_v26 = vmul.f32 0.5, %v2654_v50 }
 0x8b3   :  { %v2812_v12 = vmul.f32 %v5412_v24, %v2683_v26 }
 0x8b5   :  { %v2828_v10 = vadd.f32 %v2812_v12, %v5312_v9 }
 0x8b7   :  { %2909 = vst.msk [vmem:[#allocation13 + $0x10] sm:$0xff] %vm2906_vm0, %v2828_v10 }
 0x8b8   :  { %2926 = vst.msk [vmem:[#allocation13 + $0x10] sm:$0xff] %vm2923_vm1, %v2860_v16  ;;  %v2656_v53 = vpop.xlane.xlu0 %2655 }
 0x8b9   :  { %v2684_v42 = vmul.f32 0.5, %v2656_v53 }
 0x8bb   :  { %v2813_v8 = vmul.f32 %v5412_v24, %v2684_v42 }
 0x8bd   :  { %v2829_v55 = vadd.f32 %v2813_v8, %v5319_v39 }
 0x8bf   :  { %2910 = vst.msk [vmem:[#allocation13 + $0x18] sm:$0xff] %vm2906_vm0, %v2829_v55  ;;  %v5810_v55 = vld [vmem:[#allocation76_spill] sm:$0xff] }
 0x8c0   :  { %2927 = vst.msk [vmem:[#allocation13 + $0x18] sm:$0xff] %vm2923_vm1, %v2861_v0  ;;  %v2658_v31 = vpop.xlane.xlu1 %2657 }
 0x8c1   :  { %v2685_v9 = vmul.f32 0.5, %v2658_v31 }
 0x8c3   :  { %v2814_v44 = vmul.f32 %v5412_v24, %v2685_v9  ;;  %v5811_v9 = vld [vmem:[#allocation36_spill] sm:$0xff] }
 0x8c5   :  { %v2830_v7 = vadd.f32 %v2814_v44, %v5325_v37 }
 0x8c7   :  { %2911 = vst.msk [vmem:[#allocation13 + $0x20] sm:$0xff] %vm2906_vm0, %v2830_v7  ;;  %v5812_v7 = vld [vmem:[#allocation68_spill] sm:$0xff] }
 0x8c8   :  { %2928 = vst.msk [vmem:[#allocation13 + $0x20] sm:$0xff] %vm2923_vm1, %v2862_v61  ;;  %v2660_v40 = vpop.xlane.xlu2 %2659 }
 0x8c9   :  { %v2686_v39 = vmul.f32 0.5, %v2660_v40 }
 0x8cb   :  { %v2815_v57 = vmul.f32 %v5412_v24, %v2686_v39 }
 0x8cd   :  { %v2831_v19 = vadd.f32 %v2815_v57, %v5331_v36  ;;  %v2849_v36 = vmul.f32 %v5412_v24, %v5497_v52 }
 0x8cf   :  { %2912 = vst.msk [vmem:[#allocation13 + $0x28] sm:$0xff] %vm2906_vm0, %v2831_v19  ;;  %v2865_v28 = vadd.f32 %v2849_v36, %v5808_v41 }
 0x8d0   :  { %2929 = vst.msk [vmem:[#allocation13 + $0x28] sm:$0xff] %vm2923_vm1, %v5433_v35  ;;  %v2662_v6 = vpop.xlane.xlu0 %2661 }
 0x8d1   :  { %v2687_v48 = vmul.f32 0.5, %v2662_v6 }
 0x8d3   :  { %v2816_v37 = vmul.f32 %v5412_v24, %v2687_v48 }
 0x8d5   :  { %v2832_v47 = vadd.f32 %v2816_v37, %v5337_v62 }
 0x8d7   :  { %2913 = vst.msk [vmem:[#allocation13 + $0x30] sm:$0xff] %vm2906_vm0, %v2832_v47 }
 0x8d8   :  { %2930 = vst.msk [vmem:[#allocation13 + $0x30] sm:$0xff] %vm2923_vm1, %v5440_v63  ;;  %v2664_v4 = vpop.xlane.xlu1 %2663 }
 0x8d9   :  { %v2688_v33 = vmul.f32 0.5, %v2664_v4 }
 0x8db   :  { %v2817_v15 = vmul.f32 %v5412_v24, %v2688_v33 }
 0x8dd   :  { %v2833_v35 = vadd.f32 %v2817_v15, %v5343_v45 }
 0x8df   :  { %2914 = vst.msk [vmem:[#allocation13 + $0x38] sm:$0xff] %vm2906_vm0, %v2833_v35 }
 0x8e0   :  { %2931 = vst.msk [vmem:[#allocation13 + $0x38] sm:$0xff] %vm2923_vm1, %v2865_v28  ;;  %v2666_v62 = vpop.xlane.xlu2 %2665 }
 0x8e1   :  { %v2689_v20 = vmul.f32 0.5, %v2666_v62 }
 0x8e3   :  { %v2818_v1 = vmul.f32 %v5412_v24, %v2689_v20 }
 0x8e5   :  { %v2834_v63 = vadd.f32 %v2818_v1, %v5349_v21  ;;  %v2852_v21 = vmul.f32 %v5412_v24, %v5515_v56 }
 0x8e7   :  { %2915 = vst.msk [vmem:[#allocation13 + $0x40] sm:$0xff] %vm2906_vm0, %v2834_v63  ;;  %v2868_v27 = vadd.f32 %v2852_v21, %v5809_v38 }
 0x8e8   :  { %2932 = vst.msk [vmem:[#allocation13 + $0x40] sm:$0xff] %vm2923_vm1, %v5450_v13  ;;  %v2668_v52 = vpop.xlane.xlu0 %2667 }
 0x8e9   :  { %v2690_v22 = vmul.f32 0.5, %v2668_v52 }
 0x8eb   :  { %v2819_v45 = vmul.f32 %v5412_v24, %v2690_v22 }
 0x8ed   :  { %v2835_v29 = vadd.f32 %v2819_v45, %v5355_v49 }
 0x8ef   :  { %2916 = vst.msk [vmem:[#allocation13 + $0x48] sm:$0xff] %vm2906_vm0, %v2835_v29 }
 0x8f0   :  { %2933 = vst.msk [vmem:[#allocation13 + $0x48] sm:$0xff] %vm2923_vm1, %v5457_v17  ;;  %v2670_v5 = vpop.xlane.xlu1 %2669 }
 0x8f1   :  { %v2691_v18 = vmul.f32 0.5, %v2670_v5 }
 0x8f3   :  { %v2820_v34 = vmul.f32 %v5412_v24, %v2691_v18 }
 0x8f5   :  { %v2836_v13 = vadd.f32 %v2820_v34, %v5361_v3 }
 0x8f7   :  { %2917 = vst.msk [vmem:[#allocation13 + $0x50] sm:$0xff] %vm2906_vm0, %v2836_v13 }
 0x8f8   :  { %2934 = vst.msk [vmem:[#allocation13 + $0x50] sm:$0xff] %vm2923_vm1, %v2868_v27  ;;  %v2672_v49 = vpop.xlane.xlu2 %2671 }
 0x8f9   :  { %v2692_v30 = vmul.f32 0.5, %v2672_v49 }
 0x8fb   :  { %v2821_v14 = vmul.f32 %v5412_v24, %v2692_v30 }
 0x8fd   :  { %v2837_v17 = vadd.f32 %v2821_v14, %v5367_v46 }
 0x8ff   :  { %2918 = vst.msk [vmem:[#allocation13 + $0x58] sm:$0xff] %vm2906_vm0, %v2837_v17 }
 0x900   :  { %2935 = vst.msk [vmem:[#allocation13 + $0x58] sm:$0xff] %vm2923_vm1, %v5467_v51  ;;  %v2674_v56 = vpop.xlane.xlu0 %2673 }
 0x901   :  { %v2693_v60 = vmul.f32 0.5, %v2674_v56 }
 0x903   :  { %v2822_v3 = vmul.f32 %v5412_v24, %v2693_v60 }
 0x905   :  { %v2838_v11 = vadd.f32 %v2822_v3, %v5373_v2 }
 0x907   :  { %2919 = vst.msk [vmem:[#allocation13 + $0x60] sm:$0xff] %vm2906_vm0, %v2838_v11 }
 0x908   :  { %2936 = vst.msk [vmem:[#allocation13 + $0x60] sm:$0xff] %vm2923_vm1, %v5474_v43  ;;  %v2676_v50 = vpop.xlane.xlu1 %2675 }
 0x909   :  { %v2694_v26 = vmul.f32 0.5, %v2676_v50 }
 0x90b   :  { %v2823_v46 = vmul.f32 %v5412_v24, %v2694_v26 }
 0x90d   :  { %v2839_v25 = vadd.f32 %v2823_v46, %v5379_v23 }
 0x90f   :  { %2920 = vst.msk [vmem:[#allocation13 + $0x68] sm:$0xff] %vm2906_vm0, %v2839_v25 }
 0x910   :  { %v2678_v51 = vpop.xlane.xlu2 %2677  ;;  %v2776_v2 = vpop.xlane.xlu1 %2775 }
 0x911   :  { %v2695_v12 = vmul.f32 0.5, %v2678_v51  ;;  %v2857_v8 = vmul.f32 %v5412_v24, %v2776_v2 }
 0x913   :  { %v2824_v10 = vmul.f32 %v5412_v24, %v2695_v12 }
 0x915   :  { %v2840_v16 = vadd.f32 %v2824_v10, %v5385_v54  ;;  %v2873_v54 = vadd.f32 %v2857_v8, %v5811_v9 }
 0x917   :  { %2921 = vst.msk [vmem:[#allocation13 + $0x70] sm:$0xff] %vm2906_vm0, %v2840_v16 }
 0x918   :  { %v2772_v53 = vpop.xlane.xlu2 %2771  ;;  %v2680_v42 = vpop.xlane.xlu0 %2679 }
 0x919   :  { %v2855_v43 = vmul.f32 %v5412_v24, %v2772_v53  ;;  %v2696_v58 = vmul.f32 0.5, %v2680_v42 }
 0x91b   :  { %v2871_v23 = vadd.f32 %v2855_v43, %v5810_v55  ;;  %v2825_v0 = vmul.f32 %v5412_v24, %v2696_v58 }
 0x91d   :  { %2937 = vst.msk [vmem:[#allocation13 + $0x68] sm:$0xff] %vm2923_vm1, %v2871_v23  ;;  %v2841_v31 = vadd.f32 %v2825_v0, %v5391_v59 }
 0x91f   :  { %2922 = vst.msk [vmem:[#allocation13 + $0x78] sm:$0xff] %vm2906_vm0, %v2841_v31 }
 0x920   :  { %2939 = vst.msk [vmem:[#allocation13 + $0x78] sm:$0xff] %vm2923_vm1, %v2873_v54  ;;  %v2774_v32 = vpop.xlane.xlu0 %2773 }
 0x921   :  { %v2856_v44 = vmul.f32 %v5412_v24, %v2774_v32 }
 0x923   :  { %v2872_v61 = vadd.f32 %v2856_v44, %v5812_v7 }
 0x925   :  { %2938 = vst.msk [vmem:[#allocation13 + $0x70] sm:$0xff] %vm2923_vm1, %v2872_v61 }
 0x926   :  { %2965 = dma.vmem_to_hbm [thread:$0]  %s2958_s9, 2048, %s2960_s12, [#allocation14], %s3519_s13, %s3519_s13, %s3520_s14  }
 0x927   :  { %3514 = dma.done.wait [#allocation4], 2048  }
 0x928   :  { %3515 = vsyncadd [#allocation4], 4294965248 }
 0x929   :  { %3516 = dma.done.wait [#allocation14], 2048  }
 0x92a   :  { %3517 = vsyncadd [#allocation14], 4294965248 }
 0x92b   :  { %2974 = vsyncpa [#allocation3], 1 }
 0x92c   :  { %2975 = vsyncpa [#allocation8], 1 }
 0x92d   :  { %2976 = vsyncpa [#allocation11], 1 }
 0x92e   :  { %2977 = vsyncpa [#allocation4], 1 }
 0x92f   :  { %2978 = vsyncpa [#allocation14], 1 }
 0x930   :  { %2979 = vsyncpa [#allocation5], 1 }

</bundles_post_ra>
